<compile_context>
chip_gen: v5e
topology: v5e:2x2
jax: 0.10.0
libtpu: 0.0.40
codegen_flags: <defaults>
</compile_context>

<pallas_src>
import numpy as np
import jax
import jax.numpy as jnp
from jax.experimental import pallas as pl
from jax.experimental.pallas import tpu as pltpu

EPS = 1e-5


# ---------------------------------------------------------------------------
# Fused Bottleneck kernel (one batch element per grid step)
# ---------------------------------------------------------------------------
def _make_kernel(H, W, Cin, Cp, Cout, stride, has_downsample, cdtype):
    Ho = (H - 1) // stride + 1
    Wo = (W - 1) // stride + 1
    f32 = jnp.float32

    def kernel(*refs):
        if has_downsample:
            (x_ref, w1_ref, s1_ref, b1_ref, w2_ref, s2_ref, b2_ref,
             w3_ref, s3_ref, b3_ref, wd_ref, sd_ref, bd_ref,
             o_ref, pad_ref) = refs
        else:
            (x_ref, w1_ref, s1_ref, b1_ref, w2_ref, s2_ref, b2_ref,
             w3_ref, s3_ref, b3_ref, o_ref, pad_ref) = refs

        x2 = x_ref[0]                                            # (H*W, Cin) f32

        # ---- conv1: 1x1 + BN + ReLU (MXU matmul, bf16 in / f32 acc) ----
        y1 = jnp.dot(x2.astype(cdtype), w1_ref[...],
                     preferred_element_type=f32)                 # (HW, Cp)
        y1 = jnp.maximum(y1 * s1_ref[...] + b1_ref[...], 0.0)

        # ---- conv2: 3x3 stride via 9 shifted matmuls over zero-padded scratch ----
        pad_ref[...] = jnp.zeros_like(pad_ref)
        pad_ref[1:H + 1, 1:W + 1, :] = y1.reshape(H, W, Cp)
        acc = jnp.zeros((Ho * Wo, Cp), f32)
        for ky in range(3):
            for kx in range(3):
                if stride == 1:
                    patch = pad_ref[ky:ky + Ho, kx:kx + Wo, :]   # (Ho, Wo, Cp)
                else:
                    # TODO(synk): stride>1 window read (strided pl.ds) not exercised by the test.
                    patch = pad_ref[pl.ds(ky, Ho, stride=stride),
                                    pl.ds(kx, Wo, stride=stride), :]
                acc = acc + jnp.dot(
                    patch.reshape(Ho * Wo, Cp).astype(cdtype),
                    w2_ref[ky * 3 + kx],
                    preferred_element_type=f32)
        y2 = jnp.maximum(acc * s2_ref[...] + b2_ref[...], 0.0)   # (HoWo, Cp)

        # ---- conv3: 1x1 + BN (no activation) ----
        y3 = jnp.dot(y2.astype(cdtype), w3_ref[...],
                     preferred_element_type=f32)                 # (HoWo, Cout)
        y3 = y3 * s3_ref[...] + b3_ref[...]

        # ---- residual path ----
        if has_downsample:
            if stride == 1:
                xs = x2
            else:
                xs = jax.lax.slice(
                    x2.reshape(H, W, Cin), (0, 0, 0),
                    ((Ho - 1) * stride + 1, (Wo - 1) * stride + 1, Cin),
                    (stride, stride, 1)).reshape(Ho * Wo, Cin)
            res = jnp.dot(xs.astype(cdtype), wd_ref[...],
                          preferred_element_type=f32)
            res = res * sd_ref[...] + bd_ref[...]
        else:
            res = x2                                             # identity residual

        o_ref[0] = jnp.maximum(y3 + res, 0.0).astype(o_ref.dtype)

    return kernel


# ---------------------------------------------------------------------------
# Wrapper
# ---------------------------------------------------------------------------
def bottleneck_forward(x_nchw, params, *, stride=1, compute_dtype=jnp.bfloat16):
    B, Cin, H, W = x_nchw.shape
    Cp = params["w1"].shape[1]
    Cout = params["w3"].shape[1]
    has_ds = "wd" in params
    if not has_ds:
        assert stride == 1 and Cin == Cout, "identity residual needs matching shapes"
    Ho = (H - 1) // stride + 1
    Wo = (W - 1) // stride + 1
    HW, HoWo = H * W, Ho * Wo
    cd = compute_dtype

    # NHWC flattened so channels sit on the 128-lane axis.
    # TODO(synk): real deployments should keep activations NHWC end-to-end and
    # drop this boundary transpose (extra HBM round trip of x / out).
    x_flat = jnp.transpose(x_nchw, (0, 2, 3, 1)).reshape(B, HW, Cin)

    def vec(p):   # (C,) -> (1, C) f32 row for lane-broadcast in-kernel
        return p.reshape(1, -1).astype(jnp.float32)

    args = [x_flat,
            params["w1"].astype(cd), vec(params["s1"]), vec(params["b1"]),
            params["w2"].reshape(9, Cp, Cp).astype(cd), vec(params["s2"]), vec(params["b2"]),
            params["w3"].astype(cd), vec(params["s3"]), vec(params["b3"])]
    in_specs = [
        pl.BlockSpec((1, HW, Cin), lambda b: (b, 0, 0)),
        pl.BlockSpec((Cin, Cp), lambda b: (0, 0)),
        pl.BlockSpec((1, Cp), lambda b: (0, 0)),
        pl.BlockSpec((1, Cp), lambda b: (0, 0)),
        pl.BlockSpec((9, Cp, Cp), lambda b: (0, 0, 0)),
        pl.BlockSpec((1, Cp), lambda b: (0, 0)),
        pl.BlockSpec((1, Cp), lambda b: (0, 0)),
        pl.BlockSpec((Cp, Cout), lambda b: (0, 0)),
        pl.BlockSpec((1, Cout), lambda b: (0, 0)),
        pl.BlockSpec((1, Cout), lambda b: (0, 0)),
    ]
    if has_ds:
        args += [params["wd"].astype(cd), vec(params["sd"]), vec(params["bd"])]
        in_specs += [
            pl.BlockSpec((Cin, Cout), lambda b: (0, 0)),
            pl.BlockSpec((1, Cout), lambda b: (0, 0)),
            pl.BlockSpec((1, Cout), lambda b: (0, 0)),
        ]

    kernel = _make_kernel(H, W, Cin, Cp, Cout, stride, has_ds, cd)
    out_flat = pl.pallas_call(
        kernel,
        out_shape=jax.ShapeDtypeStruct((B, HoWo, Cout), x_nchw.dtype),
        grid=(B,),
        in_specs=in_specs,
        out_specs=pl.BlockSpec((1, HoWo, Cout), lambda b: (b, 0, 0)),
        scratch_shapes=[pltpu.VMEM((H + 2, W + 2, Cp), jnp.float32)],
        compiler_params=pltpu.CompilerParams(
            dimension_semantics=("parallel",),            # feed both v7x TensorCores
            vmem_limit_bytes=48 * 1024 * 1024),           # explicit, fits all of v5e/v6e/v7x
    )(*args)
    return jnp.transpose(out_flat.reshape(B, Ho, Wo, Cout), (0, 3, 1, 2))


# ---------------------------------------------------------------------------
# Deterministic synthetic parameters (shapes from Bottleneck.__init__)
# ---------------------------------------------------------------------------
def init_params(key, inplanes, planes, stride=1, expansion=4):
    Cout = planes * expansion
    need_ds = (stride != 1) or (inplanes != Cout)
    ks = jax.random.split(key, 8)

    def w(k, shape, fan_in):
        return jax.random.normal(k, shape, jnp.float32) / np.sqrt(fan_in)

    def fused_bn(k, c):
        k1, k2, k3, k4 = jax.random.split(k, 4)
        gamma = 1.0 + 0.1 * jax.random.normal(k1, (c,), jnp.float32)
        beta = 0.1 * jax.random.normal(k2, (c,), jnp.float32)
        mean = 0.05 * jax.random.normal(k3, (c,), jnp.float32)
        var = 1.0 + 0.2 * jax.random.uniform(k4, (c,), jnp.float32)
        scale = gamma / jnp.sqrt(var + EPS)
        bias = beta - mean * scale
        return scale, bias

    p = {}
    p["w1"] = w(ks[0], (inplanes, planes), inplanes)            # 1x1 as (Cin, Cp)
    p["s1"], p["b1"] = fused_bn(ks[1], planes)
    p["w2"] = w(ks[2], (3, 3, planes, planes), 9 * planes)      # HWIO
    p["s2"], p["b2"] = fused_bn(ks[3], planes)
    p["w3"] = w(ks[4], (planes, Cout), planes)
    p["s3"], p["b3"] = fused_bn(ks[5], Cout)
    if need_ds:
        p["wd"] = w(ks[6], (inplanes, Cout), inplanes)
        p["sd"], p["bd"] = fused_bn(ks[7], Cout)
    return p


# ---------------------------------------------------------------------------
# Pure-JAX reference (same mixed-precision policy: bf16 matmul in, f32 acc)
# ---------------------------------------------------------------------------
def ref_forward(x_nchw, params, *, stride=1, compute_dtype=jnp.bfloat16):
    cd = compute_dtype
    x = jnp.transpose(x_nchw, (0, 2, 3, 1))                      # NHWC f32

    y = jnp.einsum("bhwc,cd->bhwd", x.astype(cd), params["w1"].astype(cd),
                   preferred_element_type=jnp.float32)
    y = jnp.maximum(y * params["s1"] + params["b1"], 0.0)

    y = jax.lax.conv_general_dilated(
        y.astype(cd), params["w2"].astype(cd), (stride, stride),
        ((1, 1), (1, 1)), dimension_numbers=("NHWC", "HWIO", "NHWC"),
        preferred_element_type=jnp.float32)
    y = jnp.maximum(y * params["s2"] + params["b2"], 0.0)

    y = jnp.einsum("bhwc,cd->bhwd", y.astype(cd), params["w3"].astype(cd),
                   preferred_element_type=jnp.float32)
    y = y * params["s3"] + params["b3"]

    if "wd" in params:
        xs = x[:, ::stride, ::stride, :]
        r = jnp.einsum("bhwc,cd->bhwd", xs.astype(cd), params["wd"].astype(cd),
                       preferred_element_type=jnp.float32)
        r = r * params["sd"] + params["bd"]
    else:
        r = x
    out = jnp.maximum(y + r, 0.0)
    return jnp.transpose(out, (0, 3, 1, 2))


# ---------------------------------------------------------------------------
if __name__ == "__main__":
    # Bottleneck(inplanes=64, planes=32, stride=1, downsample=1x1 conv+BN)
    # -> output channels = planes * 4 = 128 (lane-dense output).
    B, inplanes, H, W = 2, 64, 16, 16
    planes, stride = 32, 1

    key = jax.random.PRNGKey(0)
    kx, kp = jax.random.split(key)
    x = jax.random.normal(kx, (B, inplanes, H, W), jnp.float32)   # NCHW, like PyTorch
    params = init_params(kp, inplanes, planes, stride)

    out = jax.block_until_ready(bottleneck_forward(x, params, stride=stride))
    ref = jax.block_until_ready(ref_forward(x, params, stride=stride))

    assert out.shape == (B, planes * 4, H, W), out.shape
    np.testing.assert_allclose(np.asarray(out), np.asarray(ref), rtol=2e-2, atol=2e-2)
    print("KERNEL_OK")
</pallas_src>

<mosaic_0001>
module attributes {stable_mosaic.version = 11 : i64} {
  func.func @kernel(%arg0: i32, %arg1: memref<1x256x64xf32, #tpu.memory_space<vmem>>, %arg2: memref<64x32xbf16, #tpu.memory_space<vmem>>, %arg3: memref<1x32xf32, #tpu.memory_space<vmem>>, %arg4: memref<1x32xf32, #tpu.memory_space<vmem>>, %arg5: memref<9x32x32xbf16, #tpu.memory_space<vmem>>, %arg6: memref<1x32xf32, #tpu.memory_space<vmem>>, %arg7: memref<1x32xf32, #tpu.memory_space<vmem>>, %arg8: memref<32x128xbf16, #tpu.memory_space<vmem>>, %arg9: memref<1x128xf32, #tpu.memory_space<vmem>>, %arg10: memref<1x128xf32, #tpu.memory_space<vmem>>, %arg11: memref<64x128xbf16, #tpu.memory_space<vmem>>, %arg12: memref<1x128xf32, #tpu.memory_space<vmem>>, %arg13: memref<1x128xf32, #tpu.memory_space<vmem>>, %arg14: memref<1x256x128xf32, #tpu.memory_space<vmem>>, %arg15: memref<18x18x32xf32, #tpu.memory_space<vmem>>) attributes {dimension_semantics = [#tpu.dimension_semantics<parallel>], iteration_bounds = array<i64: 2>, scalar_prefetch = 0 : i64, scratch_operands = 1 : i64, tpu.core_type = #tpu.core_type<tc>, window_params = [{transform_indices = @transform_0, window_bounds = array<i64: 1, 256, 64>}, {pipeline_mode = #tpu.pipeline_mode<synchronous>, transform_indices = @transform_1, window_bounds = array<i64: 64, 32>}, {pipeline_mode = #tpu.pipeline_mode<synchronous>, transform_indices = @transform_2, window_bounds = array<i64: 1, 32>}, {pipeline_mode = #tpu.pipeline_mode<synchronous>, transform_indices = @transform_3, window_bounds = array<i64: 1, 32>}, {pipeline_mode = #tpu.pipeline_mode<synchronous>, transform_indices = @transform_4, window_bounds = array<i64: 9, 32, 32>}, {pipeline_mode = #tpu.pipeline_mode<synchronous>, transform_indices = @transform_5, window_bounds = array<i64: 1, 32>}, {pipeline_mode = #tpu.pipeline_mode<synchronous>, transform_indices = @transform_6, window_bounds = array<i64: 1, 32>}, {pipeline_mode = #tpu.pipeline_mode<synchronous>, transform_indices = @transform_7, window_bounds = array<i64: 32, 128>}, {pipeline_mode = #tpu.pipeline_mode<synchronous>, transform_indices = @transform_8, window_bounds = array<i64: 1, 128>}, {pipeline_mode = #tpu.pipeline_mode<synchronous>, transform_indices = @transform_9, window_bounds = array<i64: 1, 128>}, {pipeline_mode = #tpu.pipeline_mode<synchronous>, transform_indices = @transform_10, window_bounds = array<i64: 64, 128>}, {pipeline_mode = #tpu.pipeline_mode<synchronous>, transform_indices = @transform_11, window_bounds = array<i64: 1, 128>}, {pipeline_mode = #tpu.pipeline_mode<synchronous>, transform_indices = @transform_12, window_bounds = array<i64: 1, 128>}, {transform_indices = @transform_13, window_bounds = array<i64: 1, 256, 128>}]} {
    %c0 = arith.constant 0 : index
    %c0_0 = arith.constant 0 : index
    %c0_1 = arith.constant 0 : index
    %0 = vector.load %arg1[%c0, %c0_0, %c0_1] : memref<1x256x64xf32, #tpu.memory_space<vmem>>, vector<1x256x64xf32>
    %1 = vector.shape_cast %0 : vector<1x256x64xf32> to vector<256x64xf32>
    %2 = arith.truncf %1 : vector<256x64xf32> to vector<256x64xbf16>
    %c0_2 = arith.constant 0 : index
    %c0_3 = arith.constant 0 : index
    %3 = vector.load %arg2[%c0_2, %c0_3] : memref<64x32xbf16, #tpu.memory_space<vmem>>, vector<64x32xbf16>
    %cst = arith.constant dense<0.000000e+00> : vector<256x32xf32>
    %4 = tpu.matmul %2, %3, %cst {dimension_numbers = #tpu.dot_dimension_numbers<[1], [0], [0], [1], [0, 0, 1, 1], [], []>} : vector<256x64xbf16>, vector<64x32xbf16>, vector<256x32xf32> -> vector<256x32xf32>
    %c0_4 = arith.constant 0 : index
    %c0_5 = arith.constant 0 : index
    %5 = vector.load %arg3[%c0_4, %c0_5] : memref<1x32xf32, #tpu.memory_space<vmem>>, vector<1x32xf32>
    %6 = vector.broadcast %5 : vector<1x32xf32> to vector<256x32xf32>
    %7 = arith.mulf %4, %6 : vector<256x32xf32>
    %c0_6 = arith.constant 0 : index
    %c0_7 = arith.constant 0 : index
    %8 = vector.load %arg4[%c0_6, %c0_7] : memref<1x32xf32, #tpu.memory_space<vmem>>, vector<1x32xf32>
    %9 = vector.broadcast %8 : vector<1x32xf32> to vector<256x32xf32>
    %10 = arith.addf %7, %9 : vector<256x32xf32>
    %cst_8 = arith.constant 0.000000e+00 : f32
    %11 = vector.broadcast %cst_8 : f32 to vector<256x32xf32>
    %12 = arith.maximumf %10, %11 : vector<256x32xf32>
    %cst_9 = arith.constant 0.000000e+00 : f32
    %13 = vector.broadcast %cst_9 : f32 to vector<18x18x32xf32>
    %c0_10 = arith.constant 0 : index
    %c0_11 = arith.constant 0 : index
    %c0_12 = arith.constant 0 : index
    %14 = vector.load %arg15[%c0_10, %c0_11, %c0_12] : memref<18x18x32xf32, #tpu.memory_space<vmem>>, vector<18x18x32xf32>
    tpu.vector_store %arg15[%c0_10, %c0_11, %c0_12], %13 {strides = array<i32>} : memref<18x18x32xf32, #tpu.memory_space<vmem>>, vector<18x18x32xf32>,
    %15 = vector.shape_cast %12 : vector<256x32xf32> to vector<16x16x32xf32>
    %c1 = arith.constant 1 : index
    %c1_13 = arith.constant 1 : index
    %c0_14 = arith.constant 0 : index
    %16 = vector.load %arg15[%c1, %c1_13, %c0_14] : memref<18x18x32xf32, #tpu.memory_space<vmem>>, vector<16x16x32xf32>
    tpu.vector_store %arg15[%c1, %c1_13, %c0_14], %15 {strides = array<i32>} : memref<18x18x32xf32, #tpu.memory_space<vmem>>, vector<16x16x32xf32>,
    %cst_15 = arith.constant 0.000000e+00 : f32
    %17 = vector.broadcast %cst_15 : f32 to vector<256x32xf32>
    %c0_16 = arith.constant 0 : index
    %c0_17 = arith.constant 0 : index
    %c0_18 = arith.constant 0 : index
    %18 = vector.load %arg15[%c0_16, %c0_17, %c0_18] : memref<18x18x32xf32, #tpu.memory_space<vmem>>, vector<16x16x32xf32>
    %19 = vector.shape_cast %18 : vector<16x16x32xf32> to vector<256x32xf32>
    %20 = arith.truncf %19 : vector<256x32xf32> to vector<256x32xbf16>
    %c0_19 = arith.constant 0 : index
    %c0_20 = arith.constant 0 : index
    %c0_21 = arith.constant 0 : index
    %21 = vector.load %arg5[%c0_19, %c0_20, %c0_21] : memref<9x32x32xbf16, #tpu.memory_space<vmem>>, vector<1x32x32xbf16>
    %22 = vector.shape_cast %21 : vector<1x32x32xbf16> to vector<32x32xbf16>
    %cst_22 = arith.constant dense<0.000000e+00> : vector<256x32xf32>
    %23 = tpu.matmul %20, %22, %cst_22 {dimension_numbers = #tpu.dot_dimension_numbers<[1], [0], [0], [1], [0, 0, 1, 1], [], []>} : vector<256x32xbf16>, vector<32x32xbf16>, vector<256x32xf32> -> vector<256x32xf32>
    %24 = arith.addf %17, %23 : vector<256x32xf32>
    %c0_23 = arith.constant 0 : index
    %c1_24 = arith.constant 1 : index
    %c0_25 = arith.constant 0 : index
    %25 = vector.load %arg15[%c0_23, %c1_24, %c0_25] : memref<18x18x32xf32, #tpu.memory_space<vmem>>, vector<16x16x32xf32>
    %26 = vector.shape_cast %25 : vector<16x16x32xf32> to vector<256x32xf32>
    %27 = arith.truncf %26 : vector<256x32xf32> to vector<256x32xbf16>
    %c1_26 = arith.constant 1 : index
    %c0_27 = arith.constant 0 : index
    %c0_28 = arith.constant 0 : index
    %28 = vector.load %arg5[%c1_26, %c0_27, %c0_28] : memref<9x32x32xbf16, #tpu.memory_space<vmem>>, vector<1x32x32xbf16>
    %29 = vector.shape_cast %28 : vector<1x32x32xbf16> to vector<32x32xbf16>
    %cst_29 = arith.constant dense<0.000000e+00> : vector<256x32xf32>
    %30 = tpu.matmul %27, %29, %cst_29 {dimension_numbers = #tpu.dot_dimension_numbers<[1], [0], [0], [1], [0, 0, 1, 1], [], []>} : vector<256x32xbf16>, vector<32x32xbf16>, vector<256x32xf32> -> vector<256x32xf32>
    %31 = arith.addf %24, %30 : vector<256x32xf32>
    %c0_30 = arith.constant 0 : index
    %c2 = arith.constant 2 : index
    %c0_31 = arith.constant 0 : index
    %32 = vector.load %arg15[%c0_30, %c2, %c0_31] : memref<18x18x32xf32, #tpu.memory_space<vmem>>, vector<16x16x32xf32>
    %33 = vector.shape_cast %32 : vector<16x16x32xf32> to vector<256x32xf32>
    %34 = arith.truncf %33 : vector<256x32xf32> to vector<256x32xbf16>
    %c2_32 = arith.constant 2 : index
    %c0_33 = arith.constant 0 : index
    %c0_34 = arith.constant 0 : index
    %35 = vector.load %arg5[%c2_32, %c0_33, %c0_34] : memref<9x32x32xbf16, #tpu.memory_space<vmem>>, vector<1x32x32xbf16>
    %36 = vector.shape_cast %35 : vector<1x32x32xbf16> to vector<32x32xbf16>
    %cst_35 = arith.constant dense<0.000000e+00> : vector<256x32xf32>
    %37 = tpu.matmul %34, %36, %cst_35 {dimension_numbers = #tpu.dot_dimension_numbers<[1], [0], [0], [1], [0, 0, 1, 1], [], []>} : vector<256x32xbf16>, vector<32x32xbf16>, vector<256x32xf32> -> vector<256x32xf32>
    %38 = arith.addf %31, %37 : vector<256x32xf32>
    %c1_36 = arith.constant 1 : index
    %c0_37 = arith.constant 0 : index
    %c0_38 = arith.constant 0 : index
    %39 = vector.load %arg15[%c1_36, %c0_37, %c0_38] : memref<18x18x32xf32, #tpu.memory_space<vmem>>, vector<16x16x32xf32>
    %40 = vector.shape_cast %39 : vector<16x16x32xf32> to vector<256x32xf32>
    %41 = arith.truncf %40 : vector<256x32xf32> to vector<256x32xbf16>
    %c3 = arith.constant 3 : index
    %c0_39 = arith.constant 0 : index
    %c0_40 = arith.constant 0 : index
    %42 = vector.load %arg5[%c3, %c0_39, %c0_40] : memref<9x32x32xbf16, #tpu.memory_space<vmem>>, vector<1x32x32xbf16>
    %43 = vector.shape_cast %42 : vector<1x32x32xbf16> to vector<32x32xbf16>
    %cst_41 = arith.constant dense<0.000000e+00> : vector<256x32xf32>
    %44 = tpu.matmul %41, %43, %cst_41 {dimension_numbers = #tpu.dot_dimension_numbers<[1], [0], [0], [1], [0, 0, 1, 1], [], []>} : vector<256x32xbf16>, vector<32x32xbf16>, vector<256x32xf32> -> vector<256x32xf32>
    %45 = arith.addf %38, %44 : vector<256x32xf32>
    %c1_42 = arith.constant 1 : index
    %c1_43 = arith.constant 1 : index
    %c0_44 = arith.constant 0 : index
    %46 = vector.load %arg15[%c1_42, %c1_43, %c0_44] : memref<18x18x32xf32, #tpu.memory_space<vmem>>, vector<16x16x32xf32>
    %47 = vector.shape_cast %46 : vector<16x16x32xf32> to vector<256x32xf32>
    %48 = arith.truncf %47 : vector<256x32xf32> to vector<256x32xbf16>
    %c4 = arith.constant 4 : index
    %c0_45 = arith.constant 0 : index
    %c0_46 = arith.constant 0 : index
    %49 = vector.load %arg5[%c4, %c0_45, %c0_46] : memref<9x32x32xbf16, #tpu.memory_space<vmem>>, vector<1x32x32xbf16>
    %50 = vector.shape_cast %49 : vector<1x32x32xbf16> to vector<32x32xbf16>
    %cst_47 = arith.constant dense<0.000000e+00> : vector<256x32xf32>
    %51 = tpu.matmul %48, %50, %cst_47 {dimension_numbers = #tpu.dot_dimension_numbers<[1], [0], [0], [1], [0, 0, 1, 1], [], []>} : vector<256x32xbf16>, vector<32x32xbf16>, vector<256x32xf32> -> vector<256x32xf32>
    %52 = arith.addf %45, %51 : vector<256x32xf32>
    %c1_48 = arith.constant 1 : index
    %c2_49 = arith.constant 2 : index
    %c0_50 = arith.constant 0 : index
    %53 = vector.load %arg15[%c1_48, %c2_49, %c0_50] : memref<18x18x32xf32, #tpu.memory_space<vmem>>, vector<16x16x32xf32>
    %54 = vector.shape_cast %53 : vector<16x16x32xf32> to vector<256x32xf32>
    %55 = arith.truncf %54 : vector<256x32xf32> to vector<256x32xbf16>
    %c5 = arith.constant 5 : index
    %c0_51 = arith.constant 0 : index
    %c0_52 = arith.constant 0 : index
    %56 = vector.load %arg5[%c5, %c0_51, %c0_52] : memref<9x32x32xbf16, #tpu.memory_space<vmem>>, vector<1x32x32xbf16>
    %57 = vector.shape_cast %56 : vector<1x32x32xbf16> to vector<32x32xbf16>
    %cst_53 = arith.constant dense<0.000000e+00> : vector<256x32xf32>
    %58 = tpu.matmul %55, %57, %cst_53 {dimension_numbers = #tpu.dot_dimension_numbers<[1], [0], [0], [1], [0, 0, 1, 1], [], []>} : vector<256x32xbf16>, vector<32x32xbf16>, vector<256x32xf32> -> vector<256x32xf32>
    %59 = arith.addf %52, %58 : vector<256x32xf32>
    %c2_54 = arith.constant 2 : index
    %c0_55 = arith.constant 0 : index
    %c0_56 = arith.constant 0 : index
    %60 = vector.load %arg15[%c2_54, %c0_55, %c0_56] : memref<18x18x32xf32, #tpu.memory_space<vmem>>, vector<16x16x32xf32>
    %61 = vector.shape_cast %60 : vector<16x16x32xf32> to vector<256x32xf32>
    %62 = arith.truncf %61 : vector<256x32xf32> to vector<256x32xbf16>
    %c6 = arith.constant 6 : index
    %c0_57 = arith.constant 0 : index
    %c0_58 = arith.constant 0 : index
    %63 = vector.load %arg5[%c6, %c0_57, %c0_58] : memref<9x32x32xbf16, #tpu.memory_space<vmem>>, vector<1x32x32xbf16>
    %64 = vector.shape_cast %63 : vector<1x32x32xbf16> to vector<32x32xbf16>
    %cst_59 = arith.constant dense<0.000000e+00> : vector<256x32xf32>
    %65 = tpu.matmul %62, %64, %cst_59 {dimension_numbers = #tpu.dot_dimension_numbers<[1], [0], [0], [1], [0, 0, 1, 1], [], []>} : vector<256x32xbf16>, vector<32x32xbf16>, vector<256x32xf32> -> vector<256x32xf32>
    %66 = arith.addf %59, %65 : vector<256x32xf32>
    %c2_60 = arith.constant 2 : index
    %c1_61 = arith.constant 1 : index
    %c0_62 = arith.constant 0 : index
    %67 = vector.load %arg15[%c2_60, %c1_61, %c0_62] : memref<18x18x32xf32, #tpu.memory_space<vmem>>, vector<16x16x32xf32>
    %68 = vector.shape_cast %67 : vector<16x16x32xf32> to vector<256x32xf32>
    %69 = arith.truncf %68 : vector<256x32xf32> to vector<256x32xbf16>
    %c7 = arith.constant 7 : index
    %c0_63 = arith.constant 0 : index
    %c0_64 = arith.constant 0 : index
    %70 = vector.load %arg5[%c7, %c0_63, %c0_64] : memref<9x32x32xbf16, #tpu.memory_space<vmem>>, vector<1x32x32xbf16>
    %71 = vector.shape_cast %70 : vector<1x32x32xbf16> to vector<32x32xbf16>
    %cst_65 = arith.constant dense<0.000000e+00> : vector<256x32xf32>
    %72 = tpu.matmul %69, %71, %cst_65 {dimension_numbers = #tpu.dot_dimension_numbers<[1], [0], [0], [1], [0, 0, 1, 1], [], []>} : vector<256x32xbf16>, vector<32x32xbf16>, vector<256x32xf32> -> vector<256x32xf32>
    %73 = arith.addf %66, %72 : vector<256x32xf32>
    %c2_66 = arith.constant 2 : index
    %c2_67 = arith.constant 2 : index
    %c0_68 = arith.constant 0 : index
    %74 = vector.load %arg15[%c2_66, %c2_67, %c0_68] : memref<18x18x32xf32, #tpu.memory_space<vmem>>, vector<16x16x32xf32>
    %75 = vector.shape_cast %74 : vector<16x16x32xf32> to vector<256x32xf32>
    %76 = arith.truncf %75 : vector<256x32xf32> to vector<256x32xbf16>
    %c8 = arith.constant 8 : index
    %c0_69 = arith.constant 0 : index
    %c0_70 = arith.constant 0 : index
    %77 = vector.load %arg5[%c8, %c0_69, %c0_70] : memref<9x32x32xbf16, #tpu.memory_space<vmem>>, vector<1x32x32xbf16>
    %78 = vector.shape_cast %77 : vector<1x32x32xbf16> to vector<32x32xbf16>
    %cst_71 = arith.constant dense<0.000000e+00> : vector<256x32xf32>
    %79 = tpu.matmul %76, %78, %cst_71 {dimension_numbers = #tpu.dot_dimension_numbers<[1], [0], [0], [1], [0, 0, 1, 1], [], []>} : vector<256x32xbf16>, vector<32x32xbf16>, vector<256x32xf32> -> vector<256x32xf32>
    %80 = arith.addf %73, %79 : vector<256x32xf32>
    %c0_72 = arith.constant 0 : index
    %c0_73 = arith.constant 0 : index
    %81 = vector.load %arg6[%c0_72, %c0_73] : memref<1x32xf32, #tpu.memory_space<vmem>>, vector<1x32xf32>
    %82 = vector.broadcast %81 : vector<1x32xf32> to vector<256x32xf32>
    %83 = arith.mulf %80, %82 : vector<256x32xf32>
    %c0_74 = arith.constant 0 : index
    %c0_75 = arith.constant 0 : index
    %84 = vector.load %arg7[%c0_74, %c0_75] : memref<1x32xf32, #tpu.memory_space<vmem>>, vector<1x32xf32>
    %85 = vector.broadcast %84 : vector<1x32xf32> to vector<256x32xf32>
    %86 = arith.addf %83, %85 : vector<256x32xf32>
    %cst_76 = arith.constant 0.000000e+00 : f32
    %87 = vector.broadcast %cst_76 : f32 to vector<256x32xf32>
    %88 = arith.maximumf %86, %87 : vector<256x32xf32>
    %89 = arith.truncf %88 : vector<256x32xf32> to vector<256x32xbf16>
    %c0_77 = arith.constant 0 : index
    %c0_78 = arith.constant 0 : index
    %90 = vector.load %arg8[%c0_77, %c0_78] : memref<32x128xbf16, #tpu.memory_space<vmem>>, vector<32x128xbf16>
    %cst_79 = arith.constant dense<0.000000e+00> : vector<256x128xf32>
    %91 = tpu.matmul %89, %90, %cst_79 {dimension_numbers = #tpu.dot_dimension_numbers<[1], [0], [0], [1], [0, 0, 1, 1], [], []>} : vector<256x32xbf16>, vector<32x128xbf16>, vector<256x128xf32> -> vector<256x128xf32>
    %c0_80 = arith.constant 0 : index
    %c0_81 = arith.constant 0 : index
    %92 = vector.load %arg9[%c0_80, %c0_81] : memref<1x128xf32, #tpu.memory_space<vmem>>, vector<1x128xf32>
    %93 = vector.broadcast %92 : vector<1x128xf32> to vector<256x128xf32>
    %94 = arith.mulf %91, %93 : vector<256x128xf32>
    %c0_82 = arith.constant 0 : index
    %c0_83 = arith.constant 0 : index
    %95 = vector.load %arg10[%c0_82, %c0_83] : memref<1x128xf32, #tpu.memory_space<vmem>>, vector<1x128xf32>
    %96 = vector.broadcast %95 : vector<1x128xf32> to vector<256x128xf32>
    %97 = arith.addf %94, %96 : vector<256x128xf32>
    %98 = arith.truncf %1 : vector<256x64xf32> to vector<256x64xbf16>
    %c0_84 = arith.constant 0 : index
    %c0_85 = arith.constant 0 : index
    %99 = vector.load %arg11[%c0_84, %c0_85] : memref<64x128xbf16, #tpu.memory_space<vmem>>, vector<64x128xbf16>
    %cst_86 = arith.constant dense<0.000000e+00> : vector<256x128xf32>
    %100 = tpu.matmul %98, %99, %cst_86 {dimension_numbers = #tpu.dot_dimension_numbers<[1], [0], [0], [1], [0, 0, 1, 1], [], []>} : vector<256x64xbf16>, vector<64x128xbf16>, vector<256x128xf32> -> vector<256x128xf32>
    %c0_87 = arith.constant 0 : index
    %c0_88 = arith.constant 0 : index
    %101 = vector.load %arg12[%c0_87, %c0_88] : memref<1x128xf32, #tpu.memory_space<vmem>>, vector<1x128xf32>
    %102 = vector.broadcast %101 : vector<1x128xf32> to vector<256x128xf32>
    %103 = arith.mulf %100, %102 : vector<256x128xf32>
    %c0_89 = arith.constant 0 : index
    %c0_90 = arith.constant 0 : index
    %104 = vector.load %arg13[%c0_89, %c0_90] : memref<1x128xf32, #tpu.memory_space<vmem>>, vector<1x128xf32>
    %105 = vector.broadcast %104 : vector<1x128xf32> to vector<256x128xf32>
    %106 = arith.addf %103, %105 : vector<256x128xf32>
    %107 = arith.addf %97, %106 : vector<256x128xf32>
    %cst_91 = arith.constant 0.000000e+00 : f32
    %108 = vector.broadcast %cst_91 : f32 to vector<256x128xf32>
    %109 = arith.maximumf %107, %108 : vector<256x128xf32>
    %c0_92 = arith.constant 0 : index
    %c0_93 = arith.constant 0 : index
    %c0_94 = arith.constant 0 : index
    %110 = vector.load %arg14[%c0_92, %c0_93, %c0_94] : memref<1x256x128xf32, #tpu.memory_space<vmem>>, vector<1x256x128xf32>
    %111 = vector.shape_cast %110 : vector<1x256x128xf32> to vector<256x128xf32>
    %112 = vector.shape_cast %109 : vector<256x128xf32> to vector<1x256x128xf32>
    tpu.vector_store %arg14[%c0_92, %c0_93, %c0_94], %112 {strides = array<i32>} : memref<1x256x128xf32, #tpu.memory_space<vmem>>, vector<1x256x128xf32>,
    return
  }
  func.func @transform_0(%arg0: i32) -> (i32, i32, i32) {
    %c0_i32 = arith.constant 0 : i32
    %c0_i32_0 = arith.constant 0 : i32
    %c0_i32_1 = arith.constant 0 : i32
    return %arg0, %c0_i32, %c0_i32_0 : i32, i32, i32
  }
  func.func @transform_1(%arg0: i32) -> (i32, i32) {
    %c0_i32 = arith.constant 0 : i32
    %c0_i32_0 = arith.constant 0 : i32
    %c0_i32_1 = arith.constant 0 : i32
    return %c0_i32, %c0_i32_0 : i32, i32
  }
  func.func @transform_2(%arg0: i32) -> (i32, i32) {
    %c0_i32 = arith.constant 0 : i32
    %c0_i32_0 = arith.constant 0 : i32
    %c0_i32_1 = arith.constant 0 : i32
    return %c0_i32, %c0_i32_0 : i32, i32
  }
  func.func @transform_3(%arg0: i32) -> (i32, i32) {
    %c0_i32 = arith.constant 0 : i32
    %c0_i32_0 = arith.constant 0 : i32
    %c0_i32_1 = arith.constant 0 : i32
    return %c0_i32, %c0_i32_0 : i32, i32
  }
  func.func @transform_4(%arg0: i32) -> (i32, i32, i32) {
    %c0_i32 = arith.constant 0 : i32
    %c0_i32_0 = arith.constant 0 : i32
    %c0_i32_1 = arith.constant 0 : i32
    %c0_i32_2 = arith.constant 0 : i32
    return %c0_i32, %c0_i32_0, %c0_i32_1 : i32, i32, i32
  }
  func.func @transform_5(%arg0: i32) -> (i32, i32) {
    %c0_i32 = arith.constant 0 : i32
    %c0_i32_0 = arith.constant 0 : i32
    %c0_i32_1 = arith.constant 0 : i32
    return %c0_i32, %c0_i32_0 : i32, i32
  }
  func.func @transform_6(%arg0: i32) -> (i32, i32) {
    %c0_i32 = arith.constant 0 : i32
    %c0_i32_0 = arith.constant 0 : i32
    %c0_i32_1 = arith.constant 0 : i32
    return %c0_i32, %c0_i32_0 : i32, i32
  }
  func.func @transform_7(%arg0: i32) -> (i32, i32) {
    %c0_i32 = arith.constant 0 : i32
    %c0_i32_0 = arith.constant 0 : i32
    %c0_i32_1 = arith.constant 0 : i32
    return %c0_i32, %c0_i32_0 : i32, i32
  }
  func.func @transform_8(%arg0: i32) -> (i32, i32) {
    %c0_i32 = arith.constant 0 : i32
    %c0_i32_0 = arith.constant 0 : i32
    %c0_i32_1 = arith.constant 0 : i32
    return %c0_i32, %c0_i32_0 : i32, i32
  }
  func.func @transform_9(%arg0: i32) -> (i32, i32) {
    %c0_i32 = arith.constant 0 : i32
    %c0_i32_0 = arith.constant 0 : i32
    %c0_i32_1 = arith.constant 0 : i32
    return %c0_i32, %c0_i32_0 : i32, i32
  }
  func.func @transform_10(%arg0: i32) -> (i32, i32) {
    %c0_i32 = arith.constant 0 : i32
    %c0_i32_0 = arith.constant 0 : i32
    %c0_i32_1 = arith.constant 0 : i32
    return %c0_i32, %c0_i32_0 : i32, i32
  }
  func.func @transform_11(%arg0: i32) -> (i32, i32) {
    %c0_i32 = arith.constant 0 : i32
    %c0_i32_0 = arith.constant 0 : i32
    %c0_i32_1 = arith.constant 0 : i32
    return %c0_i32, %c0_i32_0 : i32, i32
  }
  func.func @transform_12(%arg0: i32) -> (i32, i32) {
    %c0_i32 = arith.constant 0 : i32
    %c0_i32_0 = arith.constant 0 : i32
    %c0_i32_1 = arith.constant 0 : i32
    return %c0_i32, %c0_i32_0 : i32, i32
  }
  func.func @transform_13(%arg0: i32) -> (i32, i32, i32) {
    %c0_i32 = arith.constant 0 : i32
    %c0_i32_0 = arith.constant 0 : i32
    %c0_i32_1 = arith.constant 0 : i32
    return %arg0, %c0_i32, %c0_i32_0 : i32, i32, i32
  }
}

</mosaic_0001>

<bundles_post_ra>
// kernel: tpu_custom_call.1
= control target key start
LH: loop header
LB: loop body
LE: loop exit
PB: predicated region body
PF: predicated region fallthrough
CT: control target
= control target key end

     0   :  { %s5672_s0 = inlined_call_operand.vmem [shape: f32[2,256,64], index: 0, kind: input, shape index: {}]   ;;  %s5673_s1 = inlined_call_operand.vmem [shape: bf16[64,32], index: 1, kind: input, shape index: {}]   ;;  %s5674_s2 = inlined_call_operand.vmem [shape: f32[1,32], index: 2, kind: input, shape index: {}]   ;;  %s5675_s3 = inlined_call_operand.vmem [shape: f32[1,32], index: 3, kind: input, shape index: {}]   ;;  %s5676_s4 = inlined_call_operand.vmem [shape: bf16[9,32,32], index: 4, kind: input, shape index: {}]   ;;  %s5677_s5 = inlined_call_operand.vmem [shape: f32[1,32], index: 5, kind: input, shape index: {}]   ;;  %s5678_s6 = inlined_call_operand.vmem [shape: f32[1,32], index: 6, kind: input, shape index: {}]   ;;  %s5679_s7 = inlined_call_operand.vmem [shape: bf16[32,128], index: 7, kind: input, shape index: {}]   ;;  %s5680_s8 = inlined_call_operand.vmem [shape: f32[1,128], index: 8, kind: input, shape index: {}]   ;;  %s5681_s9 = inlined_call_operand.vmem [shape: f32[1,128], index: 9, kind: input, shape index: {}]   ;;  %s5682_s10 = inlined_call_operand.vmem [shape: bf16[64,128], index: 10, kind: input, shape index: {}]   ;;  %s5683_s11 = inlined_call_operand.vmem [shape: f32[1,128], index: 11, kind: input, shape index: {}]   ;;  %s5684_s12 = inlined_call_operand.vmem [shape: f32[1,128], index: 12, kind: input, shape index: {}]   ;;  %s5685_s13 = inlined_call_operand.hbm [shape: f32[2,256,128], index: 13, kind: output, shape index: {}]  }
   0x1   :  { %5709 = sst [smem:[#allocation48_spill]] %s5672_s0 }
   0x2   :  { %18 = vsyncpa [#allocation4], 0 }
   0x3   :  { %20 = vsyncpa [#allocation4 + $0x1], 0  ;;  %s4170_s25 = smov 0   ;;  %s4172_s26 = smov 0  }
   0x4   :  { %s4174_s27 = smov 0   ;;  %s4176_s28 = smov 0  }
   0x5 LB: > { %5710 = sst [smem:[#allocation6_spill]] %s4091_s27  ;;  %s4191_s29 = sadd.s32 4294967295, %s4095_s28   ;;  %s4095_s28 = sphi %s4176_s28, %s5831_s28   ;;  %s4091_s27 = sphi %s4174_s27, %s5828_s27   ;;  %s4087_s26 = sphi %s4172_s26, %s5830_s26   ;;  %s4083_s25 = sphi %s4170_s25, %s5829_s25  }
   0x6   : > { %s3605_s30 = sadd.s32 4294967294, %s4095_s28   ;;  %s4195_s14 = sadd.s32 1, %s4095_s28  }
   0x7   : > { %s311_s15 = sadd.s32 1, %s4091_s27  ;;  %s308_s16 = ssub.s32 %s4095_s28, %s4195_s14 }
   0x8   : > { %p321_p0 = scmp.ne.s32.totalorder %s4091_s27, %s4087_s26  ;;  %p309_p1 = scmp.eq.s32.totalorder %s308_s16, 0 }
   0x9   : > { %p322_p2 = scmp.eq.s32.totalorder %s4191_s29, 1  ;;  %p327_p3 = scmp.ne.s32.totalorder %s4087_s26, %s4083_s25 }
   0xa   : > { %p328_p4 = scmp.eq.s32.totalorder %s3605_s30, 1  ;;  %p3608_p7 = scmp.ge.s32.totalorder %s4095_s28, 1 }
   0xb   : > { %s4206_s17 = scalar_select %p309_p1, %s4091_s27, %s311_s15  }
   0xc   : > { %p4208_p5 = por %p322_p2, %p321_p0  ;;  %p4212_p6 = por %p328_p4, %p327_p3 }
   0xd   : > { %5711 = sst [smem:[#allocation7_spill]] %s4206_s17  ;;  %p390_p8 = scmp.lt.s32.totalorder %s4095_s28, 3 }
   0xf   : > { %p391_p9 = pnand %p3608_p7, %p390_p8 }
  0x11   : > { %394 = sbr.rel (%p391_p9) target bundleno = 1227 (0x4cb), region = 72 }
  0x16   : > { %v3957_v0 = vld [vmem:[%s5673_s1 + $0x18] sm:$0xff]  ;;  %p434_p10 = scmp.lt.s32.totalorder %s4191_s29, 1  ;;  %v3956_v1 = vld [vmem:[%s5673_s1 + $0x10] sm:$0xff]  ;;  %v3955_v2 = vld [vmem:[%s5673_s1 + $0x8] sm:$0xff]  ;;  %s5714_s0 = sld [smem:[#allocation48_spill]]  ;;  %vm520_vm0 = vcmask 523264  }
  0x17   : > { %573 = vmatpush.bf16.msra.mxu0 %v3957_v0  ;;  %v3954_v3 = vld [vmem:[%s5673_s1] sm:$0xff]  ;;  %v3959_v22 = vld [vmem:[%s5676_s4 + $0x8] sm:$0xff]  ;;  %vm762_vm1 = vcmask 261120   ;;  %v3961_v24 = vld [vmem:[%s5676_s4 + $0x18] sm:$0xff]  ;;  %v4097_v25 = vmov 0.0   ;;  %vm765_vm2 = vcmask 254976  }
  0x18   : > { %s435_s24 = scalar_select %p434_p10, %s4191_s29, 1  ;;  %v3963_v23 = vld [vmem:[%s5676_s4 + $0x28] sm:$0xff]  ;;  %763 = vst.msk [vmem:[#allocation2] sm:$0xff] %vm762_vm1, %v4097_v25  ;;  %1171 = vmatpush.bf16.msra.mxu2 %v3959_v22  ;;  %v3958_v26 = vld [vmem:[%s5676_s4] sm:$0xff]  ;;  %1022 = vmatpush.bf16.msra.mxu1 %v3961_v24  ;;  %v3960_v34 = vld [vmem:[%s5676_s4 + $0x10] sm:$0xff] }
  0x19   : > { %1373 = vmatpush.bf16.msra.mxu3 %v3963_v23  ;;  %v3962_v27 = vld [vmem:[%s5676_s4 + $0x20] sm:$0xff]  ;;  %764 = vst.msk [vmem:[#allocation2 + $0x8] sm:$0xff] %vm762_vm1, %v4097_v25  ;;  %v3967_v38 = vld [vmem:[%s5676_s4 + $0x48] sm:$0xff]  ;;  %v3965_v39 = vld [vmem:[%s5676_s4 + $0x38] sm:$0xff]  ;;  %s431_s16 = sand.u32 1, %s4087_s26   ;;  %s3982_s27 = sshll.u32 %s4191_s29, 8 }
  0x1a   : > { %s3953_s30 = sshll.u32 %s435_s24, 8  ;;  %767 = vst.msk [vmem:[#allocation2 + $0x18] sm:$0xff] %vm762_vm1, %v4097_v25  ;;  %v4397_v42 = vld [vmem:[%s5674_s2] ss:$0 sm:$0xff]  ;;  %s3609_s21 = sshll.u32 %s431_s16, 8 }
  0x1b   : > { %574 = vmatpush.bf16.msra.mxu0 %v3956_v1  ;;  %768 = vst.msk [vmem:[#allocation2 + $0x20] sm:$0xff] %vm762_vm1, %v4097_v25  ;;  %v4406_v45 = vld [vmem:[%s5675_s3] ss:$0 sm:$0xff]  ;;  %s5387_s22 = scalar_lea.vmem [#allocation3], %s3609_s21  ;;  %s3539_s23 = scalar_lea.hbm %s5685_s13, %s3982_s27 }
  0x1c   : > { %s4232_s20 = scalar_lea.vmem %s5714_s0, %s3953_s30  ;;  %770 = vst.msk [vmem:[#allocation2 + $0x30] sm:$0xff] %vm762_vm1, %v4097_v25  ;;  %1172 = vmatpush.bf16.msra.mxu2 %v3958_v26  ;;  %1023 = vmatpush.bf16.msra.mxu1 %v3960_v34  ;;  %s3540_s24 = sshll.u32 %s5387_s22, 4  ;;  %s3541_s24 = int_to_ptr.vmem [resolvable:$true] %s3540_s24 }
  0x1d   : > { %v440_v4 = vld [vmem:[%s4232_s20] sm:$0xff]  ;;  %v441_v5 = vld [vmem:[%s4232_s20 + $0x8] sm:$0xff]  ;;  %v442_v7 = vld [vmem:[%s4232_s20 + $0x10] sm:$0xff]  ;;  %1374 = vmatpush.bf16.msra.mxu3 %v3962_v27  ;;  %771 = vst.msk [vmem:[#allocation2 + $0x38] sm:$0xff] %vm762_vm1, %v4097_v25  ;;  %s3542_s30 = sshll.u32 %s3539_s23, 4  ;;  %s3528_s29 = scalar_lea.sflag [#allocation4], %s431_s16  ;;  %s3543_s30 = int_to_ptr.hbm [resolvable:$true] %s3542_s30 }
  0x1e   : > { %v4239_v6 = vpack.c.bf16 %v441_v5, %v440_v4  ;;  %v443_v8 = vld [vmem:[%s4232_s20 + $0x18] sm:$0xff]  ;;  %v444_v10 = vld [vmem:[%s4232_s20 + $0x20] sm:$0xff]  ;;  %v445_v11 = vld [vmem:[%s4232_s20 + $0x28] sm:$0xff]  ;;  %773 = vst.msk [vmem:[#allocation2 + $0x48] sm:$0xff] %vm762_vm1, %v4097_v25  ;;  %s4047_s15 = sshra.s32 %s3543_s30, 4  ;;  %s4053_s17 = scalar_lea.hbm %s5685_s13, 512  ;;  %s4048_s15 = int_to_ptr.hbm [resolvable:$true] %s4047_s15 }
  0x1f   : > { %575 = vmatpush.bf16.msra.mxu0 %v3955_v2  ;;  %v4245_v9 = vpack.c.bf16 %v443_v8, %v442_v7  ;;  %v4251_v12 = vpack.c.bf16 %v445_v11, %v444_v10  ;;  %v446_v13 = vld [vmem:[%s4232_s20 + $0x30] sm:$0xff]  ;;  %v447_v14 = vld [vmem:[%s4232_s20 + $0x38] sm:$0xff]  ;;  %v448_v16 = vld [vmem:[%s4232_s20 + $0x40] sm:$0xff]  ;;  %774 = vst.msk [vmem:[#allocation2 + $0x50] sm:$0xff] %vm762_vm1, %v4097_v25  ;;  %s4049_s21 = scalar_lea.hbm %s4048_s15, 256  ;;  %p4054_p0 = scmp.lt.s32.totalorder %s4048_s15, %s5685_s13 }
  0x20   : > { %5715 = vst [vmem:[#allocation8_spill] sm:$0xff] %v4239_v6  ;;  %v4257_v15 = vpack.c.bf16 %v447_v14, %v446_v13  ;;  %v449_v17 = vld [vmem:[%s4232_s20 + $0x48] sm:$0xff]  ;;  %v450_v19 = vld [vmem:[%s4232_s20 + $0x50] sm:$0xff]  ;;  %v451_v20 = vld [vmem:[%s4232_s20 + $0x58] sm:$0xff]  ;;  %1841 = vmatpush.bf16.msrb.mxu2 %v3967_v38  ;;  %1607 = vmatpush.bf16.msrb.mxu1 %v3965_v39  ;;  %p4050_p11 = scmp.ne.s32.totalorder %s4048_s15, %s4049_s21  ;;  %p4055_p1 = scmp.lt.s32.totalorder %s4053_s17, %s4049_s21 }
  0x21   : > { %5716 = vst [vmem:[#allocation9_spill] sm:$0xff] %v4245_v9  ;;  %v4263_v18 = vpack.c.bf16 %v449_v17, %v448_v16  ;;  %v4269_v21 = vpack.c.bf16 %v451_v20, %v450_v19  ;;  %v851_v28 = vld [vmem:[#allocation2] sm:$0xff]  ;;  %v453_v30 = vld [vmem:[%s4232_s20 + $0x68] sm:$0xff]  ;;  %v454_v35 = vld [vmem:[%s4232_s20 + $0x70] sm:$0xff] }
  0x22   : > { %5717 = vst [vmem:[#allocation10_spill] sm:$0xff] %v4251_v12  ;;  %v452_v29 = vld [vmem:[%s4232_s20 + $0x60] sm:$0xff]  ;;  %v852_v31 = vld [vmem:[#allocation2 + $0x8] sm:$0xff]  ;;  %v455_v36 = vld [vmem:[%s4232_s20 + $0x78] sm:$0xff]  ;;  %p4051_p12 = pnand %p4050_p11, %p4208_p5  ;;  %p4056_p2 = por %p4055_p1, %p4054_p0 }
  0x23   : > { %576 = vmatpush.bf16.msra.mxu0 %v3954_v3  ;;  %5718 = vst [vmem:[#allocation11_spill] sm:$0xff] %v4257_v15  ;;  %v883_v32 = vpack.c.bf16 %v852_v31, %v851_v28  ;;  %v4312_v33 = vpack.c.bf16 %v453_v30, %v452_v29  ;;  %v4354_v37 = vpack.c.bf16 %v455_v36, %v454_v35  ;;  %v456_v40 = vld [vmem:[%s4232_s20 + $0x80] sm:$0xff]  ;;  %v457_v41 = vld [vmem:[%s4232_s20 + $0x88] sm:$0xff]  ;;  %v458_v58 = vld [vmem:[%s4232_s20 + $0x90] sm:$0xff] }
  0x24   : > { %5719 = vst [vmem:[#allocation12_spill] sm:$0xff] %v4263_v18  ;;  %v1254_v43 = vld [vmem:[#allocation2 + $0x2] sm:$0xff]  ;;  %v4410_v47 = vpack.c.bf16 %v457_v41, %v456_v40  ;;  %v459_v59 = vld [vmem:[%s4232_s20 + $0x98] sm:$0xff]  ;;  %p4052_p13 = pneg %p4051_p12 }
  0x25   : > { %5720 = vst [vmem:[#allocation13_spill] sm:$0xff] %v4269_v21  ;;  %3680 = vmatmul.msk.bf16.vlgmr.msra.gmra.mxu2 %vm762_vm1, %v883_v32  ;;  %v903_v44 = vld [vmem:[#allocation2 + $0x1] sm:$0xff]  ;;  %v4444_v61 = vpack.c.bf16 %v459_v59, %v458_v58 }
  0x26   : > { %3628 = vmatmul.msk.bf16.vlgmr.msra.gmra.mxu0 %vm520_vm0, %v4239_v6  ;;  %776 = vst.msk [vmem:[#allocation2 + $0x60] sm:$0xff] %vm762_vm1, %v4097_v25  ;;  %v460_v19 = vld [vmem:[%s4232_s20 + $0xa0] sm:$0xff]  ;;  %v461_v20 = vld [vmem:[%s4232_s20 + $0xa8] sm:$0xff]  ;;  %p4057_p3 = pnand %p4056_p2, %p4052_p13 }
  0x27   : > { %777 = vst.msk [vmem:[#allocation2 + $0x68] sm:$0xff] %vm762_vm1, %v4097_v25  ;;  %v4468_v23 = vpack.c.bf16 %v461_v20, %v460_v19 }
  0x28   : > { %779 = vst.msk [vmem:[#allocation2 + $0x78] sm:$0xff] %vm762_vm1, %v4097_v25 }
  0x29   : > { %5721 = vst [vmem:[#allocation14_spill] sm:$0xff] %v4312_v33 }
  0x2a   : > { %780 = vst.msk [vmem:[#allocation2 + $0x80] sm:$0xff] %vm762_vm1, %v4097_v25 }
  0x2b   : > { %782 = vst.msk [vmem:[#allocation2 + $0x90] sm:$0xff] %vm762_vm1, %v4097_v25 }
  0x2c   : > { %783 = vst.msk [vmem:[#allocation2 + $0x98] sm:$0xff] %vm762_vm1, %v4097_v25 }
  0x2d   : > { %785 = vst.msk [vmem:[#allocation2 + $0xa8] sm:$0xff] %vm762_vm1, %v4097_v25 }
  0x2e   : > { %786 = vst.msk [vmem:[#allocation2 + $0xb0] sm:$0xff] %vm762_vm1, %v4097_v25 }
  0x2f   : > { %788 = vst.msk [vmem:[#allocation2 + $0xc0] sm:$0xff] %vm762_vm1, %v4097_v25 }
  0x30   : > { %789 = vst.msk [vmem:[#allocation2 + $0xc8] sm:$0xff] %vm762_vm1, %v4097_v25 }
  0x31   : > { %791 = vst.msk [vmem:[#allocation2 + $0xd8] sm:$0xff] %vm762_vm1, %v4097_v25 }
  0x32   : > { %792 = vst.msk [vmem:[#allocation2 + $0xe0] sm:$0xff] %vm762_vm1, %v4097_v25 }
  0x33   : > { %794 = vst.msk [vmem:[#allocation2 + $0xf0] sm:$0xff] %vm762_vm1, %v4097_v25 }
  0x34   : > { %795 = vst.msk [vmem:[#allocation2 + $0xf8] sm:$0xff] %vm762_vm1, %v4097_v25 }
  0x35   : > { %797 = vst.msk [vmem:[#allocation2 + $0x108] sm:$0xff] %vm762_vm1, %v4097_v25 }
  0x36   : > { %3629 = vmatmul.msk.bf16.gmra.mxu0 %vm520_vm0, %v4245_v9  ;;  %798 = vst.msk [vmem:[#allocation2 + $0x110] sm:$0xff] %vm762_vm1, %v4097_v25 }
  0x37   : > { %800 = vst.msk [vmem:[#allocation2 + $0x120] sm:$0xff] %vm762_vm1, %v4097_v25 }
  0x38   : > { %801 = vst.msk [vmem:[#allocation2 + $0x128] sm:$0xff] %vm762_vm1, %v4097_v25 }
  0x39   : > { %803 = vst.msk [vmem:[#allocation2 + $0x138] sm:$0xff] %vm762_vm1, %v4097_v25 }
  0x3a   : > { %5722 = vst [vmem:[#allocation15_spill] sm:$0xff] %v4354_v37 }
  0x3b   : > { %804 = vst.msk [vmem:[#allocation2 + $0x140] sm:$0xff] %vm762_vm1, %v4097_v25 }
  0x3c   : > { %806 = vst.msk [vmem:[#allocation2 + $0x150] sm:$0xff] %vm762_vm1, %v4097_v25 }
  0x3d   : > { %807 = vst.msk [vmem:[#allocation2 + $0x158] sm:$0xff] %vm762_vm1, %v4097_v25 }
  0x3e   : > { %809 = vst.msk [vmem:[#allocation2 + $0x168] sm:$0xff] %vm762_vm1, %v4097_v25 }
  0x3f   : > { %810 = vst.msk [vmem:[#allocation2 + $0x170] sm:$0xff] %vm762_vm1, %v4097_v25 }
  0x40   : > { %812 = vst.msk [vmem:[#allocation2 + $0x180] sm:$0xff] %vm762_vm1, %v4097_v25 }
  0x41   : > { %813 = vst.msk [vmem:[#allocation2 + $0x188] sm:$0xff] %vm762_vm1, %v4097_v25 }
  0x42   : > { %815 = vst.msk [vmem:[#allocation2 + $0x198] sm:$0xff] %vm762_vm1, %v4097_v25 }
  0x43   : > { %816 = vst.msk [vmem:[#allocation2 + $0x1a0] sm:$0xff] %vm762_vm1, %v4097_v25 }
  0x44   : > { %766 = vst.msk [vmem:[#allocation2 + $0x10] sm:$0x3] %vm765_vm2, %v4097_v25 }
  0x45   : > { %769 = vst.msk [vmem:[#allocation2 + $0x28] sm:$0x3] %vm765_vm2, %v4097_v25 }
  0x46   : > { %3630 = vmatmul.msk.bf16.gmra.mxu0 %vm520_vm0, %v4251_v12  ;;  %772 = vst.msk [vmem:[#allocation2 + $0x40] sm:$0x3] %vm765_vm2, %v4097_v25 }
  0x47   : > { %775 = vst.msk [vmem:[#allocation2 + $0x58] sm:$0x3] %vm765_vm2, %v4097_v25 }
  0x48   : > { %778 = vst.msk [vmem:[#allocation2 + $0x70] sm:$0x3] %vm765_vm2, %v4097_v25 }
  0x49   : > { %781 = vst.msk [vmem:[#allocation2 + $0x88] sm:$0x3] %vm765_vm2, %v4097_v25 }
  0x4a   : > { %784 = vst.msk [vmem:[#allocation2 + $0xa0] sm:$0x3] %vm765_vm2, %v4097_v25 }
  0x4b   : > { %v1255_v46 = vld [vmem:[#allocation2 + $0xa] sm:$0xff]  ;;  %787 = vst.msk [vmem:[#allocation2 + $0xb8] sm:$0x3] %vm765_vm2, %v4097_v25 }
  0x4c   : > { %5723 = vst [vmem:[#allocation16_spill] sm:$0xff] %v4410_v47  ;;  %v904_v48 = vld [vmem:[#allocation2 + $0x9] sm:$0xff]  ;;  %v1286_v50 = vpack.c.bf16 %v1255_v46, %v1254_v43 }
  0x4d   : > { %790 = vst.msk [vmem:[#allocation2 + $0xd0] sm:$0x3] %vm765_vm2, %v4097_v25  ;;  %v935_v51 = vpack.c.bf16 %v904_v48, %v903_v44  ;;  %v462_v43 = vld [vmem:[%s4232_s20 + $0xb0] sm:$0xff]  ;;  %v463_v44 = vld [vmem:[%s4232_s20 + $0xb8] sm:$0xff] }
  0x4e   : > { %793 = vst.msk [vmem:[#allocation2 + $0xe8] sm:$0x3] %vm765_vm2, %v4097_v25  ;;  %3708 = vmatmul.msk.bf16.vlgmr.msra.gmra.mxu3 %vm762_vm1, %v1286_v50  ;;  %v4492_v48 = vpack.c.bf16 %v463_v44, %v462_v43 }
  0x4f   : > { %796 = vst.msk [vmem:[#allocation2 + $0x100] sm:$0x3] %vm765_vm2, %v4097_v25  ;;  %3656 = vmatmul.msk.bf16.vlgmr.msra.gmra.mxu1 %vm762_vm1, %v935_v51 }
  0x50   : > { %799 = vst.msk [vmem:[#allocation2 + $0x118] sm:$0x3] %vm765_vm2, %v4097_v25 }
  0x51   : > { %802 = vst.msk [vmem:[#allocation2 + $0x130] sm:$0x3] %vm765_vm2, %v4097_v25 }
  0x52   : > { %805 = vst.msk [vmem:[#allocation2 + $0x148] sm:$0x3] %vm765_vm2, %v4097_v25 }
  0x53   : > { %808 = vst.msk [vmem:[#allocation2 + $0x160] sm:$0x3] %vm765_vm2, %v4097_v25 }
  0x54   : > { %811 = vst.msk [vmem:[#allocation2 + $0x178] sm:$0x3] %vm765_vm2, %v4097_v25 }
  0x55   : > { %814 = vst.msk [vmem:[#allocation2 + $0x190] sm:$0x3] %vm765_vm2, %v4097_v25 }
  0x56   : > { %3631 = vmatmul.msk.bf16.gmra.mxu0 %vm520_vm0, %v4257_v15  ;;  %817 = vst.msk [vmem:[#allocation2 + $0x1a8] sm:$0x3] %vm765_vm2, %v4097_v25 }
  0x57   : > { %5724 = vst [vmem:[#allocation17_spill] sm:$0xff] %v4444_v61 }
  0x58   : > { %5725 = vst [vmem:[#allocation18_spill] sm:$0xff] %v4468_v23 }
  0x59   : > { %5726 = vst [vmem:[#allocation19_spill] sm:$0xff] %v4492_v48 }
  0x66   : > { %3632 = vmatmul.msk.bf16.gmra.mxu0 %vm520_vm0, %v4263_v18 }
  0x76   : > { %3633 = vmatmul.msk.bf16.gmra.mxu0 %vm520_vm0, %v4269_v21 }
  0x86   : > { %3634 = vmatmul.msk.bf16.gmra.mxu0 %vm520_vm0, %v4312_v33 }
  0x96   : > { %3635 = vmatmul.msk.bf16.gmra.mxu0 %vm520_vm0, %v4354_v37 }
  0xa3   : > { %v578_v49 = vpop.f32.mrf.mxu0 }
  0xa4   : > { %v662_v52 = vmul.f32 %v4397_v42, %v578_v49 }
  0xa6   : > { %v698_v53 = vadd.f32 %v4406_v45, %v662_v52  ;;  %3636 = vmatmul.msk.bf16.gmra.mxu0 %vm520_vm0, %v4410_v47 }
  0xa8   : > { %v730_v54 = vmax.f32 %v698_v53, 0.0 }
  0xaa   : > { %819 = vst.msk [vmem:[#allocation2 + $0x19] sm:$0xff] %vm762_vm1, %v730_v54 }
  0xab   : > { %v580_v55 = vpop.f32.mrf.mxu0 }
  0xac   : > { %v663_v56 = vmul.f32 %v4397_v42, %v580_v55 }
  0xae   : > { %v699_v57 = vadd.f32 %v4406_v45, %v663_v56 }
  0xb0   : > { %v731_v60 = vmax.f32 %v699_v57, 0.0 }
  0xb1   : > { %v905_v2 = vld [vmem:[#allocation2 + $0x19] sm:$0xff] }
  0xb2   : > { %820 = vst.msk [vmem:[#allocation2 + $0x21] sm:$0xff] %vm762_vm1, %v731_v60  ;;  %v853_v3 = vld [vmem:[#allocation2 + $0x18] sm:$0xff] }
  0xb3   : > { %v583_v62 = vpop.f32.mrf.mxu0 }
  0xb4   : > { %v664_v63 = vmul.f32 %v4397_v42, %v583_v62 }
  0xb6   : > { %v700_v0 = vadd.f32 %v4406_v45, %v664_v63  ;;  %3637 = vmatmul.msk.bf16.gmra.mxu0 %vm520_vm0, %v4444_v61 }
  0xb8   : > { %v732_v1 = vmax.f32 %v700_v0, 0.0 }
  0xb9   : > { %v906_v4 = vld [vmem:[#allocation2 + $0x21] sm:$0xff] }
  0xba   : > { %v854_v5 = vld [vmem:[#allocation2 + $0x20] sm:$0xff]  ;;  %821 = vst.msk [vmem:[#allocation2 + $0x31] sm:$0xff] %vm762_vm1, %v732_v1  ;;  %v4451_v8 = vpack.c.bf16 %v906_v4, %v905_v2 }
  0xbb   : > { %v1256_v7 = vld [vmem:[#allocation2 + $0x1a] sm:$0xff]  ;;  %v4453_v10 = vpack.c.bf16 %v854_v5, %v853_v3  ;;  %v1257_v11 = vld [vmem:[#allocation2 + $0x22] sm:$0xff]  ;;  %v585_v13 = vpop.f32.mrf.mxu0 }
  0xbc   : > { %v4455_v14 = vpack.c.bf16 %v1257_v11, %v1256_v7  ;;  %v665_v16 = vmul.f32 %v4397_v42, %v585_v13  ;;  %3657 = vmatmul.msk.bf16.gmra.mxu1 %vm762_vm1, %v4451_v8  ;;  %v464_v2 = vld [vmem:[%s4232_s20 + $0xc0] sm:$0xff]  ;;  %v465_v3 = vld [vmem:[%s4232_s20 + $0xc8] sm:$0xff] }
  0xbd   : > { %3681 = vmatmul.msk.bf16.gmra.mxu2 %vm762_vm1, %v4453_v10  ;;  %v4516_v5 = vpack.c.bf16 %v465_v3, %v464_v2  ;;  %v468_v2 = vld [vmem:[%s4232_s20 + $0xe0] sm:$0xff]  ;;  %v469_v3 = vld [vmem:[%s4232_s20 + $0xe8] sm:$0xff] }
  0xbe   : > { %3709 = vmatmul.msk.bf16.gmra.mxu3 %vm762_vm1, %v4455_v14  ;;  %v701_v17 = vadd.f32 %v4406_v45, %v665_v16 }
  0xbf   : > { %5727 = vst [vmem:[#allocation20_spill] sm:$0xff] %v4516_v5 }
  0xc0   : > { %v733_v22 = vmax.f32 %v701_v17, 0.0 }
  0xc1   : > { %v907_v28 = vld [vmem:[#allocation2 + $0x31] sm:$0xff] }
  0xc2   : > { %822 = vst.msk [vmem:[#allocation2 + $0x39] sm:$0xff] %vm762_vm1, %v733_v22  ;;  %v855_v29 = vld [vmem:[#allocation2 + $0x30] sm:$0xff] }
  0xc3   : > { %v588_v24 = vpop.f32.mrf.mxu0 }
  0xc4   : > { %v666_v25 = vmul.f32 %v4397_v42, %v588_v24 }
  0xc6   : > { %v702_v26 = vadd.f32 %v4406_v45, %v666_v25  ;;  %3638 = vmatmul.msk.bf16.gmra.mxu0 %vm520_vm0, %v4468_v23 }
  0xc8   : > { %v734_v27 = vmax.f32 %v702_v26, 0.0 }
  0xc9   : > { %v908_v30 = vld [vmem:[#allocation2 + $0x39] sm:$0xff] }
  0xca   : > { %v856_v31 = vld [vmem:[#allocation2 + $0x38] sm:$0xff]  ;;  %823 = vst.msk [vmem:[#allocation2 + $0x49] sm:$0xff] %vm762_vm1, %v734_v27  ;;  %v4475_v34 = vpack.c.bf16 %v908_v30, %v907_v28 }
  0xcb   : > { %v1258_v32 = vld [vmem:[#allocation2 + $0x32] sm:$0xff]  ;;  %v4477_v35 = vpack.c.bf16 %v856_v31, %v855_v29  ;;  %v1259_v36 = vld [vmem:[#allocation2 + $0x3a] sm:$0xff]  ;;  %v590_v38 = vpop.f32.mrf.mxu0 }
  0xcc   : > { %v4479_v39 = vpack.c.bf16 %v1259_v36, %v1258_v32  ;;  %v667_v40 = vmul.f32 %v4397_v42, %v590_v38  ;;  %3658 = vmatmul.msk.bf16.gmra.mxu1 %vm762_vm1, %v4475_v34  ;;  %v466_v32 = vld [vmem:[%s4232_s20 + $0xd0] sm:$0xff]  ;;  %v467_v36 = vld [vmem:[%s4232_s20 + $0xd8] sm:$0xff] }
  0xcd   : > { %3682 = vmatmul.msk.bf16.gmra.mxu2 %vm762_vm1, %v4477_v35 }
  0xce   : > { %3710 = vmatmul.msk.bf16.gmra.mxu3 %vm762_vm1, %v4479_v39  ;;  %v703_v41 = vadd.f32 %v4406_v45, %v667_v40  ;;  %v4540_v40 = vpack.c.bf16 %v467_v36, %v466_v32 }
  0xd0   : > { %v735_v46 = vmax.f32 %v703_v41, 0.0  ;;  %5728 = vst [vmem:[#allocation21_spill] sm:$0xff] %v4540_v40 }
  0xd1   : > { %v909_v53 = vld [vmem:[#allocation2 + $0x49] sm:$0xff] }
  0xd2   : > { %824 = vst.msk [vmem:[#allocation2 + $0x51] sm:$0xff] %vm762_vm1, %v735_v46  ;;  %v857_v54 = vld [vmem:[#allocation2 + $0x48] sm:$0xff] }
  0xd3   : > { %v593_v49 = vpop.f32.mrf.mxu0 }
  0xd4   : > { %v668_v50 = vmul.f32 %v4397_v42, %v593_v49 }
  0xd6   : > { %v704_v51 = vadd.f32 %v4406_v45, %v668_v50  ;;  %3639 = vmatmul.msk.bf16.gmra.mxu0 %vm520_vm0, %v4492_v48 }
  0xd8   : > { %v736_v52 = vmax.f32 %v704_v51, 0.0 }
  0xd9   : > { %v910_v55 = vld [vmem:[#allocation2 + $0x51] sm:$0xff] }
  0xda   : > { %v858_v56 = vld [vmem:[#allocation2 + $0x50] sm:$0xff]  ;;  %825 = vst.msk [vmem:[#allocation2 + $0x61] sm:$0xff] %vm762_vm1, %v736_v52  ;;  %v4499_v58 = vpack.c.bf16 %v910_v55, %v909_v53 }
  0xdb   : > { %v1260_v57 = vld [vmem:[#allocation2 + $0x4a] sm:$0xff]  ;;  %v4501_v59 = vpack.c.bf16 %v858_v56, %v857_v54  ;;  %v1261_v60 = vld [vmem:[#allocation2 + $0x52] sm:$0xff]  ;;  %v595_v62 = vpop.f32.mrf.mxu0 }
  0xdc   : > { %v4503_v63 = vpack.c.bf16 %v1261_v60, %v1260_v57  ;;  %v669_v0 = vmul.f32 %v4397_v42, %v595_v62  ;;  %3659 = vmatmul.msk.bf16.gmra.mxu1 %vm762_vm1, %v4499_v58 }
  0xdd   : > { %3683 = vmatmul.msk.bf16.gmra.mxu2 %vm762_vm1, %v4501_v59 }
  0xde   : > { %3711 = vmatmul.msk.bf16.gmra.mxu3 %vm762_vm1, %v4503_v63  ;;  %v705_v1 = vadd.f32 %v4406_v45, %v669_v0 }
  0xe0   : > { %v737_v4 = vmax.f32 %v705_v1, 0.0  ;;  %v3971_v1 = vld [vmem:[%s5676_s4 + $0x68] sm:$0xff] }
  0xe1   : > { %v911_v17 = vld [vmem:[#allocation2 + $0x61] sm:$0xff]  ;;  %2310 = vmatpush.bf16.msrb.mxu0 %v3971_v1 }
  0xe2   : > { %826 = vst.msk [vmem:[#allocation2 + $0x69] sm:$0xff] %vm762_vm1, %v737_v4  ;;  %v859_v19 = vld [vmem:[#allocation2 + $0x60] sm:$0xff] }
  0xe3   : > { %v598_v7 = vpop.f32.mrf.mxu0 }
  0xe4   : > { %v670_v11 = vmul.f32 %v4397_v42, %v598_v7  ;;  %v4567_v7 = vpack.c.bf16 %v469_v3, %v468_v2 }
  0xe6   : > { %v706_v13 = vadd.f32 %v4406_v45, %v670_v11  ;;  %3640 = vmatmul.msk.bf16.gmra.mxu0 %vm520_vm0, %v4516_v5  ;;  %5729 = vst [vmem:[#allocation22_spill] sm:$0xff] %v4567_v7  ;;  %v3970_v11 = vld [vmem:[%s5676_s4 + $0x60] sm:$0xff] }
  0xe7   : > { %2311 = vmatpush.bf16.msrb.mxu0 %v3970_v11 }
  0xe8   : > { %v738_v16 = vmax.f32 %v706_v13, 0.0 }
  0xe9   : > { %v912_v20 = vld [vmem:[#allocation2 + $0x69] sm:$0xff] }
  0xea   : > { %v860_v22 = vld [vmem:[#allocation2 + $0x68] sm:$0xff]  ;;  %827 = vst.msk [vmem:[#allocation2 + $0x79] sm:$0xff] %vm762_vm1, %v738_v16  ;;  %v4523_v25 = vpack.c.bf16 %v912_v20, %v911_v17 }
  0xeb   : > { %v1262_v24 = vld [vmem:[#allocation2 + $0x62] sm:$0xff]  ;;  %v4525_v26 = vpack.c.bf16 %v860_v22, %v859_v19  ;;  %v1263_v27 = vld [vmem:[#allocation2 + $0x6a] sm:$0xff]  ;;  %v600_v28 = vpop.f32.mrf.mxu0 }
  0xec   : > { %v4527_v29 = vpack.c.bf16 %v1263_v27, %v1262_v24  ;;  %v671_v30 = vmul.f32 %v4397_v42, %v600_v28  ;;  %3660 = vmatmul.msk.bf16.gmra.mxu1 %vm762_vm1, %v4523_v25 }
  0xed   : > { %3684 = vmatmul.msk.bf16.gmra.mxu2 %vm762_vm1, %v4525_v26 }
  0xee   : > { %3712 = vmatmul.msk.bf16.gmra.mxu3 %vm762_vm1, %v4527_v29  ;;  %v707_v31 = vadd.f32 %v4406_v45, %v671_v30 }
  0xf0   : > { %v739_v38 = vmax.f32 %v707_v31, 0.0 }
  0xf1   : > { %v913_v49 = vld [vmem:[#allocation2 + $0x79] sm:$0xff] }
  0xf2   : > { %828 = vst.msk [vmem:[#allocation2 + $0x81] sm:$0xff] %vm762_vm1, %v739_v38  ;;  %v861_v50 = vld [vmem:[#allocation2 + $0x78] sm:$0xff] }
  0xf3   : > { %v603_v41 = vpop.f32.mrf.mxu0 }
  0xf4   : > { %v672_v43 = vmul.f32 %v4397_v42, %v603_v41 }
  0xf6   : > { %v708_v44 = vadd.f32 %v4406_v45, %v672_v43  ;;  %3641 = vmatmul.msk.bf16.gmra.mxu0 %vm520_vm0, %v4540_v40 }
  0xf8   : > { %v740_v46 = vmax.f32 %v708_v44, 0.0  ;;  %v470_v44 = vld [vmem:[%s4232_s20 + $0xf0] sm:$0xff] }
  0xf9   : > { %v914_v51 = vld [vmem:[#allocation2 + $0x81] sm:$0xff] }
  0xfa   : > { %v862_v52 = vld [vmem:[#allocation2 + $0x80] sm:$0xff]  ;;  %829 = vst.msk [vmem:[#allocation2 + $0x91] sm:$0xff] %vm762_vm1, %v740_v46  ;;  %v4547_v54 = vpack.c.bf16 %v914_v51, %v913_v49  ;;  %v471_v46 = vld [vmem:[%s4232_s20 + $0xf8] sm:$0xff] }
  0xfb   : > { %v1264_v53 = vld [vmem:[#allocation2 + $0x7a] sm:$0xff]  ;;  %v4549_v55 = vpack.c.bf16 %v862_v52, %v861_v50  ;;  %v1265_v56 = vld [vmem:[#allocation2 + $0x82] sm:$0xff]  ;;  %v605_v57 = vpop.f32.mrf.mxu0  ;;  %v4594_v50 = vpack.c.bf16 %v471_v46, %v470_v44  ;;  %v3964_v52 = vld [vmem:[%s5676_s4 + $0x30] sm:$0xff] }
  0xfc   : > { %v4551_v60 = vpack.c.bf16 %v1265_v56, %v1264_v53  ;;  %v673_v62 = vmul.f32 %v4397_v42, %v605_v57  ;;  %3661 = vmatmul.msk.bf16.gmra.mxu1 %vm762_vm1, %v4547_v54  ;;  %v3966_v51 = vld [vmem:[%s5676_s4 + $0x40] sm:$0xff] }
  0xfd   : > { %3685 = vmatmul.msk.bf16.gmra.mxu2 %vm762_vm1, %v4549_v55  ;;  %5730 = vst [vmem:[#allocation23_spill] sm:$0xff] %v4594_v50  ;;  %1608 = vmatpush.bf16.msrb.mxu1 %v3964_v52 }
  0xfe   : > { %3713 = vmatmul.msk.bf16.gmra.mxu3 %vm762_vm1, %v4551_v60  ;;  %v709_v0 = vadd.f32 %v4406_v45, %v673_v62  ;;  %1842 = vmatpush.bf16.msrb.mxu2 %v3966_v51 }
 0x100   : > { %v741_v4 = vmax.f32 %v709_v0, 0.0 }
 0x101   : > { %v915_v20 = vld [vmem:[#allocation2 + $0x91] sm:$0xff] }
 0x102   : > { %830 = vst.msk [vmem:[#allocation2 + $0x99] sm:$0xff] %vm762_vm1, %v741_v4  ;;  %v863_v22 = vld [vmem:[#allocation2 + $0x90] sm:$0xff] }
 0x103   : > { %v608_v13 = vpop.f32.mrf.mxu0 }
 0x104   : > { %v674_v16 = vmul.f32 %v4397_v42, %v608_v13 }
 0x106   : > { %v710_v17 = vadd.f32 %v4406_v45, %v674_v16  ;;  %3642 = vmatmul.msk.bf16.gmra.mxu0 %vm520_vm0, %v4567_v7 }
 0x108   : > { %v742_v19 = vmax.f32 %v710_v17, 0.0 }
 0x109   : > { %v916_v24 = vld [vmem:[#allocation2 + $0x99] sm:$0xff] }
 0x10a   : > { %v864_v27 = vld [vmem:[#allocation2 + $0x98] sm:$0xff]  ;;  %831 = vst.msk [vmem:[#allocation2 + $0xa9] sm:$0xff] %vm762_vm1, %v742_v19  ;;  %v4577_v30 = vpack.c.bf16 %v916_v24, %v915_v20 }
 0x10b   : > { %v1266_v28 = vld [vmem:[#allocation2 + $0x92] sm:$0xff]  ;;  %v4579_v31 = vpack.c.bf16 %v864_v27, %v863_v22  ;;  %v1267_v32 = vld [vmem:[#allocation2 + $0x9a] sm:$0xff]  ;;  %v610_v36 = vpop.f32.mrf.mxu0  ;;  %v1025_v27 = vpop.f32.mrf.mxu1 }
 0x10c   : > { %v4581_v38 = vpack.c.bf16 %v1267_v32, %v1266_v28  ;;  %v675_v41 = vmul.f32 %v4397_v42, %v610_v36  ;;  %3662 = vmatmul.msk.bf16.gmra.mxu1 %vm762_vm1, %v4577_v30  ;;  %v1174_v28 = vpop.f32.mrf.mxu2  ;;  %v3969_v32 = vld [vmem:[%s5676_s4 + $0x58] sm:$0xff] }
 0x10d   : > { %3686 = vmatmul.msk.bf16.gmra.mxu2 %vm762_vm1, %v4579_v31  ;;  %2075 = vmatpush.bf16.msrb.mxu3 %v3969_v32 }
 0x10e   : > { %3714 = vmatmul.msk.bf16.gmra.mxu3 %vm762_vm1, %v4581_v38  ;;  %v711_v43 = vadd.f32 %v4406_v45, %v675_v41  ;;  %v1175_v41 = vadd.f32 %v1174_v28, %v1025_v27 }
 0x110   : > { %v743_v49 = vmax.f32 %v711_v43, 0.0 }
 0x111   : > { %v917_v0 = vld [vmem:[#allocation2 + $0xa9] sm:$0xff] }
 0x112   : > { %832 = vst.msk [vmem:[#allocation2 + $0xb1] sm:$0xff] %vm762_vm1, %v743_v49  ;;  %v865_v1 = vld [vmem:[#allocation2 + $0xa8] sm:$0xff]  ;;  %v1376_v49 = vpop.f32.mrf.mxu3 }
 0x113   : > { %v613_v53 = vpop.f32.mrf.mxu0 }
 0x114   : > { %v676_v56 = vmul.f32 %v4397_v42, %v613_v53  ;;  %v4629_v53 = vadd.f32 %v1376_v49, %v1175_v41  ;;  %v4653_v32 = vpop.f32.mrf.mxu2 }
 0x116   : > { %v712_v57 = vadd.f32 %v4406_v45, %v676_v56  ;;  %3643 = vmatmul.msk.bf16.gmra.mxu0 %vm520_vm0, %v4594_v50 }
 0x118   : > { %v744_v62 = vmax.f32 %v712_v57, 0.0 }
 0x119   : > { %v918_v2 = vld [vmem:[#allocation2 + $0xb1] sm:$0xff] }
 0x11a   : > { %v866_v3 = vld [vmem:[#allocation2 + $0xb0] sm:$0xff]  ;;  %833 = vst.msk [vmem:[#allocation2 + $0xc1] sm:$0xff] %vm762_vm1, %v744_v62  ;;  %v4607_v11 = vpack.c.bf16 %v918_v2, %v917_v0 }
 0x11b   : > { %v1268_v4 = vld [vmem:[#allocation2 + $0xaa] sm:$0xff]  ;;  %v4609_v13 = vpack.c.bf16 %v866_v3, %v865_v1  ;;  %v1269_v16 = vld [vmem:[#allocation2 + $0xb2] sm:$0xff]  ;;  %v615_v17 = vpop.f32.mrf.mxu0 }
 0x11c   : > { %v4611_v19 = vpack.c.bf16 %v1269_v16, %v1268_v4  ;;  %v677_v20 = vmul.f32 %v4397_v42, %v615_v17  ;;  %3663 = vmatmul.msk.bf16.gmra.mxu1 %vm762_vm1, %v4607_v11 }
 0x11d   : > { %3687 = vmatmul.msk.bf16.gmra.mxu2 %vm762_vm1, %v4609_v13 }
 0x11e   : > { %3715 = vmatmul.msk.bf16.gmra.mxu3 %vm762_vm1, %v4611_v19  ;;  %v713_v22 = vadd.f32 %v4406_v45, %v677_v20 }
 0x120   : > { %v745_v24 = vmax.f32 %v713_v22, 0.0  ;;  %v4646_v22 = vpop.f32.mrf.mxu1 }
 0x121   : > { %v919_v51 = vld [vmem:[#allocation2 + $0xc1] sm:$0xff] }
 0x122   : > { %834 = vst.msk [vmem:[#allocation2 + $0xc9] sm:$0xff] %vm762_vm1, %v745_v24  ;;  %v867_v52 = vld [vmem:[#allocation2 + $0xc0] sm:$0xff] }
 0x123   : > { %v618_v36 = vpop.f32.mrf.mxu0 }
 0x124   : > { %v678_v43 = vmul.f32 %v4397_v42, %v618_v36  ;;  %v4655_v36 = vpop.f32.mrf.mxu3 }
 0x126   : > { %v714_v44 = vadd.f32 %v4406_v45, %v678_v43  ;;  %3820 = vmatmul.msk.bf16.vlgmr.msrb.gmra.mxu0 %vm762_vm1, %v4477_v35 }
 0x128   : > { %v746_v46 = vmax.f32 %v714_v44, 0.0 }
 0x129   : > { %v920_v56 = vld [vmem:[#allocation2 + $0xc9] sm:$0xff] }
 0x12a   : > { %v868_v57 = vld [vmem:[#allocation2 + $0xc8] sm:$0xff]  ;;  %835 = vst.msk [vmem:[#allocation2 + $0xd9] sm:$0xff] %vm762_vm1, %v746_v46  ;;  %v4632_v0 = vpack.c.bf16 %v920_v56, %v919_v51 }
 0x12b   : > { %v1270_v62 = vld [vmem:[#allocation2 + $0xc2] sm:$0xff]  ;;  %v4634_v1 = vpack.c.bf16 %v868_v57, %v867_v52  ;;  %v1271_v2 = vld [vmem:[#allocation2 + $0xca] sm:$0xff]  ;;  %v620_v3 = vpop.f32.mrf.mxu0 }
 0x12c   : > { %v4636_v4 = vpack.c.bf16 %v1271_v2, %v1270_v62  ;;  %v679_v16 = vmul.f32 %v4397_v42, %v620_v3  ;;  %3664 = vmatmul.msk.bf16.gmra.mxu1 %vm762_vm1, %v4632_v0 }
 0x12d   : > { %3688 = vmatmul.msk.bf16.gmra.mxu2 %vm762_vm1, %v4634_v1 }
 0x12e   : > { %3716 = vmatmul.msk.bf16.gmra.mxu3 %vm762_vm1, %v4636_v4  ;;  %v715_v17 = vadd.f32 %v4406_v45, %v679_v16 }
 0x130   : > { %v747_v20 = vmax.f32 %v715_v17, 0.0 }
 0x131   : > { %v921_v43 = vld [vmem:[#allocation2 + $0xd9] sm:$0xff] }
 0x132   : > { %836 = vst.msk [vmem:[#allocation2 + $0xe1] sm:$0xff] %vm762_vm1, %v747_v20  ;;  %v869_v44 = vld [vmem:[#allocation2 + $0xd8] sm:$0xff] }
 0x133   : > { %v623_v24 = vpop.f32.mrf.mxu0 }
 0x134   : > { %v680_v27 = vmul.f32 %v4397_v42, %v623_v24 }
 0x136   : > { %v716_v28 = vadd.f32 %v4406_v45, %v680_v27  ;;  %3821 = vmatmul.msk.bf16.gmra.mxu0 %vm762_vm1, %v4501_v59 }
 0x138   : > { %v748_v41 = vmax.f32 %v716_v28, 0.0 }
 0x139   : > { %v1030_v46 = vpop.f32.mrf.mxu1  ;;  %v922_v49 = vld [vmem:[#allocation2 + $0xe1] sm:$0xff] }
 0x13a   : > { %v870_v51 = vld [vmem:[#allocation2 + $0xe0] sm:$0xff]  ;;  %837 = vst.msk [vmem:[#allocation2 + $0xf1] sm:$0xff] %vm762_vm1, %v748_v41  ;;  %v4658_v56 = vpack.c.bf16 %v922_v49, %v921_v43 }
 0x13b   : > { %v1272_v52 = vld [vmem:[#allocation2 + $0xda] sm:$0xff]  ;;  %v4660_v57 = vpack.c.bf16 %v870_v51, %v869_v44  ;;  %v1273_v62 = vld [vmem:[#allocation2 + $0xe2] sm:$0xff]  ;;  %v625_v2 = vpop.f32.mrf.mxu0 }
 0x13c   : > { %v4662_v3 = vpack.c.bf16 %v1273_v62, %v1272_v52  ;;  %v681_v16 = vmul.f32 %v4397_v42, %v625_v2  ;;  %3665 = vmatmul.msk.bf16.gmra.mxu1 %vm762_vm1, %v4658_v56 }
 0x13d   : > { %3689 = vmatmul.msk.bf16.gmra.mxu2 %vm762_vm1, %v4660_v57 }
 0x13e   : > { %3717 = vmatmul.msk.bf16.gmra.mxu3 %vm762_vm1, %v4662_v3  ;;  %v717_v17 = vadd.f32 %v4406_v45, %v681_v16 }
 0x140   : > { %v1179_v20 = vpop.f32.mrf.mxu2  ;;  %v749_v24 = vmax.f32 %v717_v17, 0.0 }
 0x141   : > { %v1180_v27 = vadd.f32 %v1179_v20, %v1030_v46  ;;  %v1381_v28 = vpop.f32.mrf.mxu3  ;;  %v1032_v41 = vpop.f32.mrf.mxu1  ;;  %v923_v17 = vld [vmem:[#allocation2 + $0xf1] sm:$0xff] }
 0x142   : > { %838 = vst.msk [vmem:[#allocation2 + $0xf9] sm:$0xff] %vm762_vm1, %v749_v24  ;;  %v871_v46 = vld [vmem:[#allocation2 + $0xf0] sm:$0xff] }
 0x143   : > { %v4673_v43 = vadd.f32 %v1381_v28, %v1180_v27  ;;  %v628_v44 = vpop.f32.mrf.mxu0 }
 0x144   : > { %v682_v49 = vmul.f32 %v4397_v42, %v628_v44 }
 0x146   : > { %v718_v51 = vadd.f32 %v4406_v45, %v682_v49  ;;  %3822 = vmatmul.msk.bf16.gmra.mxu0 %vm762_vm1, %v4525_v26 }
 0x148   : > { %v1181_v52 = vpop.f32.mrf.mxu2  ;;  %v750_v62 = vmax.f32 %v718_v51, 0.0 }
 0x149   : > { %v1182_v2 = vadd.f32 %v1181_v52, %v1032_v41  ;;  %v1383_v16 = vpop.f32.mrf.mxu3  ;;  %v1035_v20 = vpop.f32.mrf.mxu1  ;;  %v924_v50 = vld [vmem:[#allocation2 + $0xf9] sm:$0xff] }
 0x14a   : > { %v872_v7 = vld [vmem:[#allocation2 + $0xf8] sm:$0xff]  ;;  %839 = vst.msk [vmem:[#allocation2 + $0x109] sm:$0xff] %vm762_vm1, %v750_v62  ;;  %v4682_v28 = vpack.c.bf16 %v924_v50, %v923_v17 }
 0x14b   : > { %v1274_v24 = vld [vmem:[#allocation2 + $0xf2] sm:$0xff]  ;;  %v4680_v27 = vadd.f32 %v1383_v16, %v1182_v2  ;;  %v4684_v44 = vpack.c.bf16 %v872_v7, %v871_v46  ;;  %v1275_v49 = vld [vmem:[#allocation2 + $0xfa] sm:$0xff]  ;;  %v630_v40 = vpop.f32.mrf.mxu0 }
 0x14c   : > { %v4686_v5 = vpack.c.bf16 %v1275_v49, %v1274_v24  ;;  %v683_v41 = vmul.f32 %v4397_v42, %v630_v40  ;;  %3666 = vmatmul.msk.bf16.gmra.mxu1 %vm762_vm1, %v4682_v28 }
 0x14d   : > { %3690 = vmatmul.msk.bf16.gmra.mxu2 %vm762_vm1, %v4684_v44 }
 0x14e   : > { %3718 = vmatmul.msk.bf16.gmra.mxu3 %vm762_vm1, %v4686_v5  ;;  %v719_v50 = vadd.f32 %v4406_v45, %v683_v41 }
 0x150   : > { %v1184_v51 = vpop.f32.mrf.mxu2  ;;  %v751_v7 = vmax.f32 %v719_v50, 0.0 }
 0x151   : > { %v1185_v52 = vadd.f32 %v1184_v51, %v1035_v20  ;;  %v1386_v62 = vpop.f32.mrf.mxu3  ;;  %v1037_v2 = vpop.f32.mrf.mxu1  ;;  %v925_v50 = vld [vmem:[#allocation2 + $0x109] sm:$0xff] }
 0x152   : > { %840 = vst.msk [vmem:[#allocation2 + $0x111] sm:$0xff] %vm762_vm1, %v751_v7  ;;  %v873_v20 = vld [vmem:[#allocation2 + $0x108] sm:$0xff] }
 0x153   : > { %v4697_v16 = vadd.f32 %v1386_v62, %v1185_v52  ;;  %v633_v40 = vpop.f32.mrf.mxu0 }
 0x154   : > { %v684_v17 = vmul.f32 %v4397_v42, %v633_v40 }
 0x156   : > { %v720_v46 = vadd.f32 %v4406_v45, %v684_v17  ;;  %3823 = vmatmul.msk.bf16.gmra.mxu0 %vm762_vm1, %v4549_v55 }
 0x158   : > { %v1186_v24 = vpop.f32.mrf.mxu2  ;;  %v752_v49 = vmax.f32 %v720_v46, 0.0 }
 0x159   : > { %v1187_v41 = vadd.f32 %v1186_v24, %v1037_v2  ;;  %v1388_v48 = vpop.f32.mrf.mxu3  ;;  %v1040_v51 = vpop.f32.mrf.mxu1  ;;  %v926_v23 = vld [vmem:[#allocation2 + $0x111] sm:$0xff] }
 0x15a   : > { %v874_v61 = vld [vmem:[#allocation2 + $0x110] sm:$0xff]  ;;  %841 = vst.msk [vmem:[#allocation2 + $0x121] sm:$0xff] %vm762_vm1, %v752_v49  ;;  %v4706_v62 = vpack.c.bf16 %v926_v23, %v925_v50 }
 0x15b   : > { %v1276_v7 = vld [vmem:[#allocation2 + $0x10a] sm:$0xff]  ;;  %v4704_v52 = vadd.f32 %v1388_v48, %v1187_v41  ;;  %v4708_v40 = vpack.c.bf16 %v874_v61, %v873_v20  ;;  %v1277_v17 = vld [vmem:[#allocation2 + $0x112] sm:$0xff]  ;;  %v635_v47 = vpop.f32.mrf.mxu0 }
 0x15c   : > { %v4710_v37 = vpack.c.bf16 %v1277_v17, %v1276_v7  ;;  %v685_v2 = vmul.f32 %v4397_v42, %v635_v47  ;;  %3667 = vmatmul.msk.bf16.gmra.mxu1 %vm762_vm1, %v4706_v62 }
 0x15d   : > { %3691 = vmatmul.msk.bf16.gmra.mxu2 %vm762_vm1, %v4708_v40 }
 0x15e   : > { %3719 = vmatmul.msk.bf16.gmra.mxu3 %vm762_vm1, %v4710_v37  ;;  %v721_v23 = vadd.f32 %v4406_v45, %v685_v2 }
 0x160   : > { %v1189_v48 = vpop.f32.mrf.mxu2  ;;  %v753_v61 = vmax.f32 %v721_v23, 0.0 }
 0x161   : > { %v1190_v46 = vadd.f32 %v1189_v48, %v1040_v51  ;;  %v1391_v24 = vpop.f32.mrf.mxu3  ;;  %v1042_v49 = vpop.f32.mrf.mxu1  ;;  %v927_v23 = vld [vmem:[#allocation2 + $0x121] sm:$0xff] }
 0x162   : > { %842 = vst.msk [vmem:[#allocation2 + $0x129] sm:$0xff] %vm762_vm1, %v753_v61  ;;  %v875_v51 = vld [vmem:[#allocation2 + $0x120] sm:$0xff] }
 0x163   : > { %v4721_v41 = vadd.f32 %v1391_v24, %v1190_v46  ;;  %v638_v47 = vpop.f32.mrf.mxu0 }
 0x164   : > { %v686_v50 = vmul.f32 %v4397_v42, %v638_v47 }
 0x165   : > { %5731 = vst [vmem:[#allocation24_spill] sm:$0xff] %v4721_v41 }
 0x166   : > { %v722_v20 = vadd.f32 %v4406_v45, %v686_v50  ;;  %3824 = vmatmul.msk.bf16.gmra.mxu0 %vm762_vm1, %v4579_v31 }
 0x168   : > { %v1191_v7 = vpop.f32.mrf.mxu2  ;;  %v754_v17 = vmax.f32 %v722_v20, 0.0 }
 0x169   : > { %v1192_v2 = vadd.f32 %v1191_v7, %v1042_v49  ;;  %v1393_v33 = vpop.f32.mrf.mxu3  ;;  %v1045_v48 = vpop.f32.mrf.mxu1  ;;  %v928_v21 = vld [vmem:[#allocation2 + $0x129] sm:$0xff] }
 0x16a   : > { %v876_v18 = vld [vmem:[#allocation2 + $0x128] sm:$0xff]  ;;  %843 = vst.msk [vmem:[#allocation2 + $0x139] sm:$0xff] %vm762_vm1, %v754_v17  ;;  %v4730_v24 = vpack.c.bf16 %v928_v21, %v927_v23 }
 0x16b   : > { %v1278_v61 = vld [vmem:[#allocation2 + $0x122] sm:$0xff]  ;;  %v4728_v46 = vadd.f32 %v1393_v33, %v1192_v2  ;;  %v4732_v47 = vpack.c.bf16 %v876_v18, %v875_v51  ;;  %v1279_v50 = vld [vmem:[#allocation2 + $0x12a] sm:$0xff]  ;;  %v640_v15 = vpop.f32.mrf.mxu0 }
 0x16c   : > { %5733 = vst [vmem:[#allocation26_spill] sm:$0xff] %v4730_v24  ;;  %v4734_v12 = vpack.c.bf16 %v1279_v50, %v1278_v61  ;;  %v687_v49 = vmul.f32 %v4397_v42, %v640_v15  ;;  %3668 = vmatmul.msk.bf16.gmra.mxu1 %vm762_vm1, %v4730_v24 }
 0x16d   : > { %5732 = vst [vmem:[#allocation25_spill] sm:$0xff] %v4728_v46  ;;  %3692 = vmatmul.msk.bf16.gmra.mxu2 %vm762_vm1, %v4732_v47 }
 0x16e   : > { %5734 = vst [vmem:[#allocation27_spill] sm:$0xff] %v4734_v12  ;;  %3720 = vmatmul.msk.bf16.gmra.mxu3 %vm762_vm1, %v4734_v12  ;;  %v723_v21 = vadd.f32 %v4406_v45, %v687_v49 }
 0x170   : > { %v1194_v33 = vpop.f32.mrf.mxu2  ;;  %v755_v18 = vmax.f32 %v723_v21, 0.0 }
 0x171   : > { %v1195_v20 = vadd.f32 %v1194_v33, %v1045_v48  ;;  %v1396_v7 = vpop.f32.mrf.mxu3  ;;  %v1047_v17 = vpop.f32.mrf.mxu1  ;;  %v929_v21 = vld [vmem:[#allocation2 + $0x139] sm:$0xff] }
 0x172   : > { %844 = vst.msk [vmem:[#allocation2 + $0x141] sm:$0xff] %vm762_vm1, %v755_v18  ;;  %v877_v48 = vld [vmem:[#allocation2 + $0x138] sm:$0xff] }
 0x173   : > { %v4745_v2 = vadd.f32 %v1396_v7, %v1195_v20  ;;  %v643_v15 = vpop.f32.mrf.mxu0 }
 0x174   : > { %v688_v23 = vmul.f32 %v4397_v42, %v643_v15 }
 0x175   : > { %5735 = vst [vmem:[#allocation28_spill] sm:$0xff] %v4745_v2 }
 0x176   : > { %v724_v51 = vadd.f32 %v4406_v45, %v688_v23  ;;  %3825 = vmatmul.msk.bf16.gmra.mxu0 %vm762_vm1, %v4609_v13 }
 0x178   : > { %v1196_v61 = vpop.f32.mrf.mxu2  ;;  %v756_v50 = vmax.f32 %v724_v51, 0.0 }
 0x179   : > { %v1197_v49 = vadd.f32 %v1196_v61, %v1047_v17  ;;  %v1398_v9 = vpop.f32.mrf.mxu3  ;;  %v1050_v33 = vpop.f32.mrf.mxu1  ;;  %v930_v6 = vld [vmem:[#allocation2 + $0x141] sm:$0xff] }
 0x17a   : > { %v878_v46 = vld [vmem:[#allocation2 + $0x140] sm:$0xff]  ;;  %845 = vst.msk [vmem:[#allocation2 + $0x151] sm:$0xff] %vm762_vm1, %v756_v50  ;;  %v4754_v7 = vpack.c.bf16 %v930_v6, %v929_v21 }
 0x17b   : > { %v1280_v18 = vld [vmem:[#allocation2 + $0x13a] sm:$0xff]  ;;  %v4752_v20 = vadd.f32 %v1398_v9, %v1197_v49  ;;  %v4756_v15 = vpack.c.bf16 %v878_v46, %v877_v48  ;;  %v1281_v23 = vld [vmem:[#allocation2 + $0x142] sm:$0xff]  ;;  %v645_v2 = vpop.f32.mrf.mxu0 }
 0x17c   : > { %5737 = vst [vmem:[#allocation30_spill] sm:$0xff] %v4754_v7  ;;  %v4758_v12 = vpack.c.bf16 %v1281_v23, %v1280_v18  ;;  %v689_v17 = vmul.f32 %v4397_v42, %v645_v2  ;;  %3669 = vmatmul.msk.bf16.gmra.mxu1 %vm762_vm1, %v4754_v7 }
 0x17d   : > { %5736 = vst [vmem:[#allocation29_spill] sm:$0xff] %v4752_v20  ;;  %3693 = vmatmul.msk.bf16.gmra.mxu2 %vm762_vm1, %v4756_v15 }
 0x17e   : > { %5738 = vst [vmem:[#allocation31_spill] sm:$0xff] %v4758_v12  ;;  %3721 = vmatmul.msk.bf16.gmra.mxu3 %vm762_vm1, %v4758_v12  ;;  %v725_v6 = vadd.f32 %v4406_v45, %v689_v17 }
 0x180   : > { %v1199_v9 = vpop.f32.mrf.mxu2  ;;  %v757_v46 = vmax.f32 %v725_v6, 0.0 }
 0x181   : > { %v1200_v51 = vadd.f32 %v1199_v9, %v1050_v33  ;;  %v1401_v61 = vpop.f32.mrf.mxu3  ;;  %v1052_v50 = vpop.f32.mrf.mxu1  ;;  %v931_v6 = vld [vmem:[#allocation2 + $0x151] sm:$0xff] }
 0x182   : > { %846 = vst.msk [vmem:[#allocation2 + $0x159] sm:$0xff] %vm762_vm1, %v757_v46  ;;  %v879_v33 = vld [vmem:[#allocation2 + $0x150] sm:$0xff] }
 0x183   : > { %v4769_v49 = vadd.f32 %v1401_v61, %v1200_v51  ;;  %v648_v2 = vpop.f32.mrf.mxu0  ;;  %v3968_v9 = vld [vmem:[%s5676_s4 + $0x50] sm:$0xff] }
 0x184   : > { %v690_v21 = vmul.f32 %v4397_v42, %v648_v2  ;;  %2076 = vmatpush.bf16.msrb.mxu3 %v3968_v9 }
 0x185   : > { %5739 = vst [vmem:[#allocation32_spill] sm:$0xff] %v4769_v49 }
 0x186   : > { %v726_v48 = vadd.f32 %v4406_v45, %v690_v21  ;;  %3826 = vmatmul.msk.bf16.gmra.mxu0 %vm762_vm1, %v4634_v1 }
 0x188   : > { %v1201_v18 = vpop.f32.mrf.mxu2  ;;  %v758_v23 = vmax.f32 %v726_v48, 0.0 }
 0x189   : > { %v1202_v17 = vadd.f32 %v1201_v18, %v1052_v50  ;;  %v1403_v20 = vpop.f32.mrf.mxu3  ;;  %v1055_v46 = vpop.f32.mrf.mxu1  ;;  %v932_v51 = vld [vmem:[#allocation2 + $0x159] sm:$0xff] }
 0x18a   : > { %v880_v61 = vld [vmem:[#allocation2 + $0x158] sm:$0xff]  ;;  %847 = vst.msk [vmem:[#allocation2 + $0x169] sm:$0xff] %vm762_vm1, %v758_v23  ;;  %v4781_v21 = vpack.c.bf16 %v932_v51, %v931_v6 }
 0x18b   : > { %v1282_v49 = vld [vmem:[#allocation2 + $0x152] sm:$0xff]  ;;  %v4779_v2 = vadd.f32 %v1403_v20, %v1202_v17  ;;  %v4783_v12 = vpack.c.bf16 %v880_v61, %v879_v33  ;;  %v1283_v50 = vld [vmem:[#allocation2 + $0x15a] sm:$0xff]  ;;  %v650_v48 = vpop.f32.mrf.mxu0  ;;  %v3975_v20 = vld [vmem:[%s5676_s4 + $0x88] sm:$0xff] }
 0x18c   : > { %5741 = vst [vmem:[#allocation34_spill] sm:$0xff] %v4781_v21  ;;  %v4785_v18 = vpack.c.bf16 %v1283_v50, %v1282_v49  ;;  %v691_v7 = vmul.f32 %v4397_v42, %v650_v48  ;;  %3670 = vmatmul.msk.bf16.gmra.mxu1 %vm762_vm1, %v4781_v21  ;;  %2778 = vmatpush.bf16.msra.mxu2 %v3975_v20  ;;  %v3973_v61 = vld [vmem:[%s5676_s4 + $0x78] sm:$0xff] }
 0x18d   : > { %5740 = vst [vmem:[#allocation33_spill] sm:$0xff] %v4779_v2  ;;  %3694 = vmatmul.msk.bf16.gmra.mxu2 %vm762_vm1, %v4783_v12  ;;  %2544 = vmatpush.bf16.msra.mxu1 %v3973_v61 }
 0x18e   : > { %5742 = vst [vmem:[#allocation35_spill] sm:$0xff] %v4785_v18  ;;  %3722 = vmatmul.msk.bf16.gmra.mxu3 %vm762_vm1, %v4785_v18  ;;  %v727_v23 = vadd.f32 %v4406_v45, %v691_v7 }
 0x190   : > { %v1204_v17 = vpop.f32.mrf.mxu2  ;;  %v759_v49 = vmax.f32 %v727_v23, 0.0 }
 0x191   : > { %v1205_v6 = vadd.f32 %v1204_v17, %v1055_v46  ;;  %v1406_v33 = vpop.f32.mrf.mxu3  ;;  %v1057_v9 = vpop.f32.mrf.mxu1 }
 0x192   : > { %848 = vst.msk [vmem:[#allocation2 + $0x171] sm:$0xff] %vm762_vm1, %v759_v49  ;;  %v933_v49 = vld [vmem:[#allocation2 + $0x169] sm:$0xff] }
 0x193   : > { %v4799_v51 = vadd.f32 %v1406_v33, %v1205_v6  ;;  %v653_v50 = vpop.f32.mrf.mxu0  ;;  %v881_v6 = vld [vmem:[#allocation2 + $0x168] sm:$0xff] }
 0x194   : > { %v692_v48 = vmul.f32 %v4397_v42, %v653_v50 }
 0x195   : > { %5743 = vst [vmem:[#allocation36_spill] sm:$0xff] %v4799_v51 }
 0x196   : > { %v728_v7 = vadd.f32 %v4406_v45, %v692_v48  ;;  %3827 = vmatmul.msk.bf16.gmra.mxu0 %vm762_vm1, %v4660_v57 }
 0x198   : > { %v1206_v46 = vpop.f32.mrf.mxu2  ;;  %v760_v20 = vmax.f32 %v728_v7, 0.0 }
 0x199   : > { %v1207_v23 = vadd.f32 %v1206_v46, %v1057_v9  ;;  %v1408_v17 = vpop.f32.mrf.mxu3  ;;  %v1060_v33 = vpop.f32.mrf.mxu1  ;;  %v934_v51 = vld [vmem:[#allocation2 + $0x171] sm:$0xff] }
 0x19a   : > { %v882_v2 = vld [vmem:[#allocation2 + $0x170] sm:$0xff]  ;;  %849 = vst.msk [vmem:[#allocation2 + $0x181] sm:$0xff] %vm762_vm1, %v760_v20  ;;  %v4811_v61 = vpack.c.bf16 %v934_v51, %v933_v49 }
 0x19b   : > { %v1284_v18 = vld [vmem:[#allocation2 + $0x16a] sm:$0xff]  ;;  %v4809_v21 = vadd.f32 %v1408_v17, %v1207_v23  ;;  %v4813_v50 = vpack.c.bf16 %v882_v2, %v881_v6  ;;  %v1285_v48 = vld [vmem:[#allocation2 + $0x172] sm:$0xff]  ;;  %v655_v24 = vpop.f32.mrf.mxu0 }
 0x19c   : > { %v4815_v41 = vpack.c.bf16 %v1285_v48, %v1284_v18  ;;  %v693_v9 = vmul.f32 %v4397_v42, %v655_v24  ;;  %3671 = vmatmul.msk.bf16.gmra.mxu1 %vm762_vm1, %v4811_v61 }
 0x19d   : > { %3695 = vmatmul.msk.bf16.gmra.mxu2 %vm762_vm1, %v4813_v50 }
 0x19e   : > { %3723 = vmatmul.msk.bf16.gmra.mxu3 %vm762_vm1, %v4815_v41  ;;  %v729_v51 = vadd.f32 %v4406_v45, %v693_v9 }
 0x1a0   : > { %v1209_v7 = vpop.f32.mrf.mxu2  ;;  %v761_v2 = vmax.f32 %v729_v51, 0.0 }
 0x1a1   : > { %v1210_v46 = vadd.f32 %v1209_v7, %v1060_v33  ;;  %v1411_v20 = vpop.f32.mrf.mxu3  ;;  %v1062_v23 = vpop.f32.mrf.mxu1 }
 0x1a2   : > { %850 = vst.msk [vmem:[#allocation2 + $0x189] sm:$0xff] %vm762_vm1, %v761_v2 }
 0x1a3   : > { %v4826_v18 = vadd.f32 %v1411_v20, %v1210_v46 }
 0x1a6   : > { %3828 = vmatmul.msk.bf16.gmra.mxu0 %vm762_vm1, %v4684_v44 }
 0x1a8   : > { %v1211_v42 = vpop.f32.mrf.mxu2 }
 0x1a9   : > { %v1212_v24 = vadd.f32 %v1211_v42, %v1062_v23  ;;  %v1413_v17 = vpop.f32.mrf.mxu3  ;;  %v1065_v49 = vpop.f32.mrf.mxu1 }
 0x1ab   : > { %v4830_v6 = vadd.f32 %v1413_v17, %v1212_v24 }
 0x1ac   : > { %3736 = vmatmul.msk.bf16.vlgmr.msrb.gmra.mxu1 %vm762_vm1, %v4453_v10 }
 0x1ad   : > { %3764 = vmatmul.msk.bf16.vlgmr.msrb.gmra.mxu2 %vm762_vm1, %v4451_v8 }
 0x1ae   : > { %3792 = vmatmul.msk.bf16.vlgmr.msrb.gmra.mxu3 %vm762_vm1, %v4455_v14 }
 0x1b0   : > { %v1214_v45 = vpop.f32.mrf.mxu2 }
 0x1b1   : > { %v1215_v33 = vadd.f32 %v1214_v45, %v1065_v49  ;;  %v1416_v48 = vpop.f32.mrf.mxu3  ;;  %v1067_v9 = vpop.f32.mrf.mxu1 }
 0x1b3   : > { %v4838_v51 = vadd.f32 %v1416_v48, %v1215_v33 }
 0x1b6   : > { %3829 = vmatmul.msk.bf16.gmra.mxu0 %vm762_vm1, %v4708_v40 }
 0x1b8   : > { %v1216_v7 = vpop.f32.mrf.mxu2 }
 0x1b9   : > { %v1217_v2 = vadd.f32 %v1216_v7, %v1067_v9  ;;  %v1418_v46 = vpop.f32.mrf.mxu3  ;;  %v1070_v20 = vpop.f32.mrf.mxu1 }
 0x1bb   : > { %v4842_v10 = vadd.f32 %v1418_v46, %v1217_v2  ;;  %v4866_v46 = vpop.f32.mrf.mxu0 }
 0x1bc   : > { %3737 = vmatmul.msk.bf16.gmra.mxu1 %vm762_vm1, %v4477_v35 }
 0x1bd   : > { %3765 = vmatmul.msk.bf16.gmra.mxu2 %vm762_vm1, %v4475_v34 }
 0x1be   : > { %3793 = vmatmul.msk.bf16.gmra.mxu3 %vm762_vm1, %v4479_v39 }
 0x1c0   : > { %v1219_v8 = vpop.f32.mrf.mxu2 }
 0x1c1   : > { %v1220_v14 = vadd.f32 %v1219_v8, %v1070_v20  ;;  %v1421_v23 = vpop.f32.mrf.mxu3  ;;  %v1072_v42 = vpop.f32.mrf.mxu1 }
 0x1c3   : > { %v4850_v24 = vadd.f32 %v1421_v23, %v1220_v14 }
 0x1c6   : > { %3830 = vmatmul.msk.bf16.gmra.mxu0 %vm762_vm1, %v4732_v47 }
 0x1c8   : > { %v1221_v17 = vpop.f32.mrf.mxu2 }
 0x1c9   : > { %v1222_v49 = vadd.f32 %v1221_v17, %v1072_v42  ;;  %v1423_v45 = vpop.f32.mrf.mxu3  ;;  %v1075_v33 = vpop.f32.mrf.mxu1 }
 0x1ca   : > { %v4876_v17 = vpop.f32.mrf.mxu0 }
 0x1cb   : > { %v4854_v35 = vadd.f32 %v1423_v45, %v1222_v49 }
 0x1cc   : > { %3738 = vmatmul.msk.bf16.gmra.mxu1 %vm762_vm1, %v4501_v59 }
 0x1cd   : > { %3766 = vmatmul.msk.bf16.gmra.mxu2 %vm762_vm1, %v4499_v58 }
 0x1ce   : > { %3794 = vmatmul.msk.bf16.gmra.mxu3 %vm762_vm1, %v4503_v63 }
 0x1d0   : > { %v1224_v34 = vpop.f32.mrf.mxu2 }
 0x1d1   : > { %v1225_v39 = vadd.f32 %v1224_v34, %v1075_v33  ;;  %v1426_v48 = vpop.f32.mrf.mxu3  ;;  %v1077_v9 = vpop.f32.mrf.mxu1 }
 0x1d3   : > { %v4862_v7 = vadd.f32 %v1426_v48, %v1225_v39 }
 0x1d6   : > { %3831 = vmatmul.msk.bf16.gmra.mxu0 %vm762_vm1, %v4756_v15 }
 0x1d8   : > { %v1226_v2 = vpop.f32.mrf.mxu2 }
 0x1d9   : > { %v1227_v20 = vadd.f32 %v1226_v2, %v1077_v9  ;;  %v1428_v59 = vpop.f32.mrf.mxu3  ;;  %v1080_v8 = vpop.f32.mrf.mxu1 }
 0x1db   : > { %v4868_v14 = vadd.f32 %v1428_v59, %v1227_v20 }
 0x1dc   : > { %3739 = vmatmul.msk.bf16.gmra.mxu1 %vm762_vm1, %v4525_v26 }
 0x1dd   : > { %3767 = vmatmul.msk.bf16.gmra.mxu2 %vm762_vm1, %v4523_v25  ;;  %v4884_v25 = vpop.f32.mrf.mxu0 }
 0x1de   : > { %3795 = vmatmul.msk.bf16.gmra.mxu3 %vm762_vm1, %v4527_v29 }
 0x1e0   : > { %v1229_v58 = vpop.f32.mrf.mxu2 }
 0x1e1   : > { %v1230_v63 = vadd.f32 %v1229_v58, %v1080_v8  ;;  %v1431_v23 = vpop.f32.mrf.mxu3  ;;  %v1082_v42 = vpop.f32.mrf.mxu1 }
 0x1e3   : > { %v4878_v49 = vadd.f32 %v1431_v23, %v1230_v63 }
 0x1e5   : > { %v4894_v59 = vpop.f32.mrf.mxu0 }
 0x1e6   : > { %3832 = vmatmul.msk.bf16.gmra.mxu0 %vm762_vm1, %v4783_v12 }
 0x1e8   : > { %v1231_v45 = vpop.f32.mrf.mxu2 }
 0x1e9   : > { %v1232_v33 = vadd.f32 %v1231_v45, %v1082_v42  ;;  %v1433_v26 = vpop.f32.mrf.mxu3  ;;  %v1085_v34 = vpop.f32.mrf.mxu1 }
 0x1eb   : > { %v4882_v39 = vadd.f32 %v1433_v26, %v1232_v33 }
 0x1ec   : > { %3740 = vmatmul.msk.bf16.gmra.mxu1 %vm762_vm1, %v4549_v55 }
 0x1ed   : > { %3768 = vmatmul.msk.bf16.gmra.mxu2 %vm762_vm1, %v4547_v54 }
 0x1ee   : > { %3796 = vmatmul.msk.bf16.gmra.mxu3 %vm762_vm1, %v4551_v60 }
 0x1f0   : > { %v1234_v29 = vpop.f32.mrf.mxu2 }
 0x1f1   : > { %v1235_v48 = vadd.f32 %v1234_v29, %v1085_v34  ;;  %v1436_v9 = vpop.f32.mrf.mxu3  ;;  %v1087_v2 = vpop.f32.mrf.mxu1 }
 0x1f3   : > { %v4892_v20 = vadd.f32 %v1436_v9, %v1235_v48 }
 0x1f6   : > { %3833 = vmatmul.msk.bf16.gmra.mxu0 %vm762_vm1, %v4813_v50 }
 0x1f8   : > { %v1236_v8 = vpop.f32.mrf.mxu2 }
 0x1f9   : > { %v1237_v58 = vadd.f32 %v1236_v8, %v1087_v2  ;;  %v1438_v55 = vpop.f32.mrf.mxu3  ;;  %v1090_v63 = vpop.f32.mrf.mxu1 }
 0x1fb   : > { %v4898_v23 = vadd.f32 %v1438_v55, %v1237_v58 }
 0x1fc   : > { %3741 = vmatmul.msk.bf16.gmra.mxu1 %vm762_vm1, %v4579_v31 }
 0x1fd   : > { %3769 = vmatmul.msk.bf16.gmra.mxu2 %vm762_vm1, %v4577_v30  ;;  %v3974_v30 = vld [vmem:[%s5676_s4 + $0x80] sm:$0xff] }
 0x1fe   : > { %3797 = vmatmul.msk.bf16.gmra.mxu3 %vm762_vm1, %v4581_v38  ;;  %2779 = vmatpush.bf16.msra.mxu2 %v3974_v30 }
 0x200   : > { %v1239_v54 = vpop.f32.mrf.mxu2 }
 0x201   : > { %v1240_v60 = vadd.f32 %v1239_v54, %v1090_v63  ;;  %v1441_v42 = vpop.f32.mrf.mxu3  ;;  %v1092_v45 = vpop.f32.mrf.mxu1 }
 0x203   : > { %v4906_v33 = vadd.f32 %v1441_v42, %v1240_v60  ;;  %v4932_v42 = vpop.f32.mrf.mxu0 }
 0x208   : > { %v1241_v26 = vpop.f32.mrf.mxu2 }
 0x209   : > { %v1242_v34 = vadd.f32 %v1241_v26, %v1092_v45  ;;  %v1443_v29 = vpop.f32.mrf.mxu3  ;;  %v1095_v48 = vpop.f32.mrf.mxu1 }
 0x20b   : > { %v4908_v9 = vadd.f32 %v1443_v29, %v1242_v34 }
 0x20c   : > { %3742 = vmatmul.msk.bf16.gmra.mxu1 %vm762_vm1, %v4609_v13  ;;  %v3972_v13 = vld [vmem:[%s5676_s4 + $0x70] sm:$0xff] }
 0x20d   : > { %3770 = vmatmul.msk.bf16.gmra.mxu2 %vm762_vm1, %v4607_v11  ;;  %2545 = vmatpush.bf16.msra.mxu1 %v3972_v13  ;;  %v1177_v13 = vadd.f32 %v4653_v32, %v4646_v22 }
 0x20e   : > { %3798 = vmatmul.msk.bf16.gmra.mxu3 %vm762_vm1, %v4611_v19 }
 0x210   : > { %v1244_v31 = vpop.f32.mrf.mxu2 }
 0x211   : > { %v1245_v38 = vadd.f32 %v1244_v31, %v1095_v48  ;;  %v1446_v2 = vpop.f32.mrf.mxu3  ;;  %v1097_v8 = vpop.f32.mrf.mxu1  ;;  %v3977_v48 = vld [vmem:[%s5679_s7 + $0x8] sm:$0xff] }
 0x212   : > { %3083 = vmatpush.bf16.msra.mxu3 %v3977_v48 }
 0x213   : > { %v4919_v58 = vadd.f32 %v1446_v2, %v1245_v38  ;;  %v4939_v38 = vpop.f32.mrf.mxu0 }
 0x218   : > { %v1246_v11 = vpop.f32.mrf.mxu2 }
 0x219   : > { %v1247_v55 = vadd.f32 %v1246_v11, %v1097_v8  ;;  %v1448_v63 = vpop.f32.mrf.mxu3  ;;  %v1100_v19 = vpop.f32.mrf.mxu1  ;;  %v3981_v8 = vld [vmem:[%s5682_s10 + $0x18] sm:$0xff] }
 0x21a   : > { %3274 = vmatpush.bf16.msra.mxu0 %v3981_v8 }
 0x21b   : > { %v4924_v54 = vadd.f32 %v1448_v63, %v1247_v55  ;;  %v4958_v22 = vpop.f32.mrf.mxu0 }
 0x21c   : > { %3743 = vmatmul.msk.bf16.gmra.mxu1 %vm762_vm1, %v4634_v1 }
 0x21d   : > { %3771 = vmatmul.msk.bf16.gmra.mxu2 %vm762_vm1, %v4632_v0 }
 0x21e   : > { %3799 = vmatmul.msk.bf16.gmra.mxu3 %vm762_vm1, %v4636_v4 }
 0x220   : > { %v1249_v60 = vpop.f32.mrf.mxu2 }
 0x221   : > { %v1250_v45 = vadd.f32 %v1249_v60, %v1100_v19  ;;  %v1451_v26 = vpop.f32.mrf.mxu3  ;;  %v1102_v34 = vpop.f32.mrf.mxu1 }
 0x223   : > { %v4934_v29 = vadd.f32 %v1451_v26, %v1250_v45 }
 0x228   : > { %v1251_v1 = vpop.f32.mrf.mxu2 }
 0x229   : > { %v1252_v30 = vadd.f32 %v1251_v1, %v1102_v34  ;;  %v1453_v31 = vpop.f32.mrf.mxu3  ;;  %v1610_v0 = vpop.f32.mrf.mxu1 }
 0x22a   : > { %v1690_v2 = vadd.f32 %v1610_v0, %v4629_v53  ;;  %v1457_v53 = vadd.f32 %v4655_v36, %v1177_v13  ;;  %v4969_v36 = vpop.f32.mrf.mxu0 }
 0x22b   : > { %v4941_v4 = vadd.f32 %v1453_v31, %v1252_v30 }
 0x22c   : > { %3744 = vmatmul.msk.bf16.gmra.mxu1 %vm762_vm1, %v4660_v57 }
 0x22d   : > { %3772 = vmatmul.msk.bf16.gmra.mxu2 %vm762_vm1, %v4658_v56 }
 0x22e   : > { %3800 = vmatmul.msk.bf16.gmra.mxu3 %vm762_vm1, %v4662_v3 }
 0x230   : > { %v1844_v11 = vpop.f32.mrf.mxu2 }
 0x231   : > { %v1924_v55 = vadd.f32 %v1844_v11, %v1690_v2  ;;  %v2078_v63 = vpop.f32.mrf.mxu3  ;;  %v1612_v19 = vpop.f32.mrf.mxu1 }
 0x232   : > { %v1691_v45 = vadd.f32 %v1612_v19, %v1457_v53  ;;  %v4974_v8 = vpop.f32.mrf.mxu0 }
 0x233   : > { %v4956_v60 = vadd.f32 %v2078_v63, %v1924_v55 }
 0x238   : > { %v1846_v32 = vpop.f32.mrf.mxu2 }
 0x239   : > { %v1925_v57 = vadd.f32 %v1846_v32, %v1691_v45  ;;  %v2080_v26 = vpop.f32.mrf.mxu3  ;;  %v1615_v34 = vpop.f32.mrf.mxu1 }
 0x23a   : > { %v1692_v3 = vadd.f32 %v1615_v34, %v4673_v43  ;;  %v4985_v19 = vpop.f32.mrf.mxu0 }
 0x23b   : > { %v4960_v56 = vadd.f32 %v2080_v26, %v1925_v57 }
 0x23c   : > { %3745 = vmatmul.msk.bf16.gmra.mxu1 %vm762_vm1, %v4684_v44 }
 0x23d   : > { %3773 = vmatmul.msk.bf16.gmra.mxu2 %vm762_vm1, %v4682_v28 }
 0x23e   : > { %3801 = vmatmul.msk.bf16.gmra.mxu3 %vm762_vm1, %v4686_v5 }
 0x240   : > { %v1849_v48 = vpop.f32.mrf.mxu2 }
 0x241   : > { %v1926_v1 = vadd.f32 %v1849_v48, %v1692_v3  ;;  %v2083_v30 = vpop.f32.mrf.mxu3  ;;  %v1617_v31 = vpop.f32.mrf.mxu1 }
 0x242   : > { %v1693_v2 = vadd.f32 %v1617_v31, %v4680_v27  ;;  %v4993_v48 = vpop.f32.mrf.mxu0 }
 0x243   : > { %v4971_v0 = vadd.f32 %v2083_v30, %v1926_v1  ;;  %v5746_v1 = vld [vmem:[#allocation27_spill] sm:$0xff] }
 0x248   : > { %v1851_v43 = vpop.f32.mrf.mxu2 }
 0x249   : > { %v1927_v44 = vadd.f32 %v1851_v43, %v1693_v2  ;;  %v2085_v13 = vpop.f32.mrf.mxu3  ;;  %v1620_v11 = vpop.f32.mrf.mxu1 }
 0x24a   : > { %v1694_v5 = vadd.f32 %v1620_v11, %v4697_v16  ;;  %v5004_v11 = vpop.f32.mrf.mxu0 }
 0x24b   : > { %v4976_v28 = vadd.f32 %v2085_v13, %v1927_v44  ;;  %v5747_v44 = vld [vmem:[#allocation25_spill] sm:$0xff] }
 0x24c   : > { %3746 = vmatmul.msk.bf16.gmra.mxu1 %vm762_vm1, %v4708_v40 }
 0x24d   : > { %3774 = vmatmul.msk.bf16.gmra.mxu2 %vm762_vm1, %v4706_v62  ;;  %v5744_v62 = vld [vmem:[#allocation24_spill] sm:$0xff] }
 0x24e   : > { %3802 = vmatmul.msk.bf16.gmra.mxu3 %vm762_vm1, %v4710_v37  ;;  %v5745_v37 = vld [vmem:[#allocation26_spill] sm:$0xff] }
 0x250   : > { %v1854_v27 = vpop.f32.mrf.mxu2 }
 0x251   : > { %v1928_v53 = vadd.f32 %v1854_v27, %v1694_v5  ;;  %v2088_v55 = vpop.f32.mrf.mxu3  ;;  %v1622_v63 = vpop.f32.mrf.mxu1 }
 0x252   : > { %v1695_v32 = vadd.f32 %v1622_v63, %v4704_v52  ;;  %v5748_v63 = vld [vmem:[#allocation28_spill] sm:$0xff] }
 0x253   : > { %v4987_v45 = vadd.f32 %v2088_v55, %v1928_v53 }
 0x258   : > { %v1856_v16 = vpop.f32.mrf.mxu2 }
 0x259   : > { %v1929_v57 = vadd.f32 %v1856_v16, %v1695_v32  ;;  %v2090_v26 = vpop.f32.mrf.mxu3  ;;  %v1625_v40 = vpop.f32.mrf.mxu1  ;;  %v3980_v16 = vld [vmem:[%s5682_s10 + $0x10] sm:$0xff] }
 0x25a   : > { %v1696_v3 = vadd.f32 %v1625_v40, %v5744_v62  ;;  %v5749_v62 = vld [vmem:[#allocation30_spill] sm:$0xff]  ;;  %3275 = vmatpush.bf16.msra.mxu0 %v3980_v16 }
 0x25b   : > { %v4990_v34 = vadd.f32 %v2090_v26, %v1929_v57  ;;  %v2219_v57 = vld [vmem:[#allocation2 + $0x180] sm:$0xff]  ;;  %v2220_v26 = vld [vmem:[#allocation2 + $0x188] sm:$0xff] }
 0x25c   : > { %3747 = vmatmul.msk.bf16.gmra.mxu1 %vm762_vm1, %v4732_v47  ;;  %v2237_v40 = vpack.c.bf16 %v2220_v26, %v2219_v57  ;;  %v5755_v57 = vld [vmem:[#allocation35_spill] sm:$0xff] }
 0x25d   : > { %3775 = vmatmul.msk.bf16.gmra.mxu2 %vm762_vm1, %v5745_v37 }
 0x25e   : > { %3803 = vmatmul.msk.bf16.gmra.mxu3 %vm762_vm1, %v5746_v1  ;;  %3834 = vmatmul.msk.bf16.gmra.mxu0 %vm762_vm1, %v2237_v40  ;;  %v5019_v1 = vpop.f32.mrf.mxu0 }
 0x260   : > { %v1859_v52 = vpop.f32.mrf.mxu2 }
 0x261   : > { %v1930_v30 = vadd.f32 %v1859_v52, %v1696_v3  ;;  %v2093_v31 = vpop.f32.mrf.mxu3  ;;  %v1627_v2 = vpop.f32.mrf.mxu1  ;;  %v5750_v3 = vld [vmem:[#allocation31_spill] sm:$0xff] }
 0x262   : > { %v1697_v13 = vadd.f32 %v1627_v2, %v5747_v44  ;;  %v5751_v44 = vld [vmem:[#allocation29_spill] sm:$0xff] }
 0x263   : > { %v5001_v43 = vadd.f32 %v2093_v31, %v1930_v30 }
 0x268   : > { %v1861_v5 = vpop.f32.mrf.mxu2 }
 0x269   : > { %v1931_v27 = vadd.f32 %v1861_v5, %v1697_v13  ;;  %v2095_v53 = vpop.f32.mrf.mxu3  ;;  %v1630_v47 = vpop.f32.mrf.mxu1 }
 0x26a   : > { %v1698_v32 = vadd.f32 %v1630_v47, %v5748_v63  ;;  %v5028_v47 = vpop.f32.mrf.mxu0  ;;  %v5753_v63 = vld [vmem:[#allocation32_spill] sm:$0xff] }
 0x26b   : > { %v5006_v55 = vadd.f32 %v2095_v53, %v1931_v27  ;;  %5752 = vst [vmem:[#allocation24_spill] sm:$0xff] %v5028_v47  ;;  %v2425_v47 = vld [vmem:[#allocation2 + $0x31] sm:$0xff] }
 0x26c   : > { %3748 = vmatmul.msk.bf16.gmra.mxu1 %vm762_vm1, %v4756_v15 }
 0x26d   : > { %3776 = vmatmul.msk.bf16.gmra.mxu2 %vm762_vm1, %v5749_v62 }
 0x26e   : > { %3804 = vmatmul.msk.bf16.gmra.mxu3 %vm762_vm1, %v5750_v3 }
 0x270   : > { %v1864_v37 = vpop.f32.mrf.mxu2 }
 0x271   : > { %v1932_v52 = vadd.f32 %v1864_v37, %v1698_v32  ;;  %v2098_v30 = vpop.f32.mrf.mxu3  ;;  %v1632_v31 = vpop.f32.mrf.mxu1  ;;  %v5754_v32 = vld [vmem:[#allocation34_spill] sm:$0xff] }
 0x272   : > { %v1699_v13 = vadd.f32 %v1632_v31, %v5751_v44  ;;  %v2221_v44 = vld [vmem:[#allocation2 + $0x198] sm:$0xff] }
 0x273   : > { %v5021_v2 = vadd.f32 %v2098_v30, %v1932_v52  ;;  %v5756_v30 = vld [vmem:[#allocation33_spill] sm:$0xff] }
 0x278   : > { %v1866_v15 = vpop.f32.mrf.mxu2 }
 0x279   : > { %v5024_v5 = vadd.f32 %v1866_v15, %v1699_v13  ;;  %v5026_v27 = vpop.f32.mrf.mxu3  ;;  %v1635_v53 = vpop.f32.mrf.mxu1  ;;  %v2222_v13 = vld [vmem:[#allocation2 + $0x1a0] sm:$0xff] }
 0x27a   : > { %v1700_v16 = vadd.f32 %v1635_v53, %v5753_v63  ;;  %v2238_v15 = vpack.c.bf16 %v2222_v13, %v2221_v44  ;;  %v5040_v53 = vpop.f32.mrf.mxu0 }
 0x27b   : > { %5757 = vst [vmem:[#allocation26_spill] sm:$0xff] %v5040_v53  ;;  %v1987_v53 = vld [vmem:[#allocation2 + $0x18a] sm:$0xff] }
 0x27c   : > { %3749 = vmatmul.msk.bf16.gmra.mxu1 %vm762_vm1, %v4783_v12  ;;  %3835 = vmatmul.msk.bf16.gmra.mxu0 %vm762_vm1, %v2238_v15 }
 0x27d   : > { %3777 = vmatmul.msk.bf16.gmra.mxu2 %vm762_vm1, %v5754_v32 }
 0x27e   : > { %3805 = vmatmul.msk.bf16.gmra.mxu3 %vm762_vm1, %v5755_v57 }
 0x280   : > { %v1869_v26 = vpop.f32.mrf.mxu2 }
 0x281   : > { %v1934_v62 = vadd.f32 %v1869_v26, %v1700_v16  ;;  %v2103_v3 = vpop.f32.mrf.mxu3  ;;  %v1637_v37 = vpop.f32.mrf.mxu1  ;;  %v5758_v16 = vld [vmem:[#allocation36_spill] sm:$0xff] }
 0x282   : > { %v1701_v31 = vadd.f32 %v1637_v37, %v5756_v30 }
 0x283   : > { %v5037_v52 = vadd.f32 %v2103_v3, %v1934_v62  ;;  %v5054_v62 = vpop.f32.mrf.mxu0 }
 0x284   : > { %5759 = vst [vmem:[#allocation27_spill] sm:$0xff] %v5054_v62 }
 0x288   : > { %v1871_v12 = vpop.f32.mrf.mxu2 }
 0x289   : > { %v5043_v63 = vadd.f32 %v1871_v12, %v1701_v31  ;;  %v5045_v32 = vpop.f32.mrf.mxu3  ;;  %v1640_v57 = vpop.f32.mrf.mxu1  ;;  %v1752_v12 = vld [vmem:[#allocation2 + $0x181] sm:$0xff] }
 0x28a   : > { %v1702_v26 = vadd.f32 %v1640_v57, %v5758_v16  ;;  %v1753_v57 = vld [vmem:[#allocation2 + $0x189] sm:$0xff] }
 0x28c   : > { %3750 = vmatmul.msk.bf16.gmra.mxu1 %vm762_vm1, %v4813_v50  ;;  %v5059_v50 = vpop.f32.mrf.mxu0 }
 0x28d   : > { %3778 = vmatmul.msk.bf16.gmra.mxu2 %vm762_vm1, %v4811_v61  ;;  %5760 = vst [vmem:[#allocation25_spill] sm:$0xff] %v5059_v50 }
 0x28e   : > { %3806 = vmatmul.msk.bf16.gmra.mxu3 %vm762_vm1, %v4815_v41  ;;  %v1986_v41 = vld [vmem:[#allocation2 + $0x182] sm:$0xff] }
 0x290   : > { %v1874_v3 = vpop.f32.mrf.mxu2 }
 0x291   : > { %v1936_v37 = vadd.f32 %v1874_v3, %v1702_v26  ;;  %v2108_v30 = vpop.f32.mrf.mxu3  ;;  %v1642_v31 = vpop.f32.mrf.mxu1  ;;  %v5066_v3 = vpack.c.bf16 %v1753_v57, %v1752_v12  ;;  %v2659_v12 = vld [vmem:[#allocation2 + $0x32] sm:$0xff]  ;;  %v2660_v57 = vld [vmem:[#allocation2 + $0x3a] sm:$0xff] }
 0x292   : > { %v1703_v13 = vadd.f32 %v1642_v31, %v4809_v21 }
 0x293   : > { %v5056_v44 = vadd.f32 %v2108_v30, %v1936_v37  ;;  %v5068_v37 = vpack.c.bf16 %v1987_v53, %v1986_v41 }
 0x298   : > { %v1876_v15 = vpop.f32.mrf.mxu2 }
 0x299   : > { %v5061_v16 = vadd.f32 %v1876_v15, %v1703_v13  ;;  %v5063_v61 = vpop.f32.mrf.mxu3  ;;  %v1645_v62 = vpop.f32.mrf.mxu1 }
 0x29a   : > { %v1704_v26 = vadd.f32 %v1645_v62, %v4826_v18  ;;  %v5075_v15 = vpop.f32.mrf.mxu0  ;;  %v2426_v62 = vld [vmem:[#allocation2 + $0x39] sm:$0xff] }
 0x29b   : > { %5761 = vst [vmem:[#allocation28_spill] sm:$0xff] %v5075_v15  ;;  %v2691_v15 = vpack.c.bf16 %v2660_v57, %v2659_v12  ;;  %v2428_v12 = vld [vmem:[#allocation2 + $0x51] sm:$0xff] }
 0x29c   : > { %3751 = vmatmul.msk.bf16.gmra.mxu1 %vm762_vm1, %v2237_v40  ;;  %v3976_v40 = vld [vmem:[%s5679_s7] sm:$0xff]  ;;  %v2661_v57 = vld [vmem:[#allocation2 + $0x4a] sm:$0xff] }
 0x29d   : > { %3779 = vmatmul.msk.bf16.gmra.mxu2 %vm762_vm1, %v5066_v3  ;;  %3084 = vmatpush.bf16.msra.mxu3 %v3976_v40 }
 0x29e   : > { %3807 = vmatmul.msk.bf16.gmra.mxu3 %vm762_vm1, %v5068_v37 }
 0x2a0   : > { %v1879_v21 = vpop.f32.mrf.mxu2 }
 0x2a1   : > { %v1938_v30 = vadd.f32 %v1879_v21, %v1704_v26  ;;  %v2113_v31 = vpop.f32.mrf.mxu3  ;;  %v1647_v13 = vpop.f32.mrf.mxu1 }
 0x2a2   : > { %v1705_v18 = vadd.f32 %v1647_v13, %v4830_v6  ;;  %v3979_v6 = vld [vmem:[%s5682_s10 + $0x8] sm:$0xff]  ;;  %v5091_v13 = vpop.f32.mrf.mxu0 }
 0x2a3   : > { %v5077_v50 = vadd.f32 %v2113_v31, %v1938_v30  ;;  %v2457_v31 = vpack.c.bf16 %v2426_v62, %v2425_v47  ;;  %5765 = vst [vmem:[#allocation32_spill] sm:$0xff] %v5091_v13  ;;  %3276 = vmatpush.bf16.msra.mxu0 %v3979_v6  ;;  %v2427_v6 = vld [vmem:[#allocation2 + $0x49] sm:$0xff] }
 0x2a5   : > { %5762 = vst [vmem:[#allocation30_spill] sm:$0xff] %v5077_v50 }
 0x2a8   : > { %v1881_v53 = vpop.f32.mrf.mxu2 }
 0x2a9   : > { %v5083_v41 = vadd.f32 %v1881_v53, %v1705_v18  ;;  %v5085_v26 = vpop.f32.mrf.mxu3  ;;  %v1650_v21 = vpop.f32.mrf.mxu1 }
 0x2aa   : > { %5764 = vst [vmem:[#allocation29_spill] sm:$0xff] %v5085_v26  ;;  %v1706_v30 = vadd.f32 %v1650_v21, %v4838_v51  ;;  %v5098_v47 = vpop.f32.mrf.mxu0  ;;  %v2662_v21 = vld [vmem:[#allocation2 + $0x52] sm:$0xff] }
 0x2ab   : > { %5763 = vst [vmem:[#allocation31_spill] sm:$0xff] %v5083_v41  ;;  %v2692_v50 = vpack.c.bf16 %v2662_v21, %v2661_v57 }
 0x2ac   : > { %3848 = vmatmul.msk.bf16.vlgmr.msra.gmra.mxu1 %vm762_vm1, %v2457_v31  ;;  %5767 = vst [vmem:[#allocation35_spill] sm:$0xff] %v5098_v47 }
 0x2ad   : > { %3876 = vmatmul.msk.bf16.vlgmr.msra.gmra.mxu2 %vm762_vm1, %v2691_v15 }
 0x2b0   : > { %v1884_v18 = vpop.f32.mrf.mxu2 }
 0x2b1   : > { %v1940_v40 = vadd.f32 %v1884_v18, %v1706_v30  ;;  %v2118_v53 = vpop.f32.mrf.mxu3  ;;  %v1652_v26 = vpop.f32.mrf.mxu1  ;;  %v2458_v18 = vpack.c.bf16 %v2428_v12, %v2427_v6 }
 0x2b2   : > { %v1707_v51 = vadd.f32 %v1652_v26, %v4842_v10  ;;  %v5107_v26 = vpop.f32.mrf.mxu0 }
 0x2b3   : > { %v5095_v41 = vadd.f32 %v2118_v53, %v1940_v40  ;;  %5770 = vst [vmem:[#allocation37_spill] sm:$0xff] %v5107_v26 }
 0x2b5   : > { %5766 = vst [vmem:[#allocation34_spill] sm:$0xff] %v5095_v41  ;;  %v2663_v41 = vld [vmem:[#allocation2 + $0x62] sm:$0xff] }
 0x2b8   : > { %v1886_v62 = vpop.f32.mrf.mxu2 }
 0x2b9   : > { %v5100_v13 = vadd.f32 %v1886_v62, %v1707_v51  ;;  %v5102_v31 = vpop.f32.mrf.mxu3  ;;  %v1655_v15 = vpop.f32.mrf.mxu1 }
 0x2ba   : > { %5769 = vst [vmem:[#allocation36_spill] sm:$0xff] %v5102_v31  ;;  %v1708_v30 = vadd.f32 %v1655_v15, %v4850_v24  ;;  %v2664_v24 = vld [vmem:[#allocation2 + $0x6a] sm:$0xff]  ;;  %v5116_v15 = vpop.f32.mrf.mxu0 }
 0x2bb   : > { %5768 = vst [vmem:[#allocation33_spill] sm:$0xff] %v5100_v13  ;;  %v2430_v13 = vld [vmem:[#allocation2 + $0x69] sm:$0xff] }
 0x2bc   : > { %3849 = vmatmul.msk.bf16.gmra.mxu1 %vm762_vm1, %v2458_v18  ;;  %5772 = vst [vmem:[#allocation39_spill] sm:$0xff] %v5116_v15  ;;  %v2693_v18 = vpack.c.bf16 %v2664_v24, %v2663_v41  ;;  %v2432_v15 = vld [vmem:[#allocation2 + $0x81] sm:$0xff] }
 0x2bd   : > { %3877 = vmatmul.msk.bf16.gmra.mxu2 %vm762_vm1, %v2692_v50  ;;  %v2429_v50 = vld [vmem:[#allocation2 + $0x61] sm:$0xff] }
 0x2c0   : > { %v1889_v10 = vpop.f32.mrf.mxu2 }
 0x2c1   : > { %v1942_v40 = vadd.f32 %v1889_v10, %v1708_v30  ;;  %v2123_v53 = vpop.f32.mrf.mxu3  ;;  %v1657_v47 = vpop.f32.mrf.mxu1  ;;  %v2459_v30 = vpack.c.bf16 %v2430_v13, %v2429_v50 }
 0x2c2   : > { %v1709_v62 = vadd.f32 %v1657_v47, %v4854_v35 }
 0x2c3   : > { %v5109_v51 = vadd.f32 %v2123_v53, %v1942_v40 }
 0x2c8   : > { %v1891_v31 = vpop.f32.mrf.mxu2 }
 0x2c9   : > { %v5112_v12 = vadd.f32 %v1891_v31, %v1709_v62  ;;  %v5114_v57 = vpop.f32.mrf.mxu3  ;;  %v1660_v21 = vpop.f32.mrf.mxu1 }
 0x2ca   : > { %5771 = vst [vmem:[#allocation38_spill] sm:$0xff] %v5114_v57  ;;  %v1710_v6 = vadd.f32 %v1660_v21, %v4862_v7  ;;  %v5124_v62 = vpop.f32.mrf.mxu0  ;;  %v2665_v57 = vld [vmem:[#allocation2 + $0x7a] sm:$0xff]  ;;  %v2666_v7 = vld [vmem:[#allocation2 + $0x82] sm:$0xff] }
 0x2cb   : > { %5773 = vst [vmem:[#allocation40_spill] sm:$0xff] %v5124_v62  ;;  %v2431_v21 = vld [vmem:[#allocation2 + $0x79] sm:$0xff] }
 0x2cc   : > { %3850 = vmatmul.msk.bf16.gmra.mxu1 %vm762_vm1, %v2459_v30  ;;  %v2694_v30 = vpack.c.bf16 %v2666_v7, %v2665_v57  ;;  %v2434_v62 = vld [vmem:[#allocation2 + $0x99] sm:$0xff] }
 0x2cd   : > { %3878 = vmatmul.msk.bf16.gmra.mxu2 %vm762_vm1, %v2693_v18 }
 0x2d0   : > { %v1894_v35 = vpop.f32.mrf.mxu2 }
 0x2d1   : > { %v1944_v47 = vadd.f32 %v1894_v35, %v1710_v6  ;;  %v2128_v10 = vpop.f32.mrf.mxu3  ;;  %v1662_v40 = vpop.f32.mrf.mxu1  ;;  %v2460_v6 = vpack.c.bf16 %v2432_v15, %v2431_v21  ;;  %v2433_v21 = vld [vmem:[#allocation2 + $0x91] sm:$0xff] }
 0x2d2   : > { %v1711_v53 = vadd.f32 %v1662_v40, %v4868_v14  ;;  %v5133_v14 = vpop.f32.mrf.mxu0 }
 0x2d3   : > { %v5121_v31 = vadd.f32 %v2128_v10, %v1944_v47  ;;  %5775 = vst [vmem:[#allocation42_spill] sm:$0xff] %v5133_v14 }
 0x2d8   : > { %v1896_v26 = vpop.f32.mrf.mxu2 }
 0x2d9   : > { %v5126_v13 = vadd.f32 %v1896_v26, %v1711_v53  ;;  %v5128_v41 = vpop.f32.mrf.mxu3  ;;  %v1665_v24 = vpop.f32.mrf.mxu1 }
 0x2da   : > { %5774 = vst [vmem:[#allocation41_spill] sm:$0xff] %v5128_v41  ;;  %v1712_v50 = vadd.f32 %v1665_v24, %v4878_v49  ;;  %v2667_v41 = vld [vmem:[#allocation2 + $0x92] sm:$0xff]  ;;  %v2668_v49 = vld [vmem:[#allocation2 + $0x9a] sm:$0xff]  ;;  %v5138_v15 = vpop.f32.mrf.mxu0 }
 0x2db   : > { %5776 = vst [vmem:[#allocation43_spill] sm:$0xff] %v5138_v15 }
 0x2dc   : > { %3851 = vmatmul.msk.bf16.gmra.mxu1 %vm762_vm1, %v2460_v6  ;;  %v2461_v6 = vpack.c.bf16 %v2434_v62, %v2433_v21  ;;  %v2670_v21 = vld [vmem:[#allocation2 + $0xb2] sm:$0xff] }
 0x2dd   : > { %3879 = vmatmul.msk.bf16.gmra.mxu2 %vm762_vm1, %v2694_v30  ;;  %v2695_v30 = vpack.c.bf16 %v2668_v49, %v2667_v41  ;;  %v2436_v49 = vld [vmem:[#allocation2 + $0xb1] sm:$0xff] }
 0x2e0   : > { %v1899_v18 = vpop.f32.mrf.mxu2 }
 0x2e1   : > { %v1946_v35 = vadd.f32 %v1899_v18, %v1712_v50  ;;  %v2133_v47 = vpop.f32.mrf.mxu3  ;;  %v1667_v10 = vpop.f32.mrf.mxu1 }
 0x2e2   : > { %v1713_v40 = vadd.f32 %v1667_v10, %v4882_v39  ;;  %v3978_v39 = vld [vmem:[%s5682_s10] sm:$0xff]  ;;  %v5777_v10 = vld [vmem:[#allocation8_spill] sm:$0xff] }
 0x2e3   : > { %v5135_v26 = vadd.f32 %v2133_v47, %v1946_v35  ;;  %3277 = vmatpush.bf16.msra.mxu0 %v3978_v39  ;;  %v2435_v39 = vld [vmem:[#allocation2 + $0xa9] sm:$0xff] }
 0x2e6   : > { %3932 = vmatmul.msk.bf16.vlgmr.msra.gmra.mxu0 %vm520_vm0, %v5777_v10  ;;  %v2462_v10 = vpack.c.bf16 %v2436_v49, %v2435_v39 }
 0x2e8   : > { %v1901_v53 = vpop.f32.mrf.mxu2 }
 0x2e9   : > { %v5140_v57 = vadd.f32 %v1901_v53, %v1713_v40  ;;  %v5142_v7 = vpop.f32.mrf.mxu3  ;;  %v1670_v24 = vpop.f32.mrf.mxu1 }
 0x2ea   : > { %v1714_v50 = vadd.f32 %v1670_v24, %v4892_v20  ;;  %v5152_v53 = vpop.f32.mrf.mxu0  ;;  %v2669_v24 = vld [vmem:[#allocation2 + $0xaa] sm:$0xff] }
 0x2eb   : > { %5778 = vst [vmem:[#allocation8_spill] sm:$0xff] %v5152_v53  ;;  %v2696_v15 = vpack.c.bf16 %v2670_v21, %v2669_v24  ;;  %v2438_v24 = vld [vmem:[#allocation2 + $0xc9] sm:$0xff] }
 0x2ec   : > { %3852 = vmatmul.msk.bf16.gmra.mxu1 %vm762_vm1, %v2461_v6  ;;  %v2671_v21 = vld [vmem:[#allocation2 + $0xc2] sm:$0xff] }
 0x2ed   : > { %3880 = vmatmul.msk.bf16.gmra.mxu2 %vm762_vm1, %v2695_v30 }
 0x2f0   : > { %v1904_v18 = vpop.f32.mrf.mxu2 }
 0x2f1   : > { %v1948_v35 = vadd.f32 %v1904_v18, %v1714_v50  ;;  %v2138_v47 = vpop.f32.mrf.mxu3  ;;  %v1672_v40 = vpop.f32.mrf.mxu1 }
 0x2f2   : > { %v1715_v62 = vadd.f32 %v1672_v40, %v4898_v23  ;;  %v5162_v14 = vpop.f32.mrf.mxu0  ;;  %v5780_v40 = vld [vmem:[#allocation9_spill] sm:$0xff] }
 0x2f3   : > { %v5154_v20 = vadd.f32 %v2138_v47, %v1948_v35  ;;  %5779 = vst [vmem:[#allocation44_spill] sm:$0xff] %v5162_v14 }
 0x2f6   : > { %3933 = vmatmul.msk.bf16.gmra.mxu0 %vm520_vm0, %v5780_v40 }
 0x2f8   : > { %v1906_v41 = vpop.f32.mrf.mxu2 }
 0x2f9   : > { %v5157_v6 = vadd.f32 %v1906_v41, %v1715_v62  ;;  %v5159_v30 = vpop.f32.mrf.mxu3  ;;  %v1675_v50 = vpop.f32.mrf.mxu1 }
 0x2fa   : > { %v1716_v18 = vadd.f32 %v1675_v50, %v4906_v33  ;;  %v5171_v33 = vpop.f32.mrf.mxu0  ;;  %v2672_v50 = vld [vmem:[#allocation2 + $0xca] sm:$0xff] }
 0x2fb   : > { %5781 = vst [vmem:[#allocation9_spill] sm:$0xff] %v5171_v33  ;;  %v2697_v14 = vpack.c.bf16 %v2672_v50, %v2671_v21  ;;  %v5784_v33 = vld [vmem:[#allocation10_spill] sm:$0xff] }
 0x2fc   : > { %3853 = vmatmul.msk.bf16.gmra.mxu1 %vm762_vm1, %v2462_v10  ;;  %v2437_v10 = vld [vmem:[#allocation2 + $0xc1] sm:$0xff] }
 0x2fd   : > { %3881 = vmatmul.msk.bf16.gmra.mxu2 %vm762_vm1, %v2696_v15  ;;  %v2463_v40 = vpack.c.bf16 %v2438_v24, %v2437_v10  ;;  %v2440_v24 = vld [vmem:[#allocation2 + $0xe1] sm:$0xff] }
 0x2fe   : > { %v2673_v21 = vld [vmem:[#allocation2 + $0xda] sm:$0xff]  ;;  %v2674_v50 = vld [vmem:[#allocation2 + $0xe2] sm:$0xff] }
 0x300   : > { %v1909_v23 = vpop.f32.mrf.mxu2 }
 0x301   : > { %v1950_v35 = vadd.f32 %v1909_v23, %v1716_v18  ;;  %v2143_v47 = vpop.f32.mrf.mxu3  ;;  %v1677_v62 = vpop.f32.mrf.mxu1 }
 0x302   : > { %v1717_v53 = vadd.f32 %v1677_v62, %v4908_v9  ;;  %v2383_v9 = vpop.f32.mrf.mxu0 }
 0x303   : > { %v5168_v41 = vadd.f32 %v2143_v47, %v1950_v35 }
 0x306   : > { %3934 = vmatmul.msk.bf16.gmra.mxu0 %vm520_vm0, %v5784_v33 }
 0x308   : > { %v1911_v49 = vpop.f32.mrf.mxu2 }
 0x309   : > { %v5173_v39 = vadd.f32 %v1911_v49, %v1717_v53  ;;  %v5175_v15 = vpop.f32.mrf.mxu3  ;;  %v1680_v18 = vpop.f32.mrf.mxu1 }
 0x30a   : > { %5783 = vst [vmem:[#allocation46_spill] sm:$0xff] %v5175_v15  ;;  %v1718_v23 = vadd.f32 %v1680_v18, %v4919_v58  ;;  %v5185_v18 = vpop.f32.mrf.mxu0 }
 0x30b   : > { %5782 = vst [vmem:[#allocation45_spill] sm:$0xff] %v5173_v39 }
 0x30c   : > { %3854 = vmatmul.msk.bf16.gmra.mxu1 %vm762_vm1, %v2463_v40  ;;  %5786 = vst [vmem:[#allocation47_spill] sm:$0xff] %v5185_v18  ;;  %v2439_v40 = vld [vmem:[#allocation2 + $0xd9] sm:$0xff] }
 0x30d   : > { %3882 = vmatmul.msk.bf16.gmra.mxu2 %vm762_vm1, %v2697_v14 }
 0x310   : > { %v1914_v35 = vpop.f32.mrf.mxu2 }
 0x311   : > { %v1952_v47 = vadd.f32 %v1914_v35, %v1718_v23  ;;  %v2148_v62 = vpop.f32.mrf.mxu3  ;;  %v1682_v53 = vpop.f32.mrf.mxu1  ;;  %v2464_v35 = vpack.c.bf16 %v2440_v24, %v2439_v40  ;;  %v2442_v24 = vld [vmem:[#allocation2 + $0xf9] sm:$0xff] }
 0x312   : > { %v1719_v15 = vadd.f32 %v1682_v53, %v4924_v54  ;;  %v5787_v53 = vld [vmem:[#allocation11_spill] sm:$0xff] }
 0x313   : > { %v2186_v49 = vadd.f32 %v2148_v62, %v1952_v47  ;;  %v2698_v47 = vpack.c.bf16 %v2674_v50, %v2673_v21  ;;  %v2388_v62 = vpop.f32.mrf.mxu0  ;;  %v2675_v21 = vld [vmem:[#allocation2 + $0xf2] sm:$0xff]  ;;  %v2676_v50 = vld [vmem:[#allocation2 + $0xfa] sm:$0xff] }
 0x315   : > { %v5183_v39 = vadd.f32 %v2383_v9, %v2186_v49 }
 0x316   : > { %3935 = vmatmul.msk.bf16.gmra.mxu0 %vm520_vm0, %v5787_v53 }
 0x317   : > { %5785 = vst [vmem:[#allocation10_spill] sm:$0xff] %v5183_v39 }
 0x318   : > { %v1916_v58 = vpop.f32.mrf.mxu2 }
 0x319   : > { %v5187_v14 = vadd.f32 %v1916_v58, %v1719_v15  ;;  %v5189_v10 = vpop.f32.mrf.mxu3  ;;  %v1685_v23 = vpop.f32.mrf.mxu1 }
 0x31a   : > { %v1720_v33 = vadd.f32 %v1685_v23, %v4934_v29 }
 0x31c   : > { %3855 = vmatmul.msk.bf16.gmra.mxu1 %vm762_vm1, %v2464_v35  ;;  %v2441_v35 = vld [vmem:[#allocation2 + $0xf1] sm:$0xff] }
 0x31d   : > { %3883 = vmatmul.msk.bf16.gmra.mxu2 %vm762_vm1, %v2698_v47  ;;  %v2699_v47 = vpack.c.bf16 %v2676_v50, %v2675_v21  ;;  %v2677_v21 = vld [vmem:[#allocation2 + $0x10a] sm:$0xff]  ;;  %v2678_v50 = vld [vmem:[#allocation2 + $0x112] sm:$0xff] }
 0x320   : > { %v1919_v54 = vpop.f32.mrf.mxu2 }
 0x321   : > { %v1954_v9 = vadd.f32 %v1919_v54, %v1720_v33  ;;  %v2153_v15 = vpop.f32.mrf.mxu3  ;;  %v1687_v49 = vpop.f32.mrf.mxu1  ;;  %v2465_v33 = vpack.c.bf16 %v2442_v24, %v2441_v35  ;;  %v2393_v54 = vadd.f32 %v4866_v46, %v4956_v60  ;;  %v5218_v46 = vld [vmem:[%s5678_s6] ss:$0 sm:$0xff]  ;;  %v2444_v24 = vld [vmem:[#allocation2 + $0x111] sm:$0xff] }
 0x322   : > { %v1721_v18 = vadd.f32 %v1687_v49, %v4941_v4  ;;  %v2394_v49 = vadd.f32 %v4876_v17, %v4960_v56  ;;  %v2700_v56 = vpack.c.bf16 %v2678_v50, %v2677_v21  ;;  %v2396_v21 = vadd.f32 %v4894_v59, %v4976_v28 }
 0x323   : > { %v2188_v58 = vadd.f32 %v2153_v15, %v1954_v9 }
 0x325   : > { %v5197_v39 = vadd.f32 %v2388_v62, %v2188_v58  ;;  %v5788_v62 = vld [vmem:[#allocation12_spill] sm:$0xff] }
 0x326   : > { %3936 = vmatmul.msk.bf16.gmra.mxu0 %vm520_vm0, %v5788_v62 }
 0x328   : > { %v1921_v29 = vpop.f32.mrf.mxu2 }
 0x329   : > { %v5199_v23 = vadd.f32 %v1921_v29, %v1721_v18  ;;  %v2547_v40 = vpop.f32.mrf.mxu1  ;;  %v5210_v18 = vld [vmem:[%s5677_s5] ss:$0 sm:$0xff] }
 0x32a   : > { %v2627_v9 = vadd.f32 %v2547_v40, %v2393_v54 }
 0x32c   : > { %3856 = vmatmul.msk.bf16.gmra.mxu1 %vm762_vm1, %v2465_v33  ;;  %v2443_v33 = vld [vmem:[#allocation2 + $0x109] sm:$0xff] }
 0x32d   : > { %3884 = vmatmul.msk.bf16.gmra.mxu2 %vm762_vm1, %v2699_v47  ;;  %v2466_v17 = vpack.c.bf16 %v2444_v24, %v2443_v33 }
 0x330   : > { %v2781_v4 = vpop.f32.mrf.mxu2 }
 0x331   : > { %v2549_v53 = vpop.f32.mrf.mxu1  ;;  %v2861_v15 = vadd.f32 %v2781_v4, %v2627_v9 }
 0x332   : > { %v2628_v60 = vadd.f32 %v2549_v53, %v2394_v49  ;;  %v2395_v53 = vadd.f32 %v4884_v25, %v4971_v0  ;;  %v2680_v25 = vld [vmem:[#allocation2 + $0x12a] sm:$0xff] }
 0x333   : > { %v2897_v58 = vmul.f32 %v5210_v18, %v2861_v15 }
 0x335   : > { %v2933_v47 = vadd.f32 %v5218_v46, %v2897_v58 }
 0x337   : > { %v2965_v9 = vmax.f32 %v2933_v47, 0.0  ;;  %v2446_v47 = vld [vmem:[#allocation2 + $0x129] sm:$0xff] }
 0x338   : > { %v2783_v29 = vpop.f32.mrf.mxu2 }
 0x339   : > { %v2862_v40 = vadd.f32 %v2783_v29, %v2628_v60  ;;  %v2552_v35 = vpop.f32.mrf.mxu1  ;;  %v5789_v29 = vld [vmem:[#allocation13_spill] sm:$0xff] }
 0x33a   : > { %v2629_v60 = vadd.f32 %v2552_v35, %v2395_v53  ;;  %3937 = vmatmul.msk.bf16.gmra.mxu0 %vm520_vm0, %v5789_v29  ;;  %v2445_v35 = vld [vmem:[#allocation2 + $0x121] sm:$0xff] }
 0x33b   : > { %v2898_v54 = vmul.f32 %v5210_v18, %v2862_v40 }
 0x33c   : > { %3857 = vmatmul.msk.bf16.gmra.mxu1 %vm762_vm1, %v2466_v17 }
 0x33d   : > { %v2934_v4 = vadd.f32 %v5218_v46, %v2898_v54  ;;  %3885 = vmatmul.msk.bf16.gmra.mxu2 %vm762_vm1, %v2700_v56  ;;  %v2679_v54 = vld [vmem:[#allocation2 + $0x122] sm:$0xff] }
 0x33f   : > { %v2966_v62 = vmax.f32 %v2934_v4, 0.0 }
 0x340   : > { %v2786_v15 = vpop.f32.mrf.mxu2 }
 0x341   : > { %v2997_v49 = vpack.c.bf16 %v2966_v62, %v2965_v9  ;;  %v2554_v58 = vpop.f32.mrf.mxu1  ;;  %v2863_v24 = vadd.f32 %v2786_v15, %v2629_v60  ;;  %v2467_v9 = vpack.c.bf16 %v2446_v47, %v2445_v35  ;;  %v2701_v62 = vpack.c.bf16 %v2680_v25, %v2679_v54  ;;  %v2448_v54 = vld [vmem:[#allocation2 + $0x141] sm:$0xff] }
 0x342   : > { %v2630_v40 = vadd.f32 %v2554_v58, %v2396_v21  ;;  %v2397_v15 = vadd.f32 %v4932_v42, %v4987_v45  ;;  %v5790_v58 = vld [vmem:[#allocation14_spill] sm:$0xff] }
 0x343   : > { %3900 = vmatmul.msk.bf16.vlgmr.msra.gmra.mxu3 %vm762_vm1, %v2997_v49  ;;  %v2899_v50 = vmul.f32 %v5210_v18, %v2863_v24  ;;  %v2681_v25 = vld [vmem:[#allocation2 + $0x13a] sm:$0xff]  ;;  %v2682_v42 = vld [vmem:[#allocation2 + $0x142] sm:$0xff] }
 0x345   : > { %v2935_v56 = vadd.f32 %v5218_v46, %v2899_v50  ;;  %v2398_v50 = vadd.f32 %v4939_v38, %v4990_v34 }
 0x347   : > { %v2967_v59 = vmax.f32 %v2935_v56, 0.0 }
 0x348   : > { %v2788_v33 = vpop.f32.mrf.mxu2 }
 0x349   : > { %v2864_v0 = vadd.f32 %v2788_v33, %v2630_v40  ;;  %v2557_v17 = vpop.f32.mrf.mxu1 }
 0x34a   : > { %v2631_v60 = vadd.f32 %v2557_v17, %v2397_v15  ;;  %3938 = vmatmul.msk.bf16.gmra.mxu0 %vm520_vm0, %v5790_v58  ;;  %v2447_v17 = vld [vmem:[#allocation2 + $0x139] sm:$0xff]  ;;  %v2400_v58 = vadd.f32 %v4969_v36, %v5006_v55 }
 0x34b   : > { %v2900_v4 = vmul.f32 %v5210_v18, %v2864_v0 }
 0x34c   : > { %3858 = vmatmul.msk.bf16.gmra.mxu1 %vm762_vm1, %v2467_v9  ;;  %v2702_v9 = vpack.c.bf16 %v2682_v42, %v2681_v25 }
 0x34d   : > { %v2936_v53 = vadd.f32 %v5218_v46, %v2900_v4  ;;  %3886 = vmatmul.msk.bf16.gmra.mxu2 %vm762_vm1, %v2701_v62  ;;  %v2468_v4 = vpack.c.bf16 %v2448_v54, %v2447_v17  ;;  %v2449_v54 = vld [vmem:[#allocation2 + $0x151] sm:$0xff] }
 0x34f   : > { %v2968_v28 = vmax.f32 %v2936_v53, 0.0  ;;  %v2399_v53 = vadd.f32 %v4958_v22, %v5001_v43  ;;  %v2684_v22 = vld [vmem:[#allocation2 + $0x15a] sm:$0xff] }
 0x350   : > { %v2791_v49 = vpop.f32.mrf.mxu2 }
 0x351   : > { %v2998_v29 = vpack.c.bf16 %v2968_v28, %v2967_v59  ;;  %v2559_v24 = vpop.f32.mrf.mxu1  ;;  %v2865_v21 = vadd.f32 %v2791_v49, %v2631_v60  ;;  %v5791_v49 = vld [vmem:[#allocation15_spill] sm:$0xff] }
 0x352   : > { %v2632_v33 = vadd.f32 %v2559_v24, %v2398_v50 }
 0x353   : > { %3901 = vmatmul.msk.bf16.gmra.mxu3 %vm762_vm1, %v2998_v29  ;;  %v2901_v40 = vmul.f32 %v5210_v18, %v2865_v21 }
 0x355   : > { %v2937_v35 = vadd.f32 %v5218_v46, %v2901_v40  ;;  %v2450_v40 = vld [vmem:[#allocation2 + $0x159] sm:$0xff] }
 0x357   : > { %v2969_v38 = vmax.f32 %v2937_v35, 0.0  ;;  %v2401_v35 = vadd.f32 %v4974_v8, %v5021_v2  ;;  %v2452_v8 = vld [vmem:[#allocation2 + $0x171] sm:$0xff] }
 0x358   : > { %v2793_v47 = vpop.f32.mrf.mxu2  ;;  %v2685_v2 = vld [vmem:[#allocation2 + $0x16a] sm:$0xff] }
 0x359   : > { %v2866_v45 = vadd.f32 %v2793_v47, %v2632_v33  ;;  %v2562_v0 = vpop.f32.mrf.mxu1  ;;  %v2683_v33 = vld [vmem:[#allocation2 + $0x152] sm:$0xff] }
 0x35a   : > { %v2633_v28 = vadd.f32 %v2562_v0, %v2399_v53  ;;  %3939 = vmatmul.msk.bf16.gmra.mxu0 %vm520_vm0, %v5791_v49  ;;  %v2703_v0 = vpack.c.bf16 %v2684_v22, %v2683_v33  ;;  %v2403_v22 = vadd.f32 %v4993_v48, %v5037_v52 }
 0x35b   : > { %v2902_v56 = vmul.f32 %v5210_v18, %v2866_v45  ;;  %v2469_v45 = vpack.c.bf16 %v2450_v40, %v2449_v54 }
 0x35c   : > { %3859 = vmatmul.msk.bf16.gmra.mxu1 %vm762_vm1, %v2468_v4  ;;  %v2167_v4 = vadd.f32 %v5026_v27, %v5024_v5  ;;  %v2451_v27 = vld [vmem:[#allocation2 + $0x169] sm:$0xff] }
 0x35d   : > { %v2938_v62 = vadd.f32 %v5218_v46, %v2902_v56  ;;  %3887 = vmatmul.msk.bf16.gmra.mxu2 %vm762_vm1, %v2702_v9 }
 0x35f   : > { %v2970_v34 = vmax.f32 %v2938_v62, 0.0 }
 0x360   : > { %v2796_v59 = vpop.f32.mrf.mxu2 }
 0x361   : > { %v2999_v15 = vpack.c.bf16 %v2970_v34, %v2969_v38  ;;  %v2564_v60 = vpop.f32.mrf.mxu1  ;;  %v2867_v29 = vadd.f32 %v2796_v59, %v2633_v28  ;;  %v5792_v38 = vld [vmem:[#allocation16_spill] sm:$0xff]  ;;  %v2402_v59 = vadd.f32 %v4985_v19, %v2167_v4 }
 0x362   : > { %v2634_v21 = vadd.f32 %v2564_v60, %v2400_v58  ;;  %v2686_v60 = vld [vmem:[#allocation2 + $0x172] sm:$0xff] }
 0x363   : > { %3902 = vmatmul.msk.bf16.gmra.mxu3 %vm762_vm1, %v2999_v15  ;;  %v2903_v24 = vmul.f32 %v5210_v18, %v2867_v29 }
 0x365   : > { %v2939_v25 = vadd.f32 %v5218_v46, %v2903_v24 }
 0x367   : > { %v2971_v36 = vmax.f32 %v2939_v25, 0.0 }
 0x368   : > { %v2798_v50 = vpop.f32.mrf.mxu2 }
 0x369   : > { %v2868_v43 = vadd.f32 %v2798_v50, %v2634_v21  ;;  %v2567_v47 = vpop.f32.mrf.mxu1  ;;  %v2470_v21 = vpack.c.bf16 %v2452_v8, %v2451_v27  ;;  %v2704_v50 = vpack.c.bf16 %v2686_v60, %v2685_v2  ;;  %v2456_v8 = vld [vmem:[#allocation2 + $0x1a1] sm:$0xff] }
 0x36a   : > { %v2635_v9 = vadd.f32 %v2567_v47, %v2401_v35  ;;  %3940 = vmatmul.msk.bf16.gmra.mxu0 %vm520_vm0, %v5792_v38  ;;  %v2169_v47 = vadd.f32 %v5045_v32, %v5043_v63  ;;  %v2171_v38 = vadd.f32 %v5063_v61, %v5061_v16  ;;  %v2689_v2 = vld [vmem:[#allocation2 + $0x19a] sm:$0xff]  ;;  %v2690_v60 = vld [vmem:[#allocation2 + $0x1a2] sm:$0xff] }
 0x36b   : > { %v2904_v42 = vmul.f32 %v5210_v18, %v2868_v43  ;;  %v2706_v27 = vpack.c.bf16 %v2690_v60, %v2689_v2  ;;  %v5805_v2 = vld [vmem:[#allocation36_spill] sm:$0xff] }
 0x36c   : > { %3860 = vmatmul.msk.bf16.gmra.mxu1 %vm762_vm1, %v2469_v45 }
 0x36d   : > { %v2940_v17 = vadd.f32 %v5218_v46, %v2904_v42  ;;  %3888 = vmatmul.msk.bf16.gmra.mxu2 %vm762_vm1, %v2703_v0  ;;  %v5793_v42 = vld [vmem:[#allocation17_spill] sm:$0xff] }
 0x36f   : > { %v2972_v55 = vmax.f32 %v2940_v17, 0.0  ;;  %v2404_v17 = vadd.f32 %v5004_v11, %v2169_v47 }
 0x370   : > { %v2801_v56 = vpop.f32.mrf.mxu2 }
 0x371   : > { %v3000_v62 = vpack.c.bf16 %v2972_v55, %v2971_v36  ;;  %v2569_v34 = vpop.f32.mrf.mxu1  ;;  %v2869_v53 = vadd.f32 %v2801_v56, %v2635_v9  ;;  %v2405_v9 = vadd.f32 %v5019_v1, %v5056_v44 }
 0x372   : > { %v2636_v15 = vadd.f32 %v2569_v34, %v2402_v59  ;;  %v5794_v59 = vld [vmem:[#allocation18_spill] sm:$0xff] }
 0x373   : > { %3903 = vmatmul.msk.bf16.gmra.mxu3 %vm762_vm1, %v3000_v62  ;;  %v2905_v28 = vmul.f32 %v5210_v18, %v2869_v53 }
 0x375   : > { %v2941_v58 = vadd.f32 %v5218_v46, %v2905_v28 }
 0x377   : > { %v2973_v19 = vmax.f32 %v2941_v58, 0.0 }
 0x378   : > { %v2803_v49 = vpop.f32.mrf.mxu2 }
 0x379   : > { %v2870_v29 = vadd.f32 %v2803_v49, %v2636_v15  ;;  %v2572_v5 = vpop.f32.mrf.mxu1  ;;  %v2455_v49 = vld [vmem:[#allocation2 + $0x199] sm:$0xff] }
 0x37a   : > { %v2637_v25 = vadd.f32 %v2572_v5, %v2403_v22  ;;  %3941 = vmatmul.msk.bf16.gmra.mxu0 %vm520_vm0, %v5793_v42  ;;  %v2472_v5 = vpack.c.bf16 %v2456_v8, %v2455_v49  ;;  %v5797_v22 = vld [vmem:[#allocation26_spill] sm:$0xff]  ;;  %v5799_v42 = vld [vmem:[#allocation29_spill] sm:$0xff] }
 0x37b   : > { %v2906_v24 = vmul.f32 %v5210_v18, %v2870_v29  ;;  %v5303_v29 = vpop.f32.mrf.mxu0  ;;  %v5804_v8 = vld [vmem:[#allocation33_spill] sm:$0xff] }
 0x37c   : > { %3861 = vmatmul.msk.bf16.gmra.mxu1 %vm762_vm1, %v2470_v21  ;;  %v2175_v60 = vadd.f32 %v5805_v2, %v5804_v8 }
 0x37d   : > { %v2942_v40 = vadd.f32 %v5218_v46, %v2906_v24  ;;  %3889 = vmatmul.msk.bf16.gmra.mxu2 %vm762_vm1, %v2704_v50 }
 0x37f   : > { %v2974_v33 = vmax.f32 %v2942_v40, 0.0 }
 0x380   : > { %v2806_v43 = vpop.f32.mrf.mxu2 }
 0x381   : > { %v3001_v54 = vpack.c.bf16 %v2974_v33, %v2973_v19  ;;  %v2574_v45 = vpop.f32.mrf.mxu1  ;;  %v2871_v0 = vadd.f32 %v2806_v43, %v2637_v25  ;;  %v5796_v33 = vld [vmem:[#allocation30_spill] sm:$0xff]  ;;  %v5798_v25 = vld [vmem:[#allocation31_spill] sm:$0xff] }
 0x382   : > { %v2638_v55 = vadd.f32 %v2574_v45, %v2404_v17  ;;  %v2407_v43 = vadd.f32 %v5797_v22, %v5796_v33  ;;  %v2173_v45 = vadd.f32 %v5799_v42, %v5798_v25  ;;  %v5340_v25 = vpop.f32.mrf.mxu3 }
 0x383   : > { %3904 = vmatmul.msk.bf16.gmra.mxu3 %vm762_vm1, %v3001_v54  ;;  %v2907_v36 = vmul.f32 %v5210_v18, %v2871_v0  ;;  %v3279_v54 = vpop.f32.mrf.mxu0 }
 0x385   : > { %v2943_v56 = vadd.f32 %v5218_v46, %v2907_v36  ;;  %v5800_v36 = vld [vmem:[#allocation19_spill] sm:$0xff] }
 0x387   : > { %v2975_v4 = vmax.f32 %v2943_v56, 0.0 }
 0x388   : > { %v2808_v35 = vpop.f32.mrf.mxu2 }
 0x389   : > { %v2872_v48 = vadd.f32 %v2808_v35, %v2638_v55  ;;  %v2577_v52 = vpop.f32.mrf.mxu1 }
 0x38a   : > { %v2639_v53 = vadd.f32 %v2577_v52, %v2405_v9  ;;  %3942 = vmatmul.msk.bf16.gmra.mxu0 %vm520_vm0, %v5794_v59 }
 0x38b   : > { %v2908_v63 = vmul.f32 %v5210_v18, %v2872_v48  ;;  %v5801_v48 = vld [vmem:[#allocation27_spill] sm:$0xff] }
 0x38c   : > { %3862 = vmatmul.msk.bf16.gmra.mxu1 %vm762_vm1, %v5066_v3  ;;  %v5795_v3 = vld [vmem:[#allocation24_spill] sm:$0xff]  ;;  %v2408_v52 = vadd.f32 %v5801_v48, %v2173_v45  ;;  %v5809_v48 = vld [vmem:[#allocation38_spill] sm:$0xff] }
 0x38d   : > { %v2944_v32 = vadd.f32 %v5218_v46, %v2908_v63  ;;  %3890 = vmatmul.msk.bf16.gmra.mxu2 %vm762_vm1, %v5068_v37  ;;  %v2406_v37 = vadd.f32 %v5795_v3, %v2171_v38 }
 0x38f   : > { %v2976_v11 = vmax.f32 %v2944_v32, 0.0 }
 0x390   : > { %v2811_v62 = vpop.f32.mrf.mxu2 }
 0x391   : > { %v3002_v34 = vpack.c.bf16 %v2976_v11, %v2975_v4  ;;  %v2579_v28 = vpop.f32.mrf.mxu1  ;;  %v2873_v15 = vadd.f32 %v2811_v62, %v2639_v53  ;;  %v5319_v4 = vpop.f32.mrf.mxu0 }
 0x392   : > { %v2640_v44 = vadd.f32 %v2579_v28, %v2406_v37  ;;  %v5802_v28 = vld [vmem:[#allocation34_spill] sm:$0xff] }
 0x393   : > { %3905 = vmatmul.msk.bf16.gmra.mxu3 %vm762_vm1, %v3002_v34  ;;  %v2909_v1 = vmul.f32 %v5210_v18, %v2873_v15  ;;  %v5803_v15 = vld [vmem:[#allocation25_spill] sm:$0xff] }
 0x394   : > { %v2409_v3 = vadd.f32 %v5803_v15, %v5802_v28 }
 0x395   : > { %v2945_v24 = vadd.f32 %v5218_v46, %v2909_v1 }
 0x397   : > { %v2977_v40 = vmax.f32 %v2945_v24, 0.0 }
 0x398   : > { %v2813_v16 = vpop.f32.mrf.mxu2 }
 0x399   : > { %v2874_v61 = vadd.f32 %v2813_v16, %v2640_v44  ;;  %v2582_v58 = vpop.f32.mrf.mxu1  ;;  %v5326_v49 = vpop.f32.mrf.mxu0  ;;  %v5806_v16 = vld [vmem:[#allocation20_spill] sm:$0xff] }
 0x39a   : > { %v2641_v17 = vadd.f32 %v2582_v58, %v2407_v43  ;;  %3943 = vmatmul.msk.bf16.gmra.mxu0 %vm520_vm0, %v5800_v36  ;;  %v5347_v36 = vld [vmem:[%s5683_s11] ss:$0 sm:$0xff] }
 0x39b   : > { %v2910_v21 = vmul.f32 %v5210_v18, %v2874_v61 }
 0x39c   : > { %3863 = vmatmul.msk.bf16.gmra.mxu1 %vm762_vm1, %v2472_v5 }
 0x39d   : > { %v2946_v50 = vadd.f32 %v5218_v46, %v2910_v21  ;;  %3891 = vmatmul.msk.bf16.gmra.mxu2 %vm762_vm1, %v2706_v27  ;;  %v5807_v27 = vld [vmem:[#allocation28_spill] sm:$0xff] }
 0x39e   : > { %v2410_v58 = vadd.f32 %v5807_v27, %v2175_v60  ;;  %v3364_v27 = vmul.f32 %v5347_v36, %v5319_v4 }
 0x39f   : > { %v2978_v19 = vmax.f32 %v2946_v50, 0.0 }
 0x3a0   : > { %v2816_v47 = vpop.f32.mrf.mxu2 }
 0x3a1   : > { %v3003_v0 = vpack.c.bf16 %v2978_v19, %v2977_v40  ;;  %v2584_v55 = vpop.f32.mrf.mxu1  ;;  %v2875_v35 = vadd.f32 %v2816_v47, %v2641_v17  ;;  %v5335_v40 = vpop.f32.mrf.mxu0 }
 0x3a2   : > { %v2642_v63 = vadd.f32 %v2584_v55, %v2408_v52  ;;  %v2177_v52 = vadd.f32 %v5809_v48, %v5112_v12  ;;  %v5365_v12 = vld [vmem:[%s5680_s8] ss:$0 sm:$0xff] }
 0x3a3   : > { %3906 = vmatmul.msk.bf16.gmra.mxu3 %vm762_vm1, %v3003_v0  ;;  %v2911_v56 = vmul.f32 %v5210_v18, %v2875_v35  ;;  %v5808_v0 = vld [vmem:[#allocation32_spill] sm:$0xff]  ;;  %v5814_v48 = vld [vmem:[#allocation22_spill] sm:$0xff] }
 0x3a4   : > { %v2411_v17 = vadd.f32 %v5808_v0, %v5109_v51  ;;  %v3363_v51 = vmul.f32 %v5347_v36, %v3279_v54 }
 0x3a5   : > { %v2947_v62 = vadd.f32 %v5218_v46, %v2911_v56 }
 0x3a7   : > { %v2979_v53 = vmax.f32 %v2947_v62, 0.0 }
 0x3a8   : > { %v2818_v32 = vpop.f32.mrf.mxu2 }
 0x3a9   : > { %v2876_v11 = vadd.f32 %v2818_v32, %v2642_v63  ;;  %v2587_v9 = vpop.f32.mrf.mxu1  ;;  %v5349_v35 = vpop.f32.mrf.mxu0  ;;  %v5810_v32 = vld [vmem:[#allocation21_spill] sm:$0xff] }
 0x3aa   : > { %v2643_v44 = vadd.f32 %v2587_v9, %v2409_v3  ;;  %3944 = vmatmul.msk.bf16.gmra.mxu0 %vm520_vm0, %v5806_v16  ;;  %v5359_v9 = vld [vmem:[%s5684_s12] ss:$0 sm:$0xff] }
 0x3ab   : > { %v2912_v38 = vmul.f32 %v5210_v18, %v2876_v11 }
 0x3ad   : > { %v2948_v34 = vadd.f32 %v5218_v46, %v2912_v38  ;;  %v5811_v38 = vld [vmem:[#allocation35_spill] sm:$0xff] }
 0x3af   : > { %v2980_v59 = vmax.f32 %v2948_v34, 0.0  ;;  %v2412_v34 = vadd.f32 %v5811_v38, %v2177_v52 }
 0x3b0   : > { %v2821_v37 = vpop.f32.mrf.mxu2 }
 0x3b1   : > { %v3004_v1 = vpack.c.bf16 %v2980_v59, %v2979_v53  ;;  %v2589_v61 = vpop.f32.mrf.mxu1  ;;  %v2877_v5 = vadd.f32 %v2821_v37, %v2643_v44  ;;  %v5371_v53 = vld [vmem:[%s5681_s9] ss:$0 sm:$0xff]  ;;  %v3399_v59 = vadd.f32 %v5359_v9, %v3363_v51  ;;  %v5377_v8 = vpop.f32.mrf.mxu0 }
 0x3b2   : > { %v2644_v21 = vadd.f32 %v2589_v61, %v2410_v58 }
 0x3b3   : > { %3907 = vmatmul.msk.bf16.gmra.mxu3 %vm762_vm1, %v3004_v1  ;;  %v2913_v24 = vmul.f32 %v5210_v18, %v2877_v5 }
 0x3b5   : > { %v2949_v22 = vadd.f32 %v5218_v46, %v2913_v24 }
 0x3b7   : > { %v2981_v42 = vmax.f32 %v2949_v22, 0.0 }
 0x3b8   : > { %v2823_v50 = vpop.f32.mrf.mxu2 }
 0x3b9   : > { %v2878_v19 = vadd.f32 %v2823_v50, %v2644_v21  ;;  %v2592_v33 = vpop.f32.mrf.mxu1  ;;  %v5395_v4 = vpop.f32.mrf.mxu0 }
 0x3ba   : > { %v2645_v63 = vadd.f32 %v2592_v33, %v2411_v17  ;;  %3945 = vmatmul.msk.bf16.gmra.mxu0 %vm520_vm0, %v5810_v32  ;;  %v5815_v32 = vld [vmem:[#allocation39_spill] sm:$0xff] }
 0x3bb   : > { %v2914_v43 = vmul.f32 %v5210_v18, %v2878_v19  ;;  %v5812_v19 = vld [vmem:[#allocation37_spill] sm:$0xff] }
 0x3bc   : > { %v2413_v33 = vadd.f32 %v5812_v19, %v5121_v31 }
 0x3bd   : > { %v2950_v47 = vadd.f32 %v5218_v46, %v2914_v43  ;;  %v5813_v43 = vld [vmem:[#allocation41_spill] sm:$0xff] }
 0x3bf   : > { %v2982_v45 = vmax.f32 %v2950_v47, 0.0  ;;  %v2179_v47 = vadd.f32 %v5813_v43, %v5126_v13 }
 0x3c0   : > { %v2826_v55 = vpop.f32.mrf.mxu2 }
 0x3c1   : > { %v3005_v56 = vpack.c.bf16 %v2982_v45, %v2981_v42  ;;  %v2594_v11 = vpop.f32.mrf.mxu1  ;;  %v2879_v62 = vadd.f32 %v2826_v55, %v2645_v63  ;;  %v3400_v45 = vadd.f32 %v5359_v9, %v3364_v27 }
 0x3c2   : > { %v2646_v15 = vadd.f32 %v2594_v11, %v2412_v34  ;;  %v2414_v11 = vadd.f32 %v5815_v32, %v2179_v47 }
 0x3c3   : > { %3908 = vmatmul.msk.bf16.gmra.mxu3 %vm762_vm1, %v3005_v56  ;;  %v2915_v28 = vmul.f32 %v5210_v18, %v2879_v62  ;;  %v3365_v56 = vmul.f32 %v5347_v36, %v5326_v49 }
 0x3c5   : > { %v2951_v44 = vadd.f32 %v5218_v46, %v2915_v28  ;;  %v3401_v62 = vadd.f32 %v5359_v9, %v3365_v56  ;;  %v5409_v28 = vpop.f32.mrf.mxu0 }
 0x3c6   : > { %v3086_v54 = vpop.f32.mrf.mxu3 }
 0x3c7   : > { %v3170_v3 = vmul.f32 %v5365_v12, %v3086_v54  ;;  %v2983_v21 = vmax.f32 %v2951_v44, 0.0  ;;  %v3366_v44 = vmul.f32 %v5347_v36, %v5335_v40 }
 0x3c8   : > { %v2828_v37 = vpop.f32.mrf.mxu2 }
 0x3c9   : > { %v3206_v2 = vadd.f32 %v5371_v53, %v3170_v3  ;;  %v2880_v60 = vadd.f32 %v2828_v37, %v2646_v15  ;;  %v2597_v1 = vpop.f32.mrf.mxu1  ;;  %v3402_v40 = vadd.f32 %v5359_v9, %v3366_v44  ;;  %v2183_v44 = vadd.f32 %v5159_v30, %v5157_v6 }
 0x3ca   : > { %v2647_v17 = vadd.f32 %v2597_v1, %v2413_v33  ;;  %3946 = vmatmul.msk.bf16.gmra.mxu0 %vm520_vm0, %v5814_v48 }
 0x3cb   : > { %v3431_v16 = vadd.f32 %v3399_v59, %v3206_v2  ;;  %v2916_v61 = vmul.f32 %v5210_v18, %v2880_v60 }
 0x3cd   : > { %v3463_v5 = vmax.f32 %v3431_v16, 0.0  ;;  %v2952_v58 = vadd.f32 %v5218_v46, %v2916_v61  ;;  %v5423_v33 = vpop.f32.mrf.mxu0 }
 0x3ce   : > { %v3088_v24 = vpop.f32.mrf.mxu3 }
 0x3cf   : > { %3495 = vst [vmem:[%s5387_s22] sm:$0xff] %v3463_v5  ;;  %v2984_v50 = vmax.f32 %v2952_v58, 0.0  ;;  %v3171_v22 = vmul.f32 %v5365_v12, %v3088_v24  ;;  %v5816_v58 = vld [vmem:[#allocation40_spill] sm:$0xff] }
 0x3d0   : > { %v2831_v42 = vpop.f32.mrf.mxu2  ;;  %v2415_v24 = vadd.f32 %v5816_v58, %v5135_v26 }
 0x3d1   : > { %v3006_v0 = vpack.c.bf16 %v2984_v50, %v2983_v21  ;;  %v3207_v55 = vadd.f32 %v5371_v53, %v3171_v22  ;;  %v2599_v52 = vpop.f32.mrf.mxu1  ;;  %v2881_v63 = vadd.f32 %v2831_v42, %v2647_v17  ;;  %v2181_v50 = vadd.f32 %v5142_v7, %v5140_v57  ;;  %v5817_v42 = vld [vmem:[#allocation23_spill] sm:$0xff]  ;;  %v5818_v7 = vld [vmem:[#allocation42_spill] sm:$0xff] }
 0x3d2   : > { %v2648_v34 = vadd.f32 %v2599_v52, %v2414_v11 }
 0x3d3   : > { %v3432_v31 = vadd.f32 %v3400_v45, %v3207_v55  ;;  %3909 = vmatmul.msk.bf16.gmra.mxu3 %vm762_vm1, %v3006_v0  ;;  %v2917_v38 = vmul.f32 %v5210_v18, %v2881_v63  ;;  %v3367_v0 = vmul.f32 %v5347_v36, %v5349_v35  ;;  %v2416_v55 = vadd.f32 %v5818_v7, %v2181_v50 }
 0x3d5   : > { %v3464_v13 = vmax.f32 %v3432_v31, 0.0  ;;  %v2953_v37 = vadd.f32 %v5218_v46, %v2917_v38  ;;  %v3403_v52 = vadd.f32 %v5359_v9, %v3367_v0  ;;  %v5437_v32 = vpop.f32.mrf.mxu0 }
 0x3d6   : > { %v3091_v51 = vpop.f32.mrf.mxu3 }
 0x3d7   : > { %3496 = vst [vmem:[%s5387_s22 + $0x8] sm:$0xff] %v3464_v13  ;;  %v3172_v54 = vmul.f32 %v5365_v12, %v3091_v51  ;;  %v2985_v5 = vmax.f32 %v2953_v37, 0.0 }
 0x3d8   : > { %v2833_v59 = vpop.f32.mrf.mxu2 }
 0x3d9   : > { %v3208_v49 = vadd.f32 %v5371_v53, %v3172_v54  ;;  %v2882_v15 = vadd.f32 %v2833_v59, %v2648_v34  ;;  %v2602_v3 = vpop.f32.mrf.mxu1  ;;  %v3368_v59 = vmul.f32 %v5347_v36, %v5377_v8 }
 0x3da   : > { %v2649_v43 = vadd.f32 %v2602_v3, %v2415_v24  ;;  %3947 = vmatmul.msk.bf16.gmra.mxu0 %vm520_vm0, %v5817_v42 }
 0x3db   : > { %v3433_v2 = vadd.f32 %v3401_v62, %v3208_v49  ;;  %v2918_v60 = vmul.f32 %v5210_v18, %v2882_v15  ;;  %v3404_v8 = vadd.f32 %v5359_v9, %v3368_v59 }
 0x3dd   : > { %v3465_v1 = vmax.f32 %v3433_v2, 0.0  ;;  %v2954_v16 = vadd.f32 %v5218_v46, %v2918_v60  ;;  %v5819_v2 = vld [vmem:[#allocation43_spill] sm:$0xff] }
 0x3de   : > { %v3093_v61 = vpop.f32.mrf.mxu3  ;;  %v2417_v60 = vadd.f32 %v5819_v2, %v5154_v20  ;;  %v3369_v20 = vmul.f32 %v5347_v36, %v5395_v4 }
 0x3df   : > { %3497 = vst [vmem:[%s5387_s22 + $0x10] sm:$0xff] %v3465_v1  ;;  %v2986_v27 = vmax.f32 %v2954_v16, 0.0  ;;  %v3173_v21 = vmul.f32 %v5365_v12, %v3093_v61  ;;  %v5451_v61 = vpop.f32.mrf.mxu0 }
 0x3e0   : > { %v2836_v19 = vpop.f32.mrf.mxu2 }
 0x3e1   : > { %v3007_v22 = vpack.c.bf16 %v2986_v27, %v2985_v5  ;;  %v3209_v47 = vadd.f32 %v5371_v53, %v3173_v21  ;;  %v2604_v45 = vpop.f32.mrf.mxu1  ;;  %v2883_v17 = vadd.f32 %v2836_v19, %v2649_v43 }
 0x3e2   : > { %v2650_v56 = vadd.f32 %v2604_v45, %v2416_v55 }
 0x3e3   : > { %v3434_v26 = vadd.f32 %v3402_v40, %v3209_v47  ;;  %3910 = vmatmul.msk.bf16.gmra.mxu3 %vm762_vm1, %v3007_v22  ;;  %v2919_v31 = vmul.f32 %v5210_v18, %v2883_v17  ;;  %v5820_v40 = vld [vmem:[#allocation8_spill] sm:$0xff]  ;;  %v3405_v22 = vadd.f32 %v5359_v9, %v3369_v20 }
 0x3e4   : > { %v2418_v6 = vadd.f32 %v5820_v40, %v2183_v44  ;;  %v5824_v44 = vld [vmem:[#allocation9_spill] sm:$0xff] }
 0x3e5   : > { %v3466_v57 = vmax.f32 %v3434_v26, 0.0  ;;  %v2955_v62 = vadd.f32 %v5218_v46, %v2919_v31 }
 0x3e6   : > { %v3096_v48 = vpop.f32.mrf.mxu3 }
 0x3e7   : > { %3498 = vst [vmem:[%s5387_s22 + $0x18] sm:$0xff] %v3466_v57  ;;  %v3174_v63 = vmul.f32 %v5365_v12, %v3096_v48  ;;  %v2987_v3 = vmax.f32 %v2955_v62, 0.0  ;;  %v5463_v26 = vpop.f32.mrf.mxu0  ;;  %v5822_v62 = vld [vmem:[#allocation45_spill] sm:$0xff] }
 0x3e8   : > { %v2838_v13 = vpop.f32.mrf.mxu2 }
 0x3e9   : > { %v3210_v35 = vadd.f32 %v5371_v53, %v3174_v63  ;;  %v2884_v11 = vadd.f32 %v2838_v13, %v2650_v56  ;;  %v2607_v51 = vpop.f32.mrf.mxu1 }
 0x3ea   : > { %v2651_v27 = vadd.f32 %v2607_v51, %v2417_v60 }
 0x3eb   : > { %v3435_v38 = vadd.f32 %v3403_v52, %v3210_v35  ;;  %v2920_v34 = vmul.f32 %v5210_v18, %v2884_v11  ;;  %v3370_v52 = vmul.f32 %v5347_v36, %v5409_v28  ;;  %v5821_v35 = vld [vmem:[#allocation44_spill] sm:$0xff] }
 0x3ec   : > { %v2419_v11 = vadd.f32 %v5821_v35, %v5168_v41  ;;  %v3371_v41 = vmul.f32 %v5347_v36, %v5423_v33 }
 0x3ed   : > { %v3467_v54 = vmax.f32 %v3435_v38, 0.0  ;;  %v2956_v49 = vadd.f32 %v5218_v46, %v2920_v34  ;;  %v5823_v38 = vld [vmem:[#allocation46_spill] sm:$0xff]  ;;  %v3406_v28 = vadd.f32 %v5359_v9, %v3370_v52 }
 0x3ee   : > { %v3098_v15 = vpop.f32.mrf.mxu3  ;;  %v2185_v34 = vadd.f32 %v5823_v38, %v5822_v62  ;;  %v5825_v52 = vld [vmem:[#allocation10_spill] sm:$0xff] }
 0x3ef   : > { %3499 = vst [vmem:[%s5387_s22 + $0x20] sm:$0xff] %v3467_v54  ;;  %v2988_v37 = vmax.f32 %v2956_v49, 0.0  ;;  %v3175_v1 = vmul.f32 %v5365_v12, %v3098_v15  ;;  %v5477_v59 = vpop.f32.mrf.mxu0 }
 0x3f0   : > { %v2841_v16 = vpop.f32.mrf.mxu2 }
 0x3f1   : > { %v3008_v5 = vpack.c.bf16 %v2988_v37, %v2987_v3  ;;  %v3211_v58 = vadd.f32 %v5371_v53, %v3175_v1  ;;  %v2609_v24 = vpop.f32.mrf.mxu1  ;;  %v2885_v50 = vadd.f32 %v2841_v16, %v2651_v27  ;;  %v2420_v16 = vadd.f32 %v5824_v44, %v2185_v34 }
 0x3f2   : > { %v2652_v47 = vadd.f32 %v2609_v24, %v2418_v6 }
 0x3f3   : > { %v3436_v21 = vadd.f32 %v3404_v8, %v3211_v58  ;;  %3911 = vmatmul.msk.bf16.gmra.mxu3 %vm762_vm1, %v3008_v5  ;;  %v2921_v43 = vmul.f32 %v5210_v18, %v2885_v50  ;;  %v3407_v5 = vadd.f32 %v5359_v9, %v3371_v41 }
 0x3f5   : > { %v3468_v19 = vmax.f32 %v3436_v21, 0.0  ;;  %v2957_v57 = vadd.f32 %v5218_v46, %v2921_v43  ;;  %v3372_v43 = vmul.f32 %v5347_v36, %v5437_v32 }
 0x3f6   : > { %v3101_v30 = vpop.f32.mrf.mxu3 }
 0x3f7   : > { %3500 = vst [vmem:[%s5387_s22 + $0x28] sm:$0xff] %v3468_v19  ;;  %v3176_v42 = vmul.f32 %v5365_v12, %v3101_v30  ;;  %v2989_v63 = vmax.f32 %v2957_v57, 0.0  ;;  %v5489_v20 = vpop.f32.mrf.mxu0 }
 0x3f8   : > { %v2843_v45 = vpop.f32.mrf.mxu2 }
 0x3f9   : > { %v3212_v4 = vadd.f32 %v5371_v53, %v3176_v42  ;;  %v2886_v0 = vadd.f32 %v2843_v45, %v2652_v47  ;;  %v2612_v17 = vpop.f32.mrf.mxu1 }
 0x3fa   : > { %v2653_v15 = vadd.f32 %v2612_v17, %v2419_v11  ;;  %v2187_v17 = vadd.f32 %v5189_v10, %v5187_v14  ;;  %v5826_v14 = vld [vmem:[#allocation47_spill] sm:$0xff] }
 0x3fb   : > { %v3437_v7 = vadd.f32 %v3405_v22, %v3212_v4  ;;  %v2922_v55 = vmul.f32 %v5210_v18, %v2886_v0 }
 0x3fc   : > { %v2422_v10 = vadd.f32 %v5826_v14, %v2187_v17 }
 0x3fd   : > { %v3469_v48 = vmax.f32 %v3437_v7, 0.0  ;;  %v2958_v31 = vadd.f32 %v5218_v46, %v2922_v55  ;;  %v3408_v55 = vadd.f32 %v5359_v9, %v3372_v43 }
 0x3fe   : > { %v3103_v56 = vpop.f32.mrf.mxu3 }
 0x3ff   : > { %3501 = vst [vmem:[%s5387_s22 + $0x30] sm:$0xff] %v3469_v48  ;;  %v2990_v13 = vmax.f32 %v2958_v31, 0.0  ;;  %v3177_v51 = vmul.f32 %v5365_v12, %v3103_v56  ;;  %v5501_v7 = vpop.f32.mrf.mxu0 }
 0x400   : > { %v2846_v54 = vpop.f32.mrf.mxu2 }
 0x401   : > { %v3009_v49 = vpack.c.bf16 %v2990_v13, %v2989_v63  ;;  %v3213_v3 = vadd.f32 %v5371_v53, %v3177_v51  ;;  %v2614_v37 = vpop.f32.mrf.mxu1  ;;  %v2887_v60 = vadd.f32 %v2846_v54, %v2653_v15  ;;  %v3373_v13 = vmul.f32 %v5347_v36, %v5451_v61 }
 0x402   : > { %v2654_v58 = vadd.f32 %v2614_v37, %v2420_v16 }
 0x403   : > { %v3438_v2 = vadd.f32 %v3406_v28, %v3213_v3  ;;  %3912 = vmatmul.msk.bf16.gmra.mxu3 %vm762_vm1, %v3009_v49  ;;  %v2923_v27 = vmul.f32 %v5210_v18, %v2887_v60  ;;  %v3409_v62 = vadd.f32 %v5359_v9, %v3373_v13 }
 0x405   : > { %v3470_v1 = vmax.f32 %v3438_v2, 0.0  ;;  %v2959_v40 = vadd.f32 %v5218_v46, %v2923_v27 }
 0x406   : > { %v3106_v8 = vpop.f32.mrf.mxu3 }
 0x407   : > { %3502 = vst [vmem:[%s5387_s22 + $0x38] sm:$0xff] %v3470_v1  ;;  %v3178_v24 = vmul.f32 %v5365_v12, %v3106_v8  ;;  %v2991_v45 = vmax.f32 %v2959_v40, 0.0  ;;  %v3316_v3 = vpop.f32.mrf.mxu0  ;;  %v3374_v1 = vmul.f32 %v5347_v36, %v5463_v26  ;;  %v3375_v40 = vmul.f32 %v5347_v36, %v5477_v59 }
 0x408   : > { %v2848_v21 = vpop.f32.mrf.mxu2 }
 0x409   : > { %v3214_v33 = vadd.f32 %v5371_v53, %v3178_v24  ;;  %v2888_v50 = vadd.f32 %v2848_v21, %v2654_v58  ;;  %v2617_v19 = vpop.f32.mrf.mxu1  ;;  %v2189_v58 = vadd.f32 %v5340_v25, %v5199_v23  ;;  %v3410_v21 = vadd.f32 %v5359_v9, %v3374_v1 }
 0x40a   : > { %v2655_v32 = vadd.f32 %v2617_v19, %v5825_v52 }
 0x40b   : > { %v3439_v6 = vadd.f32 %v3407_v5, %v3214_v33  ;;  %v2924_v30 = vmul.f32 %v5210_v18, %v2888_v50  ;;  %v2424_v43 = vadd.f32 %v5303_v29, %v2189_v58 }
 0x40d   : > { %v3471_v22 = vmax.f32 %v3439_v6, 0.0  ;;  %v2960_v47 = vadd.f32 %v5218_v46, %v2924_v30 }
 0x40e   : > { %v3108_v42 = vpop.f32.mrf.mxu3 }
 0x40f   : > { %3503 = vst [vmem:[%s5387_s22 + $0x40] sm:$0xff] %v3471_v22  ;;  %v2992_v4 = vmax.f32 %v2960_v47, 0.0  ;;  %v3179_v0 = vmul.f32 %v5365_v12, %v3108_v42  ;;  %v3319_v22 = vpop.f32.mrf.mxu0  ;;  %v3411_v47 = vadd.f32 %v5359_v9, %v3375_v40 }
 0x410   : > { %v2851_v57 = vpop.f32.mrf.mxu2 }
 0x411   : > { %v3010_v48 = vpack.c.bf16 %v2992_v4, %v2991_v45  ;;  %v3215_v31 = vadd.f32 %v5371_v53, %v3179_v0  ;;  %v2619_v56 = vpop.f32.mrf.mxu1  ;;  %v2889_v35 = vadd.f32 %v2851_v57, %v2655_v32 }
 0x412   : > { %v2656_v34 = vadd.f32 %v2619_v56, %v2422_v10 }
 0x413   : > { %v3440_v63 = vadd.f32 %v3408_v55, %v3215_v31  ;;  %3913 = vmatmul.msk.bf16.gmra.mxu3 %vm762_vm1, %v3010_v48  ;;  %v2925_v38 = vmul.f32 %v5210_v18, %v2889_v35  ;;  %v3376_v48 = vmul.f32 %v5347_v36, %v5489_v20  ;;  %v3377_v20 = vmul.f32 %v5347_v36, %v5501_v7 }
 0x415   : > { %v3472_v11 = vmax.f32 %v3440_v63, 0.0  ;;  %v2961_v37 = vadd.f32 %v5218_v46, %v2925_v38  ;;  %v3412_v35 = vadd.f32 %v5359_v9, %v3376_v48 }
 0x416   : > { %v3111_v51 = vpop.f32.mrf.mxu3 }
 0x417   : > { %3504 = vst [vmem:[%s5387_s22 + $0x48] sm:$0xff] %v3472_v11  ;;  %v3180_v54 = vmul.f32 %v5365_v12, %v3111_v51  ;;  %v2993_v8 = vmax.f32 %v2961_v37, 0.0  ;;  %v3321_v31 = vpop.f32.mrf.mxu0  ;;  %v3413_v51 = vadd.f32 %v5359_v9, %v3377_v20 }
 0x418   : > { %v2853_v28 = vpop.f32.mrf.mxu2 }
 0x419   : > { %v3216_v49 = vadd.f32 %v5371_v53, %v3180_v54  ;;  %v2890_v61 = vadd.f32 %v2853_v28, %v2656_v34  ;;  %v2622_v15 = vpop.f32.mrf.mxu1 }
 0x41a   : > { %v2657_v50 = vadd.f32 %v2622_v15, %v5197_v39 }
 0x41b   : > { %v3441_v2 = vadd.f32 %v3409_v62, %v3216_v49  ;;  %v2926_v41 = vmul.f32 %v5210_v18, %v2890_v61  ;;  %v3378_v49 = vmul.f32 %v5347_v36, %v3316_v3 }
 0x41d   : > { %v3473_v60 = vmax.f32 %v3441_v2, 0.0  ;;  %v2962_v44 = vadd.f32 %v5218_v46, %v2926_v41  ;;  %v3414_v15 = vadd.f32 %v5359_v9, %v3378_v49 }
 0x41e   : > { %v3113_v16 = vpop.f32.mrf.mxu3 }
 0x41f   : > { %3505 = vst [vmem:[%s5387_s22 + $0x50] sm:$0xff] %v3473_v60  ;;  %v2994_v5 = vmax.f32 %v2962_v44, 0.0  ;;  %v3181_v27 = vmul.f32 %v5365_v12, %v3113_v16  ;;  %v3324_v38 = vpop.f32.mrf.mxu0  ;;  %v3379_v60 = vmul.f32 %v5347_v36, %v3319_v22 }
 0x420   : > { %v2856_v24 = vpop.f32.mrf.mxu2  ;;  %v3381_v40 = vmul.f32 %v5347_v36, %v3324_v38 }
 0x421   : > { %v3011_v33 = vpack.c.bf16 %v2994_v5, %v2993_v8  ;;  %v3217_v26 = vadd.f32 %v5371_v53, %v3181_v27  ;;  %v2891_v6 = vadd.f32 %v2856_v24, %v2657_v50  ;;  %v2624_v30 = vpop.f32.mrf.mxu1  ;;  %v3415_v16 = vadd.f32 %v5359_v9, %v3379_v60 }
 0x422   : > { %v2658_v42 = vadd.f32 %v2624_v30, %v2424_v43  ;;  %v3380_v24 = vmul.f32 %v5347_v36, %v3321_v31  ;;  %v3417_v43 = vadd.f32 %v5359_v9, %v3381_v40 }
 0x423   : > { %v3442_v19 = vadd.f32 %v3410_v21, %v3217_v26  ;;  %3914 = vmatmul.msk.bf16.gmra.mxu3 %vm762_vm1, %v3011_v33  ;;  %v2927_v39 = vmul.f32 %v5210_v18, %v2891_v6 }
 0x424   : > { %v3416_v50 = vadd.f32 %v5359_v9, %v3380_v24 }
 0x425   : > { %v3474_v23 = vmax.f32 %v3442_v19, 0.0  ;;  %v2963_v17 = vadd.f32 %v5218_v46, %v2927_v39 }
 0x426   : > { %v3116_v25 = vpop.f32.mrf.mxu3 }
 0x427   : > { %3506 = vst [vmem:[%s5387_s22 + $0x58] sm:$0xff] %v3474_v23  ;;  %v3182_v45 = vmul.f32 %v5365_v12, %v3116_v25  ;;  %v2995_v56 = vmax.f32 %v2963_v17, 0.0  ;;  %v3326_v2 = vpop.f32.mrf.mxu0 }
 0x428   : > { %v2858_v4 = vpop.f32.mrf.mxu2 }
 0x429   : > { %v3218_v59 = vadd.f32 %v5371_v53, %v3182_v45  ;;  %v2892_v0 = vadd.f32 %v2858_v4, %v2658_v42  ;;  %v3382_v42 = vmul.f32 %v5347_v36, %v3326_v2 }
 0x42b   : > { %v3443_v57 = vadd.f32 %v3411_v47, %v3218_v59  ;;  %v2928_v29 = vmul.f32 %v5210_v18, %v2892_v0  ;;  %v3418_v0 = vadd.f32 %v5359_v9, %v3382_v42 }
 0x42d   : > { %v3475_v55 = vmax.f32 %v3443_v57, 0.0  ;;  %v2964_v52 = vadd.f32 %v5218_v46, %v2928_v29 }
 0x42e   : > { %v3118_v32 = vpop.f32.mrf.mxu3 }
 0x42f   : > { %3507 = vst [vmem:[%s5387_s22 + $0x60] sm:$0xff] %v3475_v55  ;;  %v2996_v63 = vmax.f32 %v2964_v52, 0.0  ;;  %v3183_v13 = vmul.f32 %v5365_v12, %v3118_v32  ;;  %v3329_v27 = vpop.f32.mrf.mxu0 }
 0x430   : > { %v3383_v29 = vmul.f32 %v5347_v36, %v3329_v27 }
 0x431   : > { %v3012_v11 = vpack.c.bf16 %v2996_v63, %v2995_v56  ;;  %v3219_v18 = vadd.f32 %v5371_v53, %v3183_v13 }
 0x432   : > { %v3419_v52 = vadd.f32 %v5359_v9, %v3383_v29 }
 0x433   : > { %v3444_v14 = vadd.f32 %v3412_v35, %v3219_v18  ;;  %3915 = vmatmul.msk.bf16.gmra.mxu3 %vm762_vm1, %v3012_v11 }
 0x435   : > { %v3476_v46 = vmax.f32 %v3444_v14, 0.0 }
 0x436   : > { %v3121_v10 = vpop.f32.mrf.mxu3 }
 0x437   : > { %3508 = vst [vmem:[%s5387_s22 + $0x68] sm:$0xff] %v3476_v46  ;;  %v3184_v62 = vmul.f32 %v5365_v12, %v3121_v10  ;;  %v3331_v22 = vpop.f32.mrf.mxu0 }
 0x438   : > { %v3384_v35 = vmul.f32 %v5347_v36, %v3331_v22 }
 0x439   : > { %v3220_v34 = vadd.f32 %v5371_v53, %v3184_v62 }
 0x43a   : > { %v3420_v14 = vadd.f32 %v5359_v9, %v3384_v35 }
 0x43b   : > { %v3445_v54 = vadd.f32 %v3413_v51, %v3220_v34 }
 0x43d   : > { %v3477_v28 = vmax.f32 %v3445_v54, 0.0 }
 0x43e   : > { %v3123_v61 = vpop.f32.mrf.mxu3 }
 0x43f   : > { %3509 = vst [vmem:[%s5387_s22 + $0x70] sm:$0xff] %v3477_v28  ;;  %v3185_v7 = vmul.f32 %v5365_v12, %v3123_v61  ;;  %v3334_v59 = vpop.f32.mrf.mxu0 }
 0x440   : > { %v3385_v10 = vmul.f32 %v5347_v36, %v3334_v59 }
 0x441   : > { %v3221_v37 = vadd.f32 %v5371_v53, %v3185_v7 }
 0x442   : > { %v3421_v34 = vadd.f32 %v5359_v9, %v3385_v10 }
 0x443   : > { %v3446_v41 = vadd.f32 %v3414_v15, %v3221_v37 }
 0x445   : > { %v3478_v1 = vmax.f32 %v3446_v41, 0.0 }
 0x446   : > { %v3126_v44 = vpop.f32.mrf.mxu3 }
 0x447   : > { %3510 = vst [vmem:[%s5387_s22 + $0x78] sm:$0xff] %v3478_v1  ;;  %v3186_v3 = vmul.f32 %v5365_v12, %v3126_v44  ;;  %v3336_v56 = vpop.f32.mrf.mxu0 }
 0x448   : > { %v3386_v7 = vmul.f32 %v5347_v36, %v3336_v56 }
 0x449   : > { %v3222_v8 = vadd.f32 %v5371_v53, %v3186_v3 }
 0x44a   : > { %v3422_v41 = vadd.f32 %v5359_v9, %v3386_v7 }
 0x44b   : > { %v3447_v5 = vadd.f32 %v3415_v16, %v3222_v8 }
 0x44d   : > { %v3479_v58 = vmax.f32 %v3447_v5, 0.0 }
 0x44e   : > { %v3128_v21 = vpop.f32.mrf.mxu3 }
 0x44f   : > { %3511 = vst [vmem:[%s5387_s22 + $0x80] sm:$0xff] %v3479_v58  ;;  %v3187_v33 = vmul.f32 %v5365_v12, %v3128_v21  ;;  %v3339_v51 = vpop.f32.mrf.mxu0 }
 0x450   : > { %v3387_v44 = vmul.f32 %v5347_v36, %v3339_v51 }
 0x451   : > { %v3223_v26 = vadd.f32 %v5371_v53, %v3187_v33 }
 0x452   : > { %v3423_v8 = vadd.f32 %v5359_v9, %v3387_v44 }
 0x453   : > { %v3448_v19 = vadd.f32 %v3416_v50, %v3223_v26 }
 0x455   : > { %v3480_v6 = vmax.f32 %v3448_v19, 0.0 }
 0x456   : > { %v3131_v30 = vpop.f32.mrf.mxu3 }
 0x457   : > { %3512 = vst [vmem:[%s5387_s22 + $0x88] sm:$0xff] %v3480_v6  ;;  %v3188_v23 = vmul.f32 %v5365_v12, %v3131_v30  ;;  %v3341_v37 = vpop.f32.mrf.mxu0 }
 0x458   : > { %v3388_v33 = vmul.f32 %v5347_v36, %v3341_v37 }
 0x459   : > { %v3224_v25 = vadd.f32 %v5371_v53, %v3188_v23 }
 0x45a   : > { %v3424_v19 = vadd.f32 %v5359_v9, %v3388_v33 }
 0x45b   : > { %v3449_v47 = vadd.f32 %v3417_v43, %v3224_v25 }
 0x45d   : > { %v3481_v39 = vmax.f32 %v3449_v47, 0.0 }
 0x45e   : > { %v3133_v45 = vpop.f32.mrf.mxu3 }
 0x45f   : > { %3513 = vst [vmem:[%s5387_s22 + $0x90] sm:$0xff] %v3481_v39  ;;  %v3189_v4 = vmul.f32 %v5365_v12, %v3133_v45  ;;  %v3344_v27 = vpop.f32.mrf.mxu0 }
 0x460   : > { %v3389_v22 = vmul.f32 %v5347_v36, %v3344_v27 }
 0x461   : > { %v3225_v17 = vadd.f32 %v5371_v53, %v3189_v4 }
 0x462   : > { %v3425_v25 = vadd.f32 %v5359_v9, %v3389_v22 }
 0x463   : > { %v3450_v57 = vadd.f32 %v3418_v0, %v3225_v17 }
 0x465   : > { %v3482_v55 = vmax.f32 %v3450_v57, 0.0 }
 0x466   : > { %v3136_v48 = vpop.f32.mrf.mxu3 }
 0x467   : > { %3514 = vst [vmem:[%s5387_s22 + $0x98] sm:$0xff] %v3482_v55  ;;  %v3190_v32 = vmul.f32 %v5365_v12, %v3136_v48  ;;  %v3346_v6 = vpop.f32.mrf.mxu0 }
 0x468   : > { %v3390_v59 = vmul.f32 %v5347_v36, %v3346_v6 }
 0x469   : > { %v3226_v31 = vadd.f32 %v5371_v53, %v3190_v32 }
 0x46a   : > { %v3426_v57 = vadd.f32 %v5359_v9, %v3390_v59 }
 0x46b   : > { %v3451_v63 = vadd.f32 %v3419_v52, %v3226_v31 }
 0x46d   : > { %v3483_v13 = vmax.f32 %v3451_v63, 0.0 }
 0x46e   : > { %v3138_v11 = vpop.f32.mrf.mxu3 }
 0x46f   : > { %3515 = vst [vmem:[%s5387_s22 + $0xa0] sm:$0xff] %v3483_v13  ;;  %v3191_v18 = vmul.f32 %v5365_v12, %v3138_v11  ;;  %v3349_v45 = vpop.f32.mrf.mxu0 }
 0x470   : > { %v3391_v48 = vmul.f32 %v5347_v36, %v3349_v45 }
 0x471   : > { %v3227_v20 = vadd.f32 %v5371_v53, %v3191_v18 }
 0x472   : > { %v3427_v56 = vadd.f32 %v5359_v9, %v3391_v48 }
 0x473   : > { %v3452_v46 = vadd.f32 %v3420_v14, %v3227_v20 }
 0x475   : > { %v3484_v62 = vmax.f32 %v3452_v46, 0.0 }
 0x476   : > { %v3141_v38 = vpop.f32.mrf.mxu3 }
 0x477   : > { %3516 = vst [vmem:[%s5387_s22 + $0xa8] sm:$0xff] %v3484_v62  ;;  %v3192_v54 = vmul.f32 %v5365_v12, %v3141_v38  ;;  %v3351_v31 = vpop.f32.mrf.mxu0 }
 0x478   : > { %v3392_v18 = vmul.f32 %v5347_v36, %v3351_v31 }
 0x479   : > { %v3228_v28 = vadd.f32 %v5371_v53, %v3192_v54 }
 0x47a   : > { %v3428_v10 = vadd.f32 %v5359_v9, %v3392_v18 }
 0x47b   : > { %v3453_v49 = vadd.f32 %v3421_v34, %v3228_v28 }
 0x47d   : > { %v3485_v61 = vmax.f32 %v3453_v49, 0.0 }
 0x47e   : > { %v3143_v15 = vpop.f32.mrf.mxu3 }
 0x47f   : > { %3517 = vst [vmem:[%s5387_s22 + $0xb0] sm:$0xff] %v3485_v61  ;;  %v3193_v2 = vmul.f32 %v5365_v12, %v3143_v15  ;;  %v3354_v46 = vpop.f32.mrf.mxu0 }
 0x480   : > { %v3393_v38 = vmul.f32 %v5347_v36, %v3354_v46 }
 0x481   : > { %v3229_v60 = vadd.f32 %v5371_v53, %v3193_v2 }
 0x482   : > { %v3429_v28 = vadd.f32 %v5359_v9, %v3393_v38 }
 0x483   : > { %v3454_v1 = vadd.f32 %v3422_v41, %v3229_v60 }
 0x485   : > { %v3486_v16 = vmax.f32 %v3454_v1, 0.0 }
 0x486   : > { %v3146_v3 = vpop.f32.mrf.mxu3 }
 0x487   : > { %3518 = vst [vmem:[%s5387_s22 + $0xb8] sm:$0xff] %v3486_v16  ;;  %v3194_v5 = vmul.f32 %v5365_v12, %v3146_v3  ;;  %v3356_v7 = vpop.f32.mrf.mxu0 }
 0x488   : > { %v3394_v2 = vmul.f32 %v5347_v36, %v3356_v7 }
 0x489   : > { %v3230_v58 = vadd.f32 %v5371_v53, %v3194_v5 }
 0x48a   : > { %v3430_v1 = vadd.f32 %v5359_v9, %v3394_v2 }
 0x48b   : > { %v3455_v24 = vadd.f32 %v3423_v8, %v3230_v58 }
 0x48d   : > { %v3487_v21 = vmax.f32 %v3455_v24, 0.0 }
 0x48e   : > { %v3148_v50 = vpop.f32.mrf.mxu3 }
 0x48f   : > { %3519 = vst [vmem:[%s5387_s22 + $0xc0] sm:$0xff] %v3487_v21  ;;  %v3195_v26 = vmul.f32 %v5365_v12, %v3148_v50 }
 0x491   : > { %v3231_v40 = vadd.f32 %v5371_v53, %v3195_v26 }
 0x493   : > { %v3456_v30 = vadd.f32 %v3424_v19, %v3231_v40 }
 0x495   : > { %v3488_v43 = vmax.f32 %v3456_v30, 0.0 }
 0x496   : > { %v3151_v23 = vpop.f32.mrf.mxu3 }
 0x497   : > { %3520 = vst [vmem:[%s5387_s22 + $0xc8] sm:$0xff] %v3488_v43  ;;  %v3196_v47 = vmul.f32 %v5365_v12, %v3151_v23 }
 0x499   : > { %v3232_v39 = vadd.f32 %v5371_v53, %v3196_v47 }
 0x49b   : > { %v3457_v42 = vadd.f32 %v3425_v25, %v3232_v39 }
 0x49d   : > { %v3489_v4 = vmax.f32 %v3457_v42, 0.0 }
 0x49e   : > { %v3153_v0 = vpop.f32.mrf.mxu3 }
 0x49f   : > { %3521 = vst [vmem:[%s5387_s22 + $0xd0] sm:$0xff] %v3489_v4  ;;  %v3197_v17 = vmul.f32 %v5365_v12, %v3153_v0 }
 0x4a1   : > { %v3233_v29 = vadd.f32 %v5371_v53, %v3197_v17 }
 0x4a3   : > { %v3458_v55 = vadd.f32 %v3426_v57, %v3233_v29 }
 0x4a5   : > { %v3490_v52 = vmax.f32 %v3458_v55, 0.0 }
 0x4a6   : > { %v3156_v32 = vpop.f32.mrf.mxu3 }
 0x4a7   : > { %3522 = vst [vmem:[%s5387_s22 + $0xd8] sm:$0xff] %v3490_v52  ;;  %v3198_v63 = vmul.f32 %v5365_v12, %v3156_v32 }
 0x4a9   : > { %v3234_v13 = vadd.f32 %v5371_v53, %v3198_v63 }
 0x4ab   : > { %v3459_v35 = vadd.f32 %v3427_v56, %v3234_v13 }
 0x4ad   : > { %v3491_v11 = vmax.f32 %v3459_v35, 0.0 }
 0x4ae   : > { %v3158_v14 = vpop.f32.mrf.mxu3 }
 0x4af   : > { %3523 = vst [vmem:[%s5387_s22 + $0xe0] sm:$0xff] %v3491_v11  ;;  %v3199_v20 = vmul.f32 %v5365_v12, %v3158_v14 }
 0x4b1   : > { %v3235_v51 = vadd.f32 %v5371_v53, %v3199_v20 }
 0x4b3   : > { %v3460_v62 = vadd.f32 %v3428_v10, %v3235_v51 }
 0x4b5   : > { %v3492_v34 = vmax.f32 %v3460_v62, 0.0 }
 0x4b6   : > { %v3161_v54 = vpop.f32.mrf.mxu3 }
 0x4b7   : > { %3524 = vst [vmem:[%s5387_s22 + $0xe8] sm:$0xff] %v3492_v34  ;;  %v3200_v49 = vmul.f32 %v5365_v12, %v3161_v54 }
 0x4b9   : > { %v3236_v61 = vadd.f32 %v5371_v53, %v3200_v49 }
 0x4bb   : > { %v3461_v15 = vadd.f32 %v3429_v28, %v3236_v61 }
 0x4bd   : > { %v3493_v37 = vmax.f32 %v3461_v15, 0.0 }
 0x4be   : > { %v3163_v41 = vpop.f32.mrf.mxu3 }
 0x4bf   : > { %3525 = vst [vmem:[%s5387_s22 + $0xf0] sm:$0xff] %v3493_v37  ;;  %v3201_v60 = vmul.f32 %v5365_v12, %v3163_v41 }
 0x4c1   : > { %v3237_v44 = vadd.f32 %v5371_v53, %v3201_v60 }
 0x4c3   : > { %v3462_v16 = vadd.f32 %v3430_v1, %v3237_v44 }
 0x4c5   : > { %v3494_v3 = vmax.f32 %v3462_v16, 0.0 }
 0x4c7   : > { %3526 = vst [vmem:[%s5387_s22 + $0xf8] sm:$0xff] %v3494_v3 }
 0x4c8   : > { %4060 = shalt.err (!%p4057_p3)
}
 0x4c9   : > { %s4098_s16 = smov 128   ;;  %s4099_s22 = smov 8  }
 0x4ca   : > { %3983 = dma.vmem_to_hbm [thread:$0]  (%p4208_p5), %s3541_s24, 4096, %s3543_s30, %s3528_s29, %s4098_s16, %s4098_s16, %s4099_s22  }
 0x4cb PF: > { %p3989_p4 = scmp.ge.s32.totalorder %s4095_s28, 2  ;;  %s3557_s27 = sand.u32 1, %s4083_s25  }
 0x4cc   : > { %s3558_s0 = scalar_lea.sflag [#allocation4], %s3557_s27 }
 0x4cd   : > { %p3986_p7 = pnand %p3989_p4, %p4212_p6 }
 0x4cf   : > { %p3987_p8 = pneg %p3986_p7 }
 0x4d1   : > { %4078 = dma.done.wait (%p3987_p8), %s3558_s0, 4096  }
 0x4d2   : > { %4080 = vsyncadd (%p3987_p8), %s3558_s0, 4294963200  ;;  %s5827_s15 = sld [smem:[#allocation6_spill]]  ;;  %p23_p9 = scmp.ge.s32.totalorder %s4195_s14, 4  }
 0x4d3   : > { %s5828_s27 = sld [smem:[#allocation7_spill]]  ;;  %s5829_s25 = smov %s4087_s26 }
 0x4d4   : > { %s5831_s28 = smov %s4195_s14  ;;  %25 = sbr.rel (!%p23_p9) target bundleno = 5 (0x5), region = 117 }
 0x4d8   : > { %s5830_s26 = smov %s5827_s15 }
 0x4d9   :  { %3564 = vsyncpa [#allocation4], 1 }
 0x4da   :  { %3566 = vsyncpa [#allocation4 + $0x1], 1 }

</bundles_post_ra>
